<compile_context>
chip_gen: v6e
topology: v6e:2x2x1
jax: 0.10.0
libtpu: 0.0.40
codegen_flags: <defaults>
</compile_context>

<pallas_src>
import jax
import jax.numpy as jnp
from jax import lax
from jax.experimental import pallas as pl
from jax.experimental.pallas import tpu as pltpu


# ----------------------- one-time parameter preprocessing -------------------


def _band_conv1(w1):
    """(6,1,5,5) OIHW conv1 weight -> 5 banded matrices of shape (28, 24*6)."""
    kh, kw, w_in, w_out, cout = 5, 5, 28, 24, 6
    w1t = jnp.transpose(w1[:, 0], (1, 2, 0))              # (i, j, co)
    xx = jnp.arange(w_in)[:, None]
    xo = jnp.arange(w_out)[None, :]
    j = xx - xo                                            # (28, 24)
    valid = (j >= 0) & (j < kw)
    band = w1t[:, jnp.clip(j, 0, kw - 1), :]               # (5, 28, 24, 6)
    band = jnp.where(valid[None, :, :, None], band, 0.0)
    return band.reshape(kh, w_in, w_out * cout)            # (5, 28, 144)


def _band_conv2(w2):
    """(16,6,5,5) conv2 weight -> 5 banded matrices of shape (12*6, 8*16)."""
    kh, kw, w_in, cin, w_out, cout = 5, 5, 12, 6, 8, 16
    w2t = jnp.transpose(w2, (2, 3, 1, 0))                  # (i, j, ci, co)
    xx = jnp.arange(w_in)[:, None]
    xo = jnp.arange(w_out)[None, :]
    j = xx - xo                                            # (12, 8)
    valid = (j >= 0) & (j < kw)
    band = w2t[:, jnp.clip(j, 0, kw - 1), :, :]            # (5, 12, 8, 6, 16)
    band = jnp.where(valid[None, :, :, None, None], band, 0.0)
    band = jnp.transpose(band, (0, 1, 3, 2, 4))            # (i, x_in, ci, x_out, co)
    return band.reshape(kh, w_in * cin, w_out * cout)      # (5, 72, 128)


def _pool_lane_sel(n_out_x, n_ch):
    """(2, 2*n_out_x*n_ch, n_out_x*n_ch): even/odd 0/1 selectors for the lane
    dim (lane layout = x * n_ch + channel; channel preserved)."""
    xi = jnp.arange(2 * n_out_x)[:, None]
    xo = jnp.arange(n_out_x)[None, :]
    eye = jnp.eye(n_ch, dtype=jnp.float32)
    sels = []
    for p in range(2):
        m = (xi == 2 * xo + p).astype(jnp.float32)             # (2nx, nx)
        s = m[:, None, :, None] * eye[None, :, None, :]        # (2nx, c, nx, c)
        sels.append(s.reshape(2 * n_out_x * n_ch, n_out_x * n_ch))
    return jnp.stack(sels)


def _permute_fc1(wf1):
    """Reorder fc1 rows from torch-flatten order (c*16 + y*4 + x) to the
    kernel's feature order (y-block, x*16 + c) and split into 4 row blocks."""
    c = jnp.arange(16)
    y = jnp.arange(4)
    x = jnp.arange(4)
    src = c[None, None, :] * 16 + y[:, None, None] * 4 + x[None, :, None]
    return wf1[src.reshape(-1), :].reshape(4, 64, 120)


def prepare_params(params, compute_dtype=jnp.float32):
    """Run ONCE outside the jitted forward path: kernel-friendly layouts.

    compute_dtype=jnp.bfloat16 switches the MXU operands to bf16 (f32
    accumulation) for v6e/v7x; float32 (default) preserves exact module
    numerics.  Biases / ReLU / max always stay in f32.
    """
    cd = compute_dtype
    wf3p = jnp.zeros((84, 128), jnp.float32).at[:, :10].set(params["wf3"])
    bf3p = jnp.zeros((1, 128), jnp.float32).at[0, :10].set(params["bf3"])
    return {
        "W1": _band_conv1(params["w1"]).astype(cd),            # (5, 28, 144)
        "b1": jnp.tile(params["b1"], (24,)).reshape(1, 144),
        "TX1": _pool_lane_sel(12, 6).astype(cd),               # (2, 144, 72)
        "W2": _band_conv2(params["w2"]).astype(cd),            # (5, 72, 128)
        "b2": jnp.tile(params["b2"], (8,)).reshape(1, 128),
        "TX2": _pool_lane_sel(4, 16).astype(cd),               # (2, 128, 64)
        "WF1": _permute_fc1(params["wf1"]).astype(cd),         # (4, 64, 120)
        "bf1": params["bf1"].reshape(1, 120),
        "WF2": params["wf2"].astype(cd),                       # (120, 84)
        "bf2": params["bf2"].reshape(1, 84),
        "WF3": wf3p.astype(cd),                                # (84, 128) lane-padded
        "bf3": bf3p,                                           # (1, 128)
    }


# ------------------------------ fused kernel --------------------------------


def _lenet_fused_kernel(x1_ref, w1_ref, b1_ref, tx1_ref,
                        w2_ref, b2_ref, tx2_ref,
                        wf1_ref, bf1_ref, wf2_ref, bf2_ref,
                        wf3_ref, bf3_ref, o_ref):
    nb = o_ref.shape[0]                       # images in this grid block
    n12, n6, n4 = 12 * nb, 6 * nb, 4 * nb

    def mm(a, b):                             # MXU matmul, f32 accumulation
        return jnp.dot(a.astype(b.dtype), b, preferred_element_type=jnp.float32)

    # ---- conv1 + bias + relu (M batched over images and output rows) -------
    # x1_ref[i]: (24*nb, 28); row = s*12nb + q*6nb + j*nb + n corresponds to
    # conv1 output row y_out = 4*j + 2*q + s of image n.
    h1 = mm(x1_ref[0], w1_ref[0])
    for i in range(1, 5):
        h1 = h1 + mm(x1_ref[i], w1_ref[i])
    h1 = jnp.maximum(h1 + b1_ref[...], 0.0)                      # (24nb, 144)

    # ---- 2x2 max-pool #1: rows on the VPU, lanes via 0/1 selection matmuls --
    h1r = jnp.maximum(h1[:n12], h1[n12:])                        # (12nb, 144)
    h1p = jnp.maximum(mm(h1r, tx1_ref[0]), mm(h1r, tx1_ref[1]))  # (12nb, 72)
    # h1p row q*6nb + j*nb + n  <->  pooled conv1 row y1 = 2*j + q of image n.

    # ---- conv2 + bias + relu (even / odd output rows as two accumulators) --
    h2 = []
    for p in range(2):                                           # y2 parity
        acc = None
        for i in range(5):
            t = p + i                                            # y1 = 2*k2 + p + i
            start = (t & 1) * n6 + (t >> 1) * nb
            term = mm(h1p[start:start + n4], w2_ref[i])          # (4nb, 128)
            acc = term if acc is None else acc + term
        h2.append(jnp.maximum(acc + b2_ref[...], 0.0))
    # ---- 2x2 max-pool #2 ----------------------------------------------------
    h2r = jnp.maximum(h2[0], h2[1])                              # (4nb, 128)
    h2p = jnp.maximum(mm(h2r, tx2_ref[0]), mm(h2r, tx2_ref[1]))  # (4nb, 64)
    # h2p rows = (k2, n); lanes = x*16 + c.

    # ---- fc1 / fc2 / fc3 (torch flatten order absorbed into WF1 permutation)
    z = mm(h2p[:nb], wf1_ref[0])
    for k2 in range(1, 4):
        z = z + mm(h2p[k2 * nb:(k2 + 1) * nb], wf1_ref[k2])
    z = jnp.maximum(z + bf1_ref[...], 0.0)                       # (nb, 120)
    z = jnp.maximum(mm(z, wf2_ref[...]) + bf2_ref[...], 0.0)     # (nb, 84)
    # fc3 is padded to 128 lanes -> unmasked, lane-dense store.
    o_ref[...] = (mm(z, wf3_ref[...]) + bf3_ref[...]).astype(o_ref.dtype)


# ------------------------------- host wrapper --------------------------------


def _conv1_slabs(x_img, nb, dtype):
    """(Npad, 28, 28) -> (B, 5, 24*nb, 28) conv1 input slabs (cheap XLA glue).

    Per block and kernel-row offset i, slab row
        r = s*(12*nb) + q*(6*nb) + j*nb + n   ->   x_img[blk*nb + n, 4j+2q+s+i, :]
    so the kernel's batched conv1 matmul directly produces output rows grouped
    by pool parity s and pooled-row index y1 = 2j + q, for all nb images.
    """
    npad = x_img.shape[0]
    nblk = npad // nb
    s = jnp.arange(2)[:, None, None, None]
    i = jnp.arange(5)[None, :, None, None]
    q = jnp.arange(2)[None, None, :, None]
    j = jnp.arange(6)[None, None, None, :]
    y = 4 * j + 2 * q + s + i                                  # (2, 5, 2, 6)
    g = x_img[:, y, :]                                         # (Npad,2,5,2,6,28)
    g = g.reshape(nblk, nb, 2, 5, 2, 6, 28)
    g = jnp.transpose(g, (0, 3, 2, 4, 5, 1, 6))                # (B,i,s,q,j,n,28)
    return g.reshape(nblk, 5, 24 * nb, 28).astype(dtype)


def lenet_forward(x_nchw, prep, *, block_n=8):
    n, c, h, w = x_nchw.shape
    assert (c, h, w) == (1, 28, 28)
    nb = block_n
    n_pad = pl.cdiv(n, nb) * nb
    nblk = n_pad // nb
    assert nblk == 1 or nb % 8 == 0, "batch block must be a multiple of 8"

    x_img = x_nchw.reshape(n, 28, 28)
    if n_pad != n:
        x_img = jnp.pad(x_img, ((0, n_pad - n), (0, 0), (0, 0)))
    x1 = _conv1_slabs(x_img, nb, prep["W1"].dtype)

    def resident(arr):                     # VMEM-resident weight: constant index map
        nd = arr.ndim
        return pl.BlockSpec(arr.shape, lambda b, nd=nd: (0,) * nd)

    weight_args = (prep["W1"], prep["b1"], prep["TX1"],
                   prep["W2"], prep["b2"], prep["TX2"],
                   prep["WF1"], prep["bf1"], prep["WF2"], prep["bf2"],
                   prep["WF3"], prep["bf3"])
    in_specs = ([pl.BlockSpec((None, 5, 24 * nb, 28), lambda b: (b, 0, 0, 0))]
                + [resident(a) for a in weight_args])

    out = pl.pallas_call(
        _lenet_fused_kernel,
        out_shape=jax.ShapeDtypeStruct((n_pad, 128), jnp.float32),
        grid=(nblk,),
        in_specs=in_specs,
        out_specs=pl.BlockSpec((nb, 128), lambda b: (b, 0)),
        compiler_params=pltpu.CompilerParams(
            dimension_semantics=("parallel",)),
    )(x1, *weight_args)
    return out[:n, :10]


# ------------------------- pure-JAX reference (check) -----------------------


def reference_forward(x_nchw, params):
    def conv(x, w, b):
        y = lax.conv_general_dilated(
            x, w, (1, 1), "VALID", dimension_numbers=("NCHW", "OIHW", "NCHW"))
        return jax.nn.relu(y + b[None, :, None, None])

    def pool(x):
        return lax.reduce_window(
            x, -jnp.inf, lax.max, (1, 1, 2, 2), (1, 1, 2, 2), "VALID")

    x = pool(conv(x_nchw, params["w1"], params["b1"]))
    x = pool(conv(x, params["w2"], params["b2"]))
    x = x.reshape(x.shape[0], -1)
    x = jax.nn.relu(x @ params["wf1"] + params["bf1"])
    x = jax.nn.relu(x @ params["wf2"] + params["bf2"])
    return x @ params["wf3"] + params["bf3"]


# ----------------------------------- main ------------------------------------


def init_params(key):
    ks = jax.random.split(key, 10)
    s = 0.05
    return {
        "w1": s * jax.random.normal(ks[0], (6, 1, 5, 5), jnp.float32),
        "b1": s * jax.random.normal(ks[1], (6,), jnp.float32),
        "w2": s * jax.random.normal(ks[2], (16, 6, 5, 5), jnp.float32),
        "b2": s * jax.random.normal(ks[3], (16,), jnp.float32),
        # Linear weights stored as (in, out) so the kernel computes x @ W + b
        "wf1": s * jax.random.normal(ks[4], (256, 120), jnp.float32),
        "bf1": s * jax.random.normal(ks[5], (120,), jnp.float32),
        "wf2": s * jax.random.normal(ks[6], (120, 84), jnp.float32),
        "bf2": s * jax.random.normal(ks[7], (84,), jnp.float32),
        "wf3": s * jax.random.normal(ks[8], (84, 10), jnp.float32),
        "bf3": s * jax.random.normal(ks[9], (10,), jnp.float32),
    }


if __name__ == "__main__":
    key = jax.random.PRNGKey(0)
    kp, kx = jax.random.split(key)
    params = init_params(kp)
    # Default f32 keeps exact module numerics; pass compute_dtype=jnp.bfloat16
    # to prepare_params to use the bf16 MXU path on v6e/v7x (f32 accumulation).
    prep = prepare_params(params)            # one-time weight preprocessing

    # 16 images -> 2 parallel grid steps of 8 images each.
    x = jax.random.normal(kx, (16, 1, 28, 28), jnp.float32)

    fwd = jax.jit(lenet_forward)
    out = jax.block_until_ready(fwd(x, prep))

    ref = jax.block_until_ready(reference_forward(x, params))
    assert out.shape == (16, 10)
    assert jnp.allclose(out, ref, atol=1e-4, rtol=1e-4), "mismatch vs reference"

    print("KERNEL_OK")
</pallas_src>

<mosaic_0001>
module attributes {stable_mosaic.version = 11 : i64} {
  func.func @_lenet_fused_kernel(%arg0: i32, %arg1: memref<1x5x192x28xf32, #tpu.memory_space<vmem>>, %arg2: memref<5x28x144xf32, #tpu.memory_space<vmem>>, %arg3: memref<1x144xf32, #tpu.memory_space<vmem>>, %arg4: memref<2x144x72xf32, #tpu.memory_space<vmem>>, %arg5: memref<5x72x128xf32, #tpu.memory_space<vmem>>, %arg6: memref<1x128xf32, #tpu.memory_space<vmem>>, %arg7: memref<2x128x64xf32, #tpu.memory_space<vmem>>, %arg8: memref<4x64x120xf32, #tpu.memory_space<vmem>>, %arg9: memref<1x120xf32, #tpu.memory_space<vmem>>, %arg10: memref<120x84xf32, #tpu.memory_space<vmem>>, %arg11: memref<1x84xf32, #tpu.memory_space<vmem>>, %arg12: memref<84x128xf32, #tpu.memory_space<vmem>>, %arg13: memref<1x128xf32, #tpu.memory_space<vmem>>, %arg14: memref<8x128xf32, #tpu.memory_space<vmem>>) attributes {dimension_semantics = [#tpu.dimension_semantics<parallel>], iteration_bounds = array<i64: 2>, scalar_prefetch = 0 : i64, scratch_operands = 0 : i64, tpu.core_type = #tpu.core_type<tc>, window_params = [{transform_indices = @transform_0, window_bounds = array<i64: 1, 5, 192, 28>}, {pipeline_mode = #tpu.pipeline_mode<synchronous>, transform_indices = @transform_1, window_bounds = array<i64: 5, 28, 144>}, {pipeline_mode = #tpu.pipeline_mode<synchronous>, transform_indices = @transform_2, window_bounds = array<i64: 1, 144>}, {pipeline_mode = #tpu.pipeline_mode<synchronous>, transform_indices = @transform_3, window_bounds = array<i64: 2, 144, 72>}, {pipeline_mode = #tpu.pipeline_mode<synchronous>, transform_indices = @transform_4, window_bounds = array<i64: 5, 72, 128>}, {pipeline_mode = #tpu.pipeline_mode<synchronous>, transform_indices = @transform_5, window_bounds = array<i64: 1, 128>}, {pipeline_mode = #tpu.pipeline_mode<synchronous>, transform_indices = @transform_6, window_bounds = array<i64: 2, 128, 64>}, {pipeline_mode = #tpu.pipeline_mode<synchronous>, transform_indices = @transform_7, window_bounds = array<i64: 4, 64, 120>}, {pipeline_mode = #tpu.pipeline_mode<synchronous>, transform_indices = @transform_8, window_bounds = array<i64: 1, 120>}, {pipeline_mode = #tpu.pipeline_mode<synchronous>, transform_indices = @transform_9, window_bounds = array<i64: 120, 84>}, {pipeline_mode = #tpu.pipeline_mode<synchronous>, transform_indices = @transform_10, window_bounds = array<i64: 1, 84>}, {pipeline_mode = #tpu.pipeline_mode<synchronous>, transform_indices = @transform_11, window_bounds = array<i64: 84, 128>}, {pipeline_mode = #tpu.pipeline_mode<synchronous>, transform_indices = @transform_12, window_bounds = array<i64: 1, 128>}, {transform_indices = @transform_13, window_bounds = array<i64: 8, 128>}]} {
    %c0 = arith.constant 0 : index
    %c0_0 = arith.constant 0 : index
    %c0_1 = arith.constant 0 : index
    %c0_2 = arith.constant 0 : index
    %0 = vector.load %arg1[%c0, %c0_0, %c0_1, %c0_2] : memref<1x5x192x28xf32, #tpu.memory_space<vmem>>, vector<1x1x192x28xf32>
    %1 = vector.shape_cast %0 : vector<1x1x192x28xf32> to vector<192x28xf32>
    %c0_3 = arith.constant 0 : index
    %c0_4 = arith.constant 0 : index
    %c0_5 = arith.constant 0 : index
    %2 = vector.load %arg2[%c0_3, %c0_4, %c0_5] : memref<5x28x144xf32, #tpu.memory_space<vmem>>, vector<1x28x144xf32>
    %3 = vector.shape_cast %2 : vector<1x28x144xf32> to vector<28x144xf32>
    %cst = arith.constant dense<0.000000e+00> : vector<192x144xf32>
    %4 = tpu.matmul %1, %3, %cst {dimension_numbers = #tpu.dot_dimension_numbers<[1], [0], [0], [1], [0, 0, 1, 1], [], []>} : vector<192x28xf32>, vector<28x144xf32>, vector<192x144xf32> -> vector<192x144xf32>
    %c0_6 = arith.constant 0 : index
    %c1 = arith.constant 1 : index
    %c0_7 = arith.constant 0 : index
    %c0_8 = arith.constant 0 : index
    %5 = vector.load %arg1[%c0_6, %c1, %c0_7, %c0_8] : memref<1x5x192x28xf32, #tpu.memory_space<vmem>>, vector<1x1x192x28xf32>
    %6 = vector.shape_cast %5 : vector<1x1x192x28xf32> to vector<192x28xf32>
    %c1_9 = arith.constant 1 : index
    %c0_10 = arith.constant 0 : index
    %c0_11 = arith.constant 0 : index
    %7 = vector.load %arg2[%c1_9, %c0_10, %c0_11] : memref<5x28x144xf32, #tpu.memory_space<vmem>>, vector<1x28x144xf32>
    %8 = vector.shape_cast %7 : vector<1x28x144xf32> to vector<28x144xf32>
    %cst_12 = arith.constant dense<0.000000e+00> : vector<192x144xf32>
    %9 = tpu.matmul %6, %8, %cst_12 {dimension_numbers = #tpu.dot_dimension_numbers<[1], [0], [0], [1], [0, 0, 1, 1], [], []>} : vector<192x28xf32>, vector<28x144xf32>, vector<192x144xf32> -> vector<192x144xf32>
    %10 = arith.addf %4, %9 : vector<192x144xf32>
    %c0_13 = arith.constant 0 : index
    %c2 = arith.constant 2 : index
    %c0_14 = arith.constant 0 : index
    %c0_15 = arith.constant 0 : index
    %11 = vector.load %arg1[%c0_13, %c2, %c0_14, %c0_15] : memref<1x5x192x28xf32, #tpu.memory_space<vmem>>, vector<1x1x192x28xf32>
    %12 = vector.shape_cast %11 : vector<1x1x192x28xf32> to vector<192x28xf32>
    %c2_16 = arith.constant 2 : index
    %c0_17 = arith.constant 0 : index
    %c0_18 = arith.constant 0 : index
    %13 = vector.load %arg2[%c2_16, %c0_17, %c0_18] : memref<5x28x144xf32, #tpu.memory_space<vmem>>, vector<1x28x144xf32>
    %14 = vector.shape_cast %13 : vector<1x28x144xf32> to vector<28x144xf32>
    %cst_19 = arith.constant dense<0.000000e+00> : vector<192x144xf32>
    %15 = tpu.matmul %12, %14, %cst_19 {dimension_numbers = #tpu.dot_dimension_numbers<[1], [0], [0], [1], [0, 0, 1, 1], [], []>} : vector<192x28xf32>, vector<28x144xf32>, vector<192x144xf32> -> vector<192x144xf32>
    %16 = arith.addf %10, %15 : vector<192x144xf32>
    %c0_20 = arith.constant 0 : index
    %c3 = arith.constant 3 : index
    %c0_21 = arith.constant 0 : index
    %c0_22 = arith.constant 0 : index
    %17 = vector.load %arg1[%c0_20, %c3, %c0_21, %c0_22] : memref<1x5x192x28xf32, #tpu.memory_space<vmem>>, vector<1x1x192x28xf32>
    %18 = vector.shape_cast %17 : vector<1x1x192x28xf32> to vector<192x28xf32>
    %c3_23 = arith.constant 3 : index
    %c0_24 = arith.constant 0 : index
    %c0_25 = arith.constant 0 : index
    %19 = vector.load %arg2[%c3_23, %c0_24, %c0_25] : memref<5x28x144xf32, #tpu.memory_space<vmem>>, vector<1x28x144xf32>
    %20 = vector.shape_cast %19 : vector<1x28x144xf32> to vector<28x144xf32>
    %cst_26 = arith.constant dense<0.000000e+00> : vector<192x144xf32>
    %21 = tpu.matmul %18, %20, %cst_26 {dimension_numbers = #tpu.dot_dimension_numbers<[1], [0], [0], [1], [0, 0, 1, 1], [], []>} : vector<192x28xf32>, vector<28x144xf32>, vector<192x144xf32> -> vector<192x144xf32>
    %22 = arith.addf %16, %21 : vector<192x144xf32>
    %c0_27 = arith.constant 0 : index
    %c4 = arith.constant 4 : index
    %c0_28 = arith.constant 0 : index
    %c0_29 = arith.constant 0 : index
    %23 = vector.load %arg1[%c0_27, %c4, %c0_28, %c0_29] : memref<1x5x192x28xf32, #tpu.memory_space<vmem>>, vector<1x1x192x28xf32>
    %24 = vector.shape_cast %23 : vector<1x1x192x28xf32> to vector<192x28xf32>
    %c4_30 = arith.constant 4 : index
    %c0_31 = arith.constant 0 : index
    %c0_32 = arith.constant 0 : index
    %25 = vector.load %arg2[%c4_30, %c0_31, %c0_32] : memref<5x28x144xf32, #tpu.memory_space<vmem>>, vector<1x28x144xf32>
    %26 = vector.shape_cast %25 : vector<1x28x144xf32> to vector<28x144xf32>
    %cst_33 = arith.constant dense<0.000000e+00> : vector<192x144xf32>
    %27 = tpu.matmul %24, %26, %cst_33 {dimension_numbers = #tpu.dot_dimension_numbers<[1], [0], [0], [1], [0, 0, 1, 1], [], []>} : vector<192x28xf32>, vector<28x144xf32>, vector<192x144xf32> -> vector<192x144xf32>
    %28 = arith.addf %22, %27 : vector<192x144xf32>
    %c0_34 = arith.constant 0 : index
    %c0_35 = arith.constant 0 : index
    %29 = vector.load %arg3[%c0_34, %c0_35] : memref<1x144xf32, #tpu.memory_space<vmem>>, vector<1x144xf32>
    %30 = vector.broadcast %29 : vector<1x144xf32> to vector<192x144xf32>
    %31 = arith.addf %28, %30 : vector<192x144xf32>
    %cst_36 = arith.constant 0.000000e+00 : f32
    %32 = vector.broadcast %cst_36 : f32 to vector<192x144xf32>
    %33 = arith.maximumf %31, %32 : vector<192x144xf32>
    %34 = vector.extract_strided_slice %33 {offsets = [0, 0], sizes = [96, 144], strides = [1, 1]} : vector<192x144xf32> to vector<96x144xf32>
    %35 = vector.extract_strided_slice %33 {offsets = [96, 0], sizes = [96, 144], strides = [1, 1]} : vector<192x144xf32> to vector<96x144xf32>
    %36 = arith.maximumf %34, %35 : vector<96x144xf32>
    %c0_37 = arith.constant 0 : index
    %c0_38 = arith.constant 0 : index
    %c0_39 = arith.constant 0 : index
    %37 = vector.load %arg4[%c0_37, %c0_38, %c0_39] : memref<2x144x72xf32, #tpu.memory_space<vmem>>, vector<1x144x72xf32>
    %38 = vector.shape_cast %37 : vector<1x144x72xf32> to vector<144x72xf32>
    %cst_40 = arith.constant dense<0.000000e+00> : vector<96x72xf32>
    %39 = tpu.matmul %36, %38, %cst_40 {dimension_numbers = #tpu.dot_dimension_numbers<[1], [0], [0], [1], [0, 0, 1, 1], [], []>} : vector<96x144xf32>, vector<144x72xf32>, vector<96x72xf32> -> vector<96x72xf32>
    %c1_41 = arith.constant 1 : index
    %c0_42 = arith.constant 0 : index
    %c0_43 = arith.constant 0 : index
    %40 = vector.load %arg4[%c1_41, %c0_42, %c0_43] : memref<2x144x72xf32, #tpu.memory_space<vmem>>, vector<1x144x72xf32>
    %41 = vector.shape_cast %40 : vector<1x144x72xf32> to vector<144x72xf32>
    %cst_44 = arith.constant dense<0.000000e+00> : vector<96x72xf32>
    %42 = tpu.matmul %36, %41, %cst_44 {dimension_numbers = #tpu.dot_dimension_numbers<[1], [0], [0], [1], [0, 0, 1, 1], [], []>} : vector<96x144xf32>, vector<144x72xf32>, vector<96x72xf32> -> vector<96x72xf32>
    %43 = arith.maximumf %39, %42 : vector<96x72xf32>
    %44 = vector.extract_strided_slice %43 {offsets = [0, 0], sizes = [32, 72], strides = [1, 1]} : vector<96x72xf32> to vector<32x72xf32>
    %c0_45 = arith.constant 0 : index
    %c0_46 = arith.constant 0 : index
    %c0_47 = arith.constant 0 : index
    %45 = vector.load %arg5[%c0_45, %c0_46, %c0_47] : memref<5x72x128xf32, #tpu.memory_space<vmem>>, vector<1x72x128xf32>
    %46 = vector.shape_cast %45 : vector<1x72x128xf32> to vector<72x128xf32>
    %cst_48 = arith.constant dense<0.000000e+00> : vector<32x128xf32>
    %47 = tpu.matmul %44, %46, %cst_48 {dimension_numbers = #tpu.dot_dimension_numbers<[1], [0], [0], [1], [0, 0, 1, 1], [], []>} : vector<32x72xf32>, vector<72x128xf32>, vector<32x128xf32> -> vector<32x128xf32>
    %48 = vector.extract_strided_slice %43 {offsets = [48, 0], sizes = [32, 72], strides = [1, 1]} : vector<96x72xf32> to vector<32x72xf32>
    %c1_49 = arith.constant 1 : index
    %c0_50 = arith.constant 0 : index
    %c0_51 = arith.constant 0 : index
    %49 = vector.load %arg5[%c1_49, %c0_50, %c0_51] : memref<5x72x128xf32, #tpu.memory_space<vmem>>, vector<1x72x128xf32>
    %50 = vector.shape_cast %49 : vector<1x72x128xf32> to vector<72x128xf32>
    %cst_52 = arith.constant dense<0.000000e+00> : vector<32x128xf32>
    %51 = tpu.matmul %48, %50, %cst_52 {dimension_numbers = #tpu.dot_dimension_numbers<[1], [0], [0], [1], [0, 0, 1, 1], [], []>} : vector<32x72xf32>, vector<72x128xf32>, vector<32x128xf32> -> vector<32x128xf32>
    %52 = arith.addf %47, %51 : vector<32x128xf32>
    %53 = vector.extract_strided_slice %43 {offsets = [8, 0], sizes = [32, 72], strides = [1, 1]} : vector<96x72xf32> to vector<32x72xf32>
    %c2_53 = arith.constant 2 : index
    %c0_54 = arith.constant 0 : index
    %c0_55 = arith.constant 0 : index
    %54 = vector.load %arg5[%c2_53, %c0_54, %c0_55] : memref<5x72x128xf32, #tpu.memory_space<vmem>>, vector<1x72x128xf32>
    %55 = vector.shape_cast %54 : vector<1x72x128xf32> to vector<72x128xf32>
    %cst_56 = arith.constant dense<0.000000e+00> : vector<32x128xf32>
    %56 = tpu.matmul %53, %55, %cst_56 {dimension_numbers = #tpu.dot_dimension_numbers<[1], [0], [0], [1], [0, 0, 1, 1], [], []>} : vector<32x72xf32>, vector<72x128xf32>, vector<32x128xf32> -> vector<32x128xf32>
    %57 = arith.addf %52, %56 : vector<32x128xf32>
    %58 = vector.extract_strided_slice %43 {offsets = [56, 0], sizes = [32, 72], strides = [1, 1]} : vector<96x72xf32> to vector<32x72xf32>
    %c3_57 = arith.constant 3 : index
    %c0_58 = arith.constant 0 : index
    %c0_59 = arith.constant 0 : index
    %59 = vector.load %arg5[%c3_57, %c0_58, %c0_59] : memref<5x72x128xf32, #tpu.memory_space<vmem>>, vector<1x72x128xf32>
    %60 = vector.shape_cast %59 : vector<1x72x128xf32> to vector<72x128xf32>
    %cst_60 = arith.constant dense<0.000000e+00> : vector<32x128xf32>
    %61 = tpu.matmul %58, %60, %cst_60 {dimension_numbers = #tpu.dot_dimension_numbers<[1], [0], [0], [1], [0, 0, 1, 1], [], []>} : vector<32x72xf32>, vector<72x128xf32>, vector<32x128xf32> -> vector<32x128xf32>
    %62 = arith.addf %57, %61 : vector<32x128xf32>
    %63 = vector.extract_strided_slice %43 {offsets = [16, 0], sizes = [32, 72], strides = [1, 1]} : vector<96x72xf32> to vector<32x72xf32>
    %c4_61 = arith.constant 4 : index
    %c0_62 = arith.constant 0 : index
    %c0_63 = arith.constant 0 : index
    %64 = vector.load %arg5[%c4_61, %c0_62, %c0_63] : memref<5x72x128xf32, #tpu.memory_space<vmem>>, vector<1x72x128xf32>
    %65 = vector.shape_cast %64 : vector<1x72x128xf32> to vector<72x128xf32>
    %cst_64 = arith.constant dense<0.000000e+00> : vector<32x128xf32>
    %66 = tpu.matmul %63, %65, %cst_64 {dimension_numbers = #tpu.dot_dimension_numbers<[1], [0], [0], [1], [0, 0, 1, 1], [], []>} : vector<32x72xf32>, vector<72x128xf32>, vector<32x128xf32> -> vector<32x128xf32>
    %67 = arith.addf %62, %66 : vector<32x128xf32>
    %c0_65 = arith.constant 0 : index
    %c0_66 = arith.constant 0 : index
    %68 = vector.load %arg6[%c0_65, %c0_66] : memref<1x128xf32, #tpu.memory_space<vmem>>, vector<1x128xf32>
    %69 = vector.broadcast %68 : vector<1x128xf32> to vector<32x128xf32>
    %70 = arith.addf %67, %69 : vector<32x128xf32>
    %cst_67 = arith.constant 0.000000e+00 : f32
    %71 = vector.broadcast %cst_67 : f32 to vector<32x128xf32>
    %72 = arith.maximumf %70, %71 : vector<32x128xf32>
    %73 = vector.extract_strided_slice %43 {offsets = [48, 0], sizes = [32, 72], strides = [1, 1]} : vector<96x72xf32> to vector<32x72xf32>
    %c0_68 = arith.constant 0 : index
    %c0_69 = arith.constant 0 : index
    %c0_70 = arith.constant 0 : index
    %74 = vector.load %arg5[%c0_68, %c0_69, %c0_70] : memref<5x72x128xf32, #tpu.memory_space<vmem>>, vector<1x72x128xf32>
    %75 = vector.shape_cast %74 : vector<1x72x128xf32> to vector<72x128xf32>
    %cst_71 = arith.constant dense<0.000000e+00> : vector<32x128xf32>
    %76 = tpu.matmul %73, %75, %cst_71 {dimension_numbers = #tpu.dot_dimension_numbers<[1], [0], [0], [1], [0, 0, 1, 1], [], []>} : vector<32x72xf32>, vector<72x128xf32>, vector<32x128xf32> -> vector<32x128xf32>
    %77 = vector.extract_strided_slice %43 {offsets = [8, 0], sizes = [32, 72], strides = [1, 1]} : vector<96x72xf32> to vector<32x72xf32>
    %c1_72 = arith.constant 1 : index
    %c0_73 = arith.constant 0 : index
    %c0_74 = arith.constant 0 : index
    %78 = vector.load %arg5[%c1_72, %c0_73, %c0_74] : memref<5x72x128xf32, #tpu.memory_space<vmem>>, vector<1x72x128xf32>
    %79 = vector.shape_cast %78 : vector<1x72x128xf32> to vector<72x128xf32>
    %cst_75 = arith.constant dense<0.000000e+00> : vector<32x128xf32>
    %80 = tpu.matmul %77, %79, %cst_75 {dimension_numbers = #tpu.dot_dimension_numbers<[1], [0], [0], [1], [0, 0, 1, 1], [], []>} : vector<32x72xf32>, vector<72x128xf32>, vector<32x128xf32> -> vector<32x128xf32>
    %81 = arith.addf %76, %80 : vector<32x128xf32>
    %82 = vector.extract_strided_slice %43 {offsets = [56, 0], sizes = [32, 72], strides = [1, 1]} : vector<96x72xf32> to vector<32x72xf32>
    %c2_76 = arith.constant 2 : index
    %c0_77 = arith.constant 0 : index
    %c0_78 = arith.constant 0 : index
    %83 = vector.load %arg5[%c2_76, %c0_77, %c0_78] : memref<5x72x128xf32, #tpu.memory_space<vmem>>, vector<1x72x128xf32>
    %84 = vector.shape_cast %83 : vector<1x72x128xf32> to vector<72x128xf32>
    %cst_79 = arith.constant dense<0.000000e+00> : vector<32x128xf32>
    %85 = tpu.matmul %82, %84, %cst_79 {dimension_numbers = #tpu.dot_dimension_numbers<[1], [0], [0], [1], [0, 0, 1, 1], [], []>} : vector<32x72xf32>, vector<72x128xf32>, vector<32x128xf32> -> vector<32x128xf32>
    %86 = arith.addf %81, %85 : vector<32x128xf32>
    %87 = vector.extract_strided_slice %43 {offsets = [16, 0], sizes = [32, 72], strides = [1, 1]} : vector<96x72xf32> to vector<32x72xf32>
    %c3_80 = arith.constant 3 : index
    %c0_81 = arith.constant 0 : index
    %c0_82 = arith.constant 0 : index
    %88 = vector.load %arg5[%c3_80, %c0_81, %c0_82] : memref<5x72x128xf32, #tpu.memory_space<vmem>>, vector<1x72x128xf32>
    %89 = vector.shape_cast %88 : vector<1x72x128xf32> to vector<72x128xf32>
    %cst_83 = arith.constant dense<0.000000e+00> : vector<32x128xf32>
    %90 = tpu.matmul %87, %89, %cst_83 {dimension_numbers = #tpu.dot_dimension_numbers<[1], [0], [0], [1], [0, 0, 1, 1], [], []>} : vector<32x72xf32>, vector<72x128xf32>, vector<32x128xf32> -> vector<32x128xf32>
    %91 = arith.addf %86, %90 : vector<32x128xf32>
    %92 = vector.extract_strided_slice %43 {offsets = [64, 0], sizes = [32, 72], strides = [1, 1]} : vector<96x72xf32> to vector<32x72xf32>
    %c4_84 = arith.constant 4 : index
    %c0_85 = arith.constant 0 : index
    %c0_86 = arith.constant 0 : index
    %93 = vector.load %arg5[%c4_84, %c0_85, %c0_86] : memref<5x72x128xf32, #tpu.memory_space<vmem>>, vector<1x72x128xf32>
    %94 = vector.shape_cast %93 : vector<1x72x128xf32> to vector<72x128xf32>
    %cst_87 = arith.constant dense<0.000000e+00> : vector<32x128xf32>
    %95 = tpu.matmul %92, %94, %cst_87 {dimension_numbers = #tpu.dot_dimension_numbers<[1], [0], [0], [1], [0, 0, 1, 1], [], []>} : vector<32x72xf32>, vector<72x128xf32>, vector<32x128xf32> -> vector<32x128xf32>
    %96 = arith.addf %91, %95 : vector<32x128xf32>
    %c0_88 = arith.constant 0 : index
    %c0_89 = arith.constant 0 : index
    %97 = vector.load %arg6[%c0_88, %c0_89] : memref<1x128xf32, #tpu.memory_space<vmem>>, vector<1x128xf32>
    %98 = vector.broadcast %97 : vector<1x128xf32> to vector<32x128xf32>
    %99 = arith.addf %96, %98 : vector<32x128xf32>
    %cst_90 = arith.constant 0.000000e+00 : f32
    %100 = vector.broadcast %cst_90 : f32 to vector<32x128xf32>
    %101 = arith.maximumf %99, %100 : vector<32x128xf32>
    %102 = arith.maximumf %72, %101 : vector<32x128xf32>
    %c0_91 = arith.constant 0 : index
    %c0_92 = arith.constant 0 : index
    %c0_93 = arith.constant 0 : index
    %103 = vector.load %arg7[%c0_91, %c0_92, %c0_93] : memref<2x128x64xf32, #tpu.memory_space<vmem>>, vector<1x128x64xf32>
    %104 = vector.shape_cast %103 : vector<1x128x64xf32> to vector<128x64xf32>
    %cst_94 = arith.constant dense<0.000000e+00> : vector<32x64xf32>
    %105 = tpu.matmul %102, %104, %cst_94 {dimension_numbers = #tpu.dot_dimension_numbers<[1], [0], [0], [1], [0, 0, 1, 1], [], []>} : vector<32x128xf32>, vector<128x64xf32>, vector<32x64xf32> -> vector<32x64xf32>
    %c1_95 = arith.constant 1 : index
    %c0_96 = arith.constant 0 : index
    %c0_97 = arith.constant 0 : index
    %106 = vector.load %arg7[%c1_95, %c0_96, %c0_97] : memref<2x128x64xf32, #tpu.memory_space<vmem>>, vector<1x128x64xf32>
    %107 = vector.shape_cast %106 : vector<1x128x64xf32> to vector<128x64xf32>
    %cst_98 = arith.constant dense<0.000000e+00> : vector<32x64xf32>
    %108 = tpu.matmul %102, %107, %cst_98 {dimension_numbers = #tpu.dot_dimension_numbers<[1], [0], [0], [1], [0, 0, 1, 1], [], []>} : vector<32x128xf32>, vector<128x64xf32>, vector<32x64xf32> -> vector<32x64xf32>
    %109 = arith.maximumf %105, %108 : vector<32x64xf32>
    %110 = vector.extract_strided_slice %109 {offsets = [0, 0], sizes = [8, 64], strides = [1, 1]} : vector<32x64xf32> to vector<8x64xf32>
    %c0_99 = arith.constant 0 : index
    %c0_100 = arith.constant 0 : index
    %c0_101 = arith.constant 0 : index
    %111 = vector.load %arg8[%c0_99, %c0_100, %c0_101] : memref<4x64x120xf32, #tpu.memory_space<vmem>>, vector<1x64x120xf32>
    %112 = vector.shape_cast %111 : vector<1x64x120xf32> to vector<64x120xf32>
    %cst_102 = arith.constant dense<0.000000e+00> : vector<8x120xf32>
    %113 = tpu.matmul %110, %112, %cst_102 {dimension_numbers = #tpu.dot_dimension_numbers<[1], [0], [0], [1], [0, 0, 1, 1], [], []>} : vector<8x64xf32>, vector<64x120xf32>, vector<8x120xf32> -> vector<8x120xf32>
    %114 = vector.extract_strided_slice %109 {offsets = [8, 0], sizes = [8, 64], strides = [1, 1]} : vector<32x64xf32> to vector<8x64xf32>
    %c1_103 = arith.constant 1 : index
    %c0_104 = arith.constant 0 : index
    %c0_105 = arith.constant 0 : index
    %115 = vector.load %arg8[%c1_103, %c0_104, %c0_105] : memref<4x64x120xf32, #tpu.memory_space<vmem>>, vector<1x64x120xf32>
    %116 = vector.shape_cast %115 : vector<1x64x120xf32> to vector<64x120xf32>
    %cst_106 = arith.constant dense<0.000000e+00> : vector<8x120xf32>
    %117 = tpu.matmul %114, %116, %cst_106 {dimension_numbers = #tpu.dot_dimension_numbers<[1], [0], [0], [1], [0, 0, 1, 1], [], []>} : vector<8x64xf32>, vector<64x120xf32>, vector<8x120xf32> -> vector<8x120xf32>
    %118 = arith.addf %113, %117 : vector<8x120xf32>
    %119 = vector.extract_strided_slice %109 {offsets = [16, 0], sizes = [8, 64], strides = [1, 1]} : vector<32x64xf32> to vector<8x64xf32>
    %c2_107 = arith.constant 2 : index
    %c0_108 = arith.constant 0 : index
    %c0_109 = arith.constant 0 : index
    %120 = vector.load %arg8[%c2_107, %c0_108, %c0_109] : memref<4x64x120xf32, #tpu.memory_space<vmem>>, vector<1x64x120xf32>
    %121 = vector.shape_cast %120 : vector<1x64x120xf32> to vector<64x120xf32>
    %cst_110 = arith.constant dense<0.000000e+00> : vector<8x120xf32>
    %122 = tpu.matmul %119, %121, %cst_110 {dimension_numbers = #tpu.dot_dimension_numbers<[1], [0], [0], [1], [0, 0, 1, 1], [], []>} : vector<8x64xf32>, vector<64x120xf32>, vector<8x120xf32> -> vector<8x120xf32>
    %123 = arith.addf %118, %122 : vector<8x120xf32>
    %124 = vector.extract_strided_slice %109 {offsets = [24, 0], sizes = [8, 64], strides = [1, 1]} : vector<32x64xf32> to vector<8x64xf32>
    %c3_111 = arith.constant 3 : index
    %c0_112 = arith.constant 0 : index
    %c0_113 = arith.constant 0 : index
    %125 = vector.load %arg8[%c3_111, %c0_112, %c0_113] : memref<4x64x120xf32, #tpu.memory_space<vmem>>, vector<1x64x120xf32>
    %126 = vector.shape_cast %125 : vector<1x64x120xf32> to vector<64x120xf32>
    %cst_114 = arith.constant dense<0.000000e+00> : vector<8x120xf32>
    %127 = tpu.matmul %124, %126, %cst_114 {dimension_numbers = #tpu.dot_dimension_numbers<[1], [0], [0], [1], [0, 0, 1, 1], [], []>} : vector<8x64xf32>, vector<64x120xf32>, vector<8x120xf32> -> vector<8x120xf32>
    %128 = arith.addf %123, %127 : vector<8x120xf32>
    %c0_115 = arith.constant 0 : index
    %c0_116 = arith.constant 0 : index
    %129 = vector.load %arg9[%c0_115, %c0_116] : memref<1x120xf32, #tpu.memory_space<vmem>>, vector<1x120xf32>
    %130 = vector.broadcast %129 : vector<1x120xf32> to vector<8x120xf32>
    %131 = arith.addf %128, %130 : vector<8x120xf32>
    %cst_117 = arith.constant 0.000000e+00 : f32
    %132 = vector.broadcast %cst_117 : f32 to vector<8x120xf32>
    %133 = arith.maximumf %131, %132 : vector<8x120xf32>
    %c0_118 = arith.constant 0 : index
    %c0_119 = arith.constant 0 : index
    %134 = vector.load %arg10[%c0_118, %c0_119] : memref<120x84xf32, #tpu.memory_space<vmem>>, vector<120x84xf32>
    %cst_120 = arith.constant dense<0.000000e+00> : vector<8x84xf32>
    %135 = tpu.matmul %133, %134, %cst_120 {dimension_numbers = #tpu.dot_dimension_numbers<[1], [0], [0], [1], [0, 0, 1, 1], [], []>} : vector<8x120xf32>, vector<120x84xf32>, vector<8x84xf32> -> vector<8x84xf32>
    %c0_121 = arith.constant 0 : index
    %c0_122 = arith.constant 0 : index
    %136 = vector.load %arg11[%c0_121, %c0_122] : memref<1x84xf32, #tpu.memory_space<vmem>>, vector<1x84xf32>
    %137 = vector.broadcast %136 : vector<1x84xf32> to vector<8x84xf32>
    %138 = arith.addf %135, %137 : vector<8x84xf32>
    %cst_123 = arith.constant 0.000000e+00 : f32
    %139 = vector.broadcast %cst_123 : f32 to vector<8x84xf32>
    %140 = arith.maximumf %138, %139 : vector<8x84xf32>
    %c0_124 = arith.constant 0 : index
    %c0_125 = arith.constant 0 : index
    %141 = vector.load %arg12[%c0_124, %c0_125] : memref<84x128xf32, #tpu.memory_space<vmem>>, vector<84x128xf32>
    %cst_126 = arith.constant dense<0.000000e+00> : vector<8x128xf32>
    %142 = tpu.matmul %140, %141, %cst_126 {dimension_numbers = #tpu.dot_dimension_numbers<[1], [0], [0], [1], [0, 0, 1, 1], [], []>} : vector<8x84xf32>, vector<84x128xf32>, vector<8x128xf32> -> vector<8x128xf32>
    %c0_127 = arith.constant 0 : index
    %c0_128 = arith.constant 0 : index
    %143 = vector.load %arg13[%c0_127, %c0_128] : memref<1x128xf32, #tpu.memory_space<vmem>>, vector<1x128xf32>
    %144 = vector.broadcast %143 : vector<1x128xf32> to vector<8x128xf32>
    %145 = arith.addf %142, %144 : vector<8x128xf32>
    %c0_129 = arith.constant 0 : index
    %c0_130 = arith.constant 0 : index
    %146 = vector.load %arg14[%c0_129, %c0_130] : memref<8x128xf32, #tpu.memory_space<vmem>>, vector<8x128xf32>
    tpu.vector_store %arg14[%c0_129, %c0_130], %145 {strides = array<i32>} : memref<8x128xf32, #tpu.memory_space<vmem>>, vector<8x128xf32>,
    return
  }
  func.func @transform_0(%arg0: i32) -> (i32, i32, i32, i32) {
    %c0_i32 = arith.constant 0 : i32
    %c0_i32_0 = arith.constant 0 : i32
    %c0_i32_1 = arith.constant 0 : i32
    %c0_i32_2 = arith.constant 0 : i32
    return %arg0, %c0_i32, %c0_i32_0, %c0_i32_1 : i32, i32, i32, i32
  }
  func.func @transform_1(%arg0: i32) -> (i32, i32, i32) {
    %c0_i32 = arith.constant 0 : i32
    %c0_i32_0 = arith.constant 0 : i32
    %c0_i32_1 = arith.constant 0 : i32
    %c0_i32_2 = arith.constant 0 : i32
    return %c0_i32, %c0_i32_0, %c0_i32_1 : i32, i32, i32
  }
  func.func @transform_2(%arg0: i32) -> (i32, i32) {
    %c0_i32 = arith.constant 0 : i32
    %c0_i32_0 = arith.constant 0 : i32
    %c0_i32_1 = arith.constant 0 : i32
    return %c0_i32, %c0_i32_0 : i32, i32
  }
  func.func @transform_3(%arg0: i32) -> (i32, i32, i32) {
    %c0_i32 = arith.constant 0 : i32
    %c0_i32_0 = arith.constant 0 : i32
    %c0_i32_1 = arith.constant 0 : i32
    %c0_i32_2 = arith.constant 0 : i32
    return %c0_i32, %c0_i32_0, %c0_i32_1 : i32, i32, i32
  }
  func.func @transform_4(%arg0: i32) -> (i32, i32, i32) {
    %c0_i32 = arith.constant 0 : i32
    %c0_i32_0 = arith.constant 0 : i32
    %c0_i32_1 = arith.constant 0 : i32
    %c0_i32_2 = arith.constant 0 : i32
    return %c0_i32, %c0_i32_0, %c0_i32_1 : i32, i32, i32
  }
  func.func @transform_5(%arg0: i32) -> (i32, i32) {
    %c0_i32 = arith.constant 0 : i32
    %c0_i32_0 = arith.constant 0 : i32
    %c0_i32_1 = arith.constant 0 : i32
    return %c0_i32, %c0_i32_0 : i32, i32
  }
  func.func @transform_6(%arg0: i32) -> (i32, i32, i32) {
    %c0_i32 = arith.constant 0 : i32
    %c0_i32_0 = arith.constant 0 : i32
    %c0_i32_1 = arith.constant 0 : i32
    %c0_i32_2 = arith.constant 0 : i32
    return %c0_i32, %c0_i32_0, %c0_i32_1 : i32, i32, i32
  }
  func.func @transform_7(%arg0: i32) -> (i32, i32, i32) {
    %c0_i32 = arith.constant 0 : i32
    %c0_i32_0 = arith.constant 0 : i32
    %c0_i32_1 = arith.constant 0 : i32
    %c0_i32_2 = arith.constant 0 : i32
    return %c0_i32, %c0_i32_0, %c0_i32_1 : i32, i32, i32
  }
  func.func @transform_8(%arg0: i32) -> (i32, i32) {
    %c0_i32 = arith.constant 0 : i32
    %c0_i32_0 = arith.constant 0 : i32
    %c0_i32_1 = arith.constant 0 : i32
    return %c0_i32, %c0_i32_0 : i32, i32
  }
  func.func @transform_9(%arg0: i32) -> (i32, i32) {
    %c0_i32 = arith.constant 0 : i32
    %c0_i32_0 = arith.constant 0 : i32
    %c0_i32_1 = arith.constant 0 : i32
    return %c0_i32, %c0_i32_0 : i32, i32
  }
  func.func @transform_10(%arg0: i32) -> (i32, i32) {
    %c0_i32 = arith.constant 0 : i32
    %c0_i32_0 = arith.constant 0 : i32
    %c0_i32_1 = arith.constant 0 : i32
    return %c0_i32, %c0_i32_0 : i32, i32
  }
  func.func @transform_11(%arg0: i32) -> (i32, i32) {
    %c0_i32 = arith.constant 0 : i32
    %c0_i32_0 = arith.constant 0 : i32
    %c0_i32_1 = arith.constant 0 : i32
    return %c0_i32, %c0_i32_0 : i32, i32
  }
  func.func @transform_12(%arg0: i32) -> (i32, i32) {
    %c0_i32 = arith.constant 0 : i32
    %c0_i32_0 = arith.constant 0 : i32
    %c0_i32_1 = arith.constant 0 : i32
    return %c0_i32, %c0_i32_0 : i32, i32
  }
  func.func @transform_13(%arg0: i32) -> (i32, i32) {
    %c0_i32 = arith.constant 0 : i32
    %c0_i32_0 = arith.constant 0 : i32
    return %arg0, %c0_i32 : i32, i32
  }
}

</mosaic_0001>

<bundles_post_ra>
// kernel: lenet_forward.1
= control target key start
LH: loop header
LB: loop body
LE: loop exit
PB: predicated region body
PF: predicated region fallthrough
CT: control target
= control target key end

     0   :  { %s8174_s0 = inlined_call_operand.vmem [shape: f32[2,5,192,28], index: 0, kind: input, shape index: {}]   ;;  %s8175_s1 = inlined_call_operand.vmem [shape: f32[5,28,144], index: 1, kind: input, shape index: {}]   ;;  %s8176_s2 = inlined_call_operand.vmem [shape: f32[1,144], index: 2, kind: input, shape index: {}]   ;;  %s8177_s3 = inlined_call_operand.vmem [shape: f32[2,144,72], index: 3, kind: input, shape index: {}]   ;;  %s8178_s4 = inlined_call_operand.vmem [shape: f32[5,72,128], index: 4, kind: input, shape index: {}]   ;;  %s8179_s5 = inlined_call_operand.vmem [shape: f32[1,128], index: 5, kind: input, shape index: {}]   ;;  %s8180_s6 = inlined_call_operand.vmem [shape: f32[2,128,64], index: 6, kind: input, shape index: {}]   ;;  %s8181_s7 = inlined_call_operand.vmem [shape: f32[4,64,120], index: 7, kind: input, shape index: {}]   ;;  %s8182_s8 = inlined_call_operand.vmem [shape: f32[1,120], index: 8, kind: input, shape index: {}]   ;;  %s8183_s9 = inlined_call_operand.vmem [shape: f32[120,84], index: 9, kind: input, shape index: {}]   ;;  %s8184_s10 = inlined_call_operand.vmem [shape: f32[1,84], index: 10, kind: input, shape index: {}]   ;;  %s8185_s11 = inlined_call_operand.vmem [shape: f32[84,128], index: 11, kind: input, shape index: {}]   ;;  %s8186_s12 = inlined_call_operand.vmem [shape: f32[1,128], index: 12, kind: input, shape index: {}]   ;;  %s8187_s13 = inlined_call_operand.hbm [shape: f32[16,128], index: 13, kind: output, shape index: {}]  }
   0x1   :  { %8191 = sst [smem:[#allocation86_spill]] %s8174_s0 }
   0x2   :  { %8192 = sst [smem:[#allocation87_spill]] %s8175_s1 }
   0x3   :  { %18 = vsyncpa [#allocation3], 0 }
   0x4   :  { %20 = vsyncpa [#allocation3 + $0x1], 0  ;;  %s5755_s25 = smov 0   ;;  %s5757_s26 = smov 0  }
   0x5   :  { %s5759_s27 = smov 0   ;;  %s5761_s28 = smov 0  }
   0x6 LB: > { %8193 = sst [smem:[#allocation5_spill]] %s5676_s27  ;;  %s5776_s29 = sadd.s32 4294967295, %s5680_s28   ;;  %s5680_s28 = sphi %s5761_s28, %s8384_s28   ;;  %s5676_s27 = sphi %s5759_s27, %s8381_s27   ;;  %s5672_s26 = sphi %s5757_s26, %s8383_s26   ;;  %s5668_s25 = sphi %s5755_s25, %s8382_s25  }
   0x7   : > { %s4455_s30 = sadd.s32 4294967294, %s5680_s28   ;;  %s5780_s14 = sadd.s32 1, %s5680_s28  }
   0x8   : > { %s311_s15 = sadd.s32 1, %s5676_s27  ;;  %s308_s16 = ssub.s32 %s5680_s28, %s5780_s14 }
   0x9   : > { %p321_p0 = scmp.ne.s32.totalorder %s5676_s27, %s5672_s26  ;;  %p309_p1 = scmp.eq.s32.totalorder %s308_s16, 0 }
   0xa   : > { %p322_p2 = scmp.eq.s32.totalorder %s5776_s29, 1  ;;  %p327_p3 = scmp.ne.s32.totalorder %s5672_s26, %s5668_s25 }
   0xb   : > { %p328_p4 = scmp.eq.s32.totalorder %s4455_s30, 1  ;;  %p4458_p7 = scmp.ge.s32.totalorder %s5680_s28, 1 }
   0xc   : > { %s5791_s17 = scalar_select %p309_p1, %s5676_s27, %s311_s15  }
   0xd   : > { %p5793_p5 = por %p322_p2, %p321_p0  ;;  %p5797_p6 = por %p328_p4, %p327_p3 }
   0xe   : > { %8194 = sst [smem:[#allocation6_spill]] %s5791_s17  ;;  %p390_p8 = scmp.lt.s32.totalorder %s5680_s28, 3 }
  0x10   : > { %p391_p9 = pnand %p4458_p7, %p390_p8 }
  0x12   : > { %394 = sbr.rel (%p391_p9) target bundleno = 1863 (0x747), region = 72 }
  0x17   : > { %s8197_s1 = sld [smem:[#allocation87_spill]]  ;;  %vm578_vm0 = vcmask 1043456   ;;  %p434_p10 = scmp.lt.s32.totalorder %s5776_s29, 1  ;;  %vm505_vm1 = vcmask 228352   ;;  %v8189_v16 = vmov 0.0   ;;  %vm2338_vm2 = vcmask 130048  }
  0x18   : > { %649 = vmatprep.mubr.f32.mxu0 %v8189_v16  ;;  %s8198_s0 = sld [smem:[#allocation86_spill]]  ;;  %936 = vmatprep.mubr.f32.mxu1 %v8189_v16  ;;  %vm2675_vm3 = vcmask 588800   ;;  %vm5683_vm4 = vmmov 0   ;;  %vm3867_vm5 = vcmask 523264   ;;  %vm4211_vm6 = vcmask 982016   ;;  %s4889_s20 = sshll.u32 %s5776_s29, 7 }
  0x19   : > { %s435_s27 = scalar_select %p434_p10, %s5776_s29, 1  ;;  %vm4304_vm7 = vcmask 687104  }
  0x1a   : > { %s8139_s30 = scalar_lea.hbm %s8187_s13, %s4889_s20  ;;  %s5684_s17 = smov [#allocation2]  }
  0x1b   : > { %s5576_s23 = smul.u32 960, %s435_s27  ;;  %s5624_s29 = sshll.u32 %s5684_s17, 4  ;;  %s5625_s29 = int_to_ptr.vmem [resolvable:$false] %s5624_s29 }
  0x1d   : > { %v4492_v0 = vld [vmem:[%s8197_s1 + $0x78] sm:$0xf]  ;;  %v4490_v2 = vld [vmem:[%s8197_s1 + $0x68] sm:$0xff]  ;;  %v4491_v3 = vld [vmem:[%s8197_s1 + $0x70] sm:$0xf] }
  0x1e   : > { %v470_v1 = vld [vmem:[%s8197_s1 + $0x38] sm:$0xf]  ;;  %4493 = vmatprep.subr.msk.mxu0 %vm578_vm0, %v4492_v0  ;;  %v469_v4 = vld [vmem:[%s8197_s1 + $0x30] sm:$0xf]  ;;  %v468_v5 = vld [vmem:[%s8197_s1 + $0x28] sm:$0xff]  ;;  %s5861_s15 = scalar_lea.vmem %s8198_s0, %s5576_s23 }
  0x1f   : > { %4519 = vmatprep.subr.msk.mxu1 %vm578_vm0, %v470_v1  ;;  %4494 = vmatpush1.msk.msra.mxu0 %vm578_vm0, %v4491_v3  ;;  %v4489_v6 = vld [vmem:[%s8197_s1 + $0x60] sm:$0xff]  ;;  %v4488_v8 = vld [vmem:[%s8197_s1 + $0x58] sm:$0xff]  ;;  %v4487_v10 = vld [vmem:[%s8197_s1 + $0x50] sm:$0xff] }
  0x20   : > { %4520 = vmatpush1.msk.msra.mxu1 %vm578_vm0, %v469_v4  ;;  %v467_v7 = vld [vmem:[%s8197_s1 + $0x20] sm:$0xff]  ;;  %611 = vmatprep.subr.mxu0 %v4490_v2  ;;  %v466_v9 = vld [vmem:[%s8197_s1 + $0x18] sm:$0xff]  ;;  %v465_v11 = vld [vmem:[%s8197_s1 + $0x10] sm:$0xff] }
  0x21   : > { %898 = vmatprep.subr.mxu1 %v468_v5  ;;  %612 = vmatpush1.msra.mxu0 %v4489_v6  ;;  %v4486_v12 = vld [vmem:[%s8197_s1 + $0x48] sm:$0xff]  ;;  %v4485_v14 = vld [vmem:[%s8197_s1 + $0x40] sm:$0xff]  ;;  %v4576_v17 = vld [vmem:[%s8197_s1 + $0xb8] sm:$0xf] }
  0x22   : > { %899 = vmatpush1.msra.mxu1 %v467_v7  ;;  %v464_v13 = vld [vmem:[%s8197_s1 + $0x8] sm:$0xff]  ;;  %613 = vmatprep.subr.mxu0 %v4488_v8  ;;  %v463_v15 = vld [vmem:[%s8197_s1] sm:$0xff]  ;;  %v4575_v20 = vld [vmem:[%s8197_s1 + $0xb0] sm:$0xf] }
  0x23   : > { %900 = vmatprep.subr.mxu1 %v466_v9  ;;  %614 = vmatpush1.msra.mxu0 %v4487_v10  ;;  %v4461_v18 = vld [vmem:[%s5861_s15 + $0xc0] sm:$0xff]  ;;  %v4574_v21 = vld [vmem:[%s8197_s1 + $0xa8] sm:$0xff]  ;;  %v4634_v22 = vld [vmem:[%s8197_s1 + $0xf8] sm:$0xf] }
  0x24   : > { %901 = vmatpush1.msra.mxu1 %v465_v11  ;;  %615 = vmatprep.subr.mxu0 %v4486_v12  ;;  %v439_v19 = vld [vmem:[%s5861_s15] sm:$0xff]  ;;  %v4462_v23 = vld [vmem:[%s5861_s15 + $0xc8] sm:$0xff]  ;;  %v4633_v26 = vld [vmem:[%s8197_s1 + $0xf0] sm:$0xf] }
  0x25   : > { %902 = vmatprep.subr.mxu1 %v464_v13  ;;  %616 = vmatpush1.msra.mxu0 %v4485_v14  ;;  %v440_v24 = vld [vmem:[%s5861_s15 + $0x8] sm:$0xff]  ;;  %v4573_v25 = vld [vmem:[%s8197_s1 + $0xa0] sm:$0xff]  ;;  %v4572_v27 = vld [vmem:[%s8197_s1 + $0x98] sm:$0xff] }
  0x26   : > { %903 = vmatpush1.msra.mxu1 %v463_v15  ;;  %4495 = vmatmul.mubr.msk.f32.vlgmr.msra.gmra.mxu0 %vm505_vm1, %v4461_v18  ;;  %v4632_v28 = vld [vmem:[%s8197_s1 + $0xe8] sm:$0xff]  ;;  %v4463_v29 = vld [vmem:[%s5861_s15 + $0xd0] sm:$0xff]  ;;  %v4464_v33 = vld [vmem:[%s5861_s15 + $0xd8] sm:$0xff] }
  0x27   : > { %4521 = vmatmul.mubr.msk.f32.vlgmr.msra.gmra.mxu1 %vm505_vm1, %v439_v19  ;;  %4577 = vmatprep.subr.msk.mxu0 %vm578_vm0, %v4576_v17  ;;  %v441_v30 = vld [vmem:[%s5861_s15 + $0x10] sm:$0xff]  ;;  %v4570_v32 = vld [vmem:[%s8197_s1 + $0x88] sm:$0xff]  ;;  %v442_v34 = vld [vmem:[%s5861_s15 + $0x18] sm:$0xff] }
  0x28   : > { %655 = vmatprep.mubr.f32.mxu0 %v8189_v16  ;;  %4578 = vmatpush1.msk.msra.mxu0 %vm578_vm0, %v4575_v20  ;;  %v4571_v31 = vld [vmem:[%s8197_s1 + $0x90] sm:$0xff]  ;;  %v4569_v35 = vld [vmem:[%s8197_s1 + $0x80] sm:$0xff]  ;;  %v4630_v39 = vld [vmem:[%s8197_s1 + $0xd8] sm:$0xff] }
  0x29   : > { %942 = vmatprep.mubr.f32.mxu1 %v8189_v16  ;;  %1219 = vmatprep.subr.mxu0 %v4574_v21  ;;  %v4465_v36 = vld [vmem:[%s5861_s15 + $0xe0] sm:$0xff]  ;;  %v4692_v40 = vld [vmem:[%s8197_s1 + $0x138] sm:$0xf]  ;;  %v4466_v41 = vld [vmem:[%s5861_s15 + $0xe8] sm:$0xff] }
  0x2a   : > { %4635 = vmatprep.subr.msk.mxu1 %vm578_vm0, %v4634_v22  ;;  %4496 = vmatmul.mubr.msk.f32.gmra.mxu0 %vm505_vm1, %v4462_v23  ;;  %v443_v37 = vld [vmem:[%s5861_s15 + $0x20] sm:$0xff]  ;;  %v444_v42 = vld [vmem:[%s5861_s15 + $0x28] sm:$0xff]  ;;  %v4629_v43 = vld [vmem:[%s8197_s1 + $0xd0] sm:$0xff] }
  0x2b   : > { %4522 = vmatmul.mubr.msk.f32.gmra.mxu1 %vm505_vm1, %v440_v24  ;;  %661 = vmatprep.mubr.f32.mxu0 %v8189_v16  ;;  %v4631_v38 = vld [vmem:[%s8197_s1 + $0xe0] sm:$0xff]  ;;  %v4628_v44 = vld [vmem:[%s8197_s1 + $0xc8] sm:$0xff]  ;;  %v4467_v45 = vld [vmem:[%s5861_s15 + $0xf0] sm:$0xff] }
  0x2c   : > { %948 = vmatprep.mubr.f32.mxu1 %v8189_v16  ;;  %1220 = vmatpush1.msra.mxu0 %v4573_v25  ;;  %v445_v46 = vld [vmem:[%s5861_s15 + $0x30] sm:$0xff]  ;;  %v4627_v47 = vld [vmem:[%s8197_s1 + $0xc0] sm:$0xff]  ;;  %v4468_v48 = vld [vmem:[%s5861_s15 + $0xf8] sm:$0xff] }
  0x2d   : > { %4636 = vmatpush1.msk.msra.mxu1 %vm578_vm0, %v4633_v26  ;;  %1221 = vmatprep.subr.mxu0 %v4572_v27  ;;  %v446_v49 = vld [vmem:[%s5861_s15 + $0x38] sm:$0xff]  ;;  %v4469_v50 = vld [vmem:[%s5861_s15 + $0x100] sm:$0xff]  ;;  %v4470_v52 = vld [vmem:[%s5861_s15 + $0x108] sm:$0xff] }
  0x2e   : > { %1588 = vmatprep.subr.mxu1 %v4632_v28  ;;  %4497 = vmatmul.mubr.msk.f32.gmra.mxu0 %vm505_vm1, %v4463_v29  ;;  %v447_v51 = vld [vmem:[%s5861_s15 + $0x40] sm:$0xff]  ;;  %v448_v53 = vld [vmem:[%s5861_s15 + $0x48] sm:$0xff]  ;;  %v4471_v54 = vld [vmem:[%s5861_s15 + $0x110] sm:$0xff] }
  0x2f   : > { %4523 = vmatmul.mubr.msk.f32.gmra.mxu1 %vm505_vm1, %v441_v30  ;;  %667 = vmatprep.mubr.f32.mxu0 %v8189_v16  ;;  %v449_v55 = vld [vmem:[%s5861_s15 + $0x50] sm:$0xff]  ;;  %v4472_v56 = vld [vmem:[%s5861_s15 + $0x118] sm:$0xff]  ;;  %v4473_v58 = vld [vmem:[%s5861_s15 + $0x120] sm:$0xff] }
  0x30   : > { %954 = vmatprep.mubr.f32.mxu1 %v8189_v16  ;;  %1222 = vmatpush1.msra.mxu0 %v4571_v31  ;;  %v450_v57 = vld [vmem:[%s5861_s15 + $0x58] sm:$0xff]  ;;  %v451_v59 = vld [vmem:[%s5861_s15 + $0x60] sm:$0xff]  ;;  %v4474_v60 = vld [vmem:[%s5861_s15 + $0x128] sm:$0xff] }
  0x31   : > { %1223 = vmatprep.subr.mxu0 %v4570_v32  ;;  %1589 = vmatpush1.msra.mxu1 %v4631_v38  ;;  %v452_v61 = vld [vmem:[%s5861_s15 + $0x68] sm:$0xff]  ;;  %v4475_v62 = vld [vmem:[%s5861_s15 + $0x130] sm:$0xff]  ;;  %v4476_v0 = vld [vmem:[%s5861_s15 + $0x138] sm:$0xff] }
  0x32   : > { %4498 = vmatmul.mubr.msk.f32.gmra.mxu0 %vm505_vm1, %v4464_v33  ;;  %1590 = vmatprep.subr.mxu1 %v4630_v39  ;;  %v453_v63 = vld [vmem:[%s5861_s15 + $0x70] sm:$0xff]  ;;  %v454_v1 = vld [vmem:[%s5861_s15 + $0x78] sm:$0xff]  ;;  %v4477_v2 = vld [vmem:[%s5861_s15 + $0x140] sm:$0xff] }
  0x33   : > { %4524 = vmatmul.mubr.msk.f32.gmra.mxu1 %vm505_vm1, %v442_v34  ;;  %673 = vmatprep.mubr.f32.mxu0 %v8189_v16  ;;  %v455_v3 = vld [vmem:[%s5861_s15 + $0x80] sm:$0xff]  ;;  %v4478_v4 = vld [vmem:[%s5861_s15 + $0x148] sm:$0xff]  ;;  %v4479_v6 = vld [vmem:[%s5861_s15 + $0x150] sm:$0xff] }
  0x34   : > { %960 = vmatprep.mubr.f32.mxu1 %v8189_v16  ;;  %1224 = vmatpush1.msra.mxu0 %v4569_v35  ;;  %v456_v5 = vld [vmem:[%s5861_s15 + $0x88] sm:$0xff]  ;;  %v457_v7 = vld [vmem:[%s5861_s15 + $0x90] sm:$0xff]  ;;  %v4480_v8 = vld [vmem:[%s5861_s15 + $0x158] sm:$0xff] }
  0x35   : > { %4693 = vmatprep.subr.msk.mxu0 %vm578_vm0, %v4692_v40  ;;  %1591 = vmatpush1.msra.mxu1 %v4629_v43  ;;  %v458_v9 = vld [vmem:[%s5861_s15 + $0x98] sm:$0xff]  ;;  %v4481_v10 = vld [vmem:[%s5861_s15 + $0x160] sm:$0xff]  ;;  %v4482_v12 = vld [vmem:[%s5861_s15 + $0x168] sm:$0xff] }
  0x36   : > { %4499 = vmatmul.mubr.msk.f32.gmra.mxu0 %vm505_vm1, %v4465_v36  ;;  %1592 = vmatprep.subr.mxu1 %v4628_v44  ;;  %v459_v11 = vld [vmem:[%s5861_s15 + $0xa0] sm:$0xff]  ;;  %v460_v13 = vld [vmem:[%s5861_s15 + $0xa8] sm:$0xff]  ;;  %v4483_v14 = vld [vmem:[%s5861_s15 + $0x170] sm:$0xff] }
  0x37   : > { %4525 = vmatmul.mubr.msk.f32.gmra.mxu1 %vm505_vm1, %v443_v37  ;;  %679 = vmatprep.mubr.f32.mxu0 %v8189_v16  ;;  %v461_v15 = vld [vmem:[%s5861_s15 + $0xb0] sm:$0xff]  ;;  %v4484_v17 = vld [vmem:[%s5861_s15 + $0x178] sm:$0xff]  ;;  %v4545_v19 = vld [vmem:[%s5861_s15 + $0x180] sm:$0xff] }
  0x38   : > { %966 = vmatprep.mubr.f32.mxu1 %v8189_v16  ;;  %1593 = vmatpush1.msra.mxu1 %v4627_v47  ;;  %v462_v18 = vld [vmem:[%s5861_s15 + $0xb8] sm:$0xff]  ;;  %v4603_v20 = vld [vmem:[%s5861_s15 + $0x240] sm:$0xff]  ;;  %v4691_v21 = vld [vmem:[%s8197_s1 + $0x130] sm:$0xf] }
  0x39   : > { %2375 = vmatprep.subr.mxu1 %v8189_v16  ;;  %v4690_v22 = vld [vmem:[%s8197_s1 + $0x128] sm:$0xff]  ;;  %v4689_v23 = vld [vmem:[%s8197_s1 + $0x120] sm:$0xff]  ;;  %v4688_v26 = vld [vmem:[%s8197_s1 + $0x118] sm:$0xff] }
  0x3a   : > { %4500 = vmatmul.mubr.msk.f32.gmra.mxu0 %vm505_vm1, %v4466_v41  ;;  %v4546_v24 = vld [vmem:[%s5861_s15 + $0x188] sm:$0xff]  ;;  %v4687_v27 = vld [vmem:[%s8197_s1 + $0x110] sm:$0xff]  ;;  %v4685_v31 = vld [vmem:[%s8197_s1 + $0x100] sm:$0xff] }
  0x3b   : > { %4526 = vmatmul.mubr.msk.f32.gmra.mxu1 %vm505_vm1, %v444_v42  ;;  %685 = vmatprep.mubr.f32.mxu0 %v8189_v16  ;;  %v4604_v25 = vld [vmem:[%s5861_s15 + $0x248] sm:$0xff]  ;;  %v4547_v28 = vld [vmem:[%s5861_s15 + $0x190] sm:$0xff]  ;;  %v4548_v32 = vld [vmem:[%s5861_s15 + $0x198] sm:$0xff] }
  0x3c   : > { %972 = vmatprep.mubr.f32.mxu1 %v8189_v16  ;;  %v4605_v29 = vld [vmem:[%s5861_s15 + $0x250] sm:$0xff]  ;;  %v4686_v30 = vld [vmem:[%s8197_s1 + $0x108] sm:$0xff]  ;;  %v4606_v33 = vld [vmem:[%s5861_s15 + $0x258] sm:$0xff] }
  0x3d   : > { %v4549_v34 = vld [vmem:[%s5861_s15 + $0x1a0] sm:$0xff]  ;;  %v4550_v36 = vld [vmem:[%s5861_s15 + $0x1a8] sm:$0xff]  ;;  %v4551_v38 = vld [vmem:[%s5861_s15 + $0x1b0] sm:$0xff] }
  0x3e   : > { %4501 = vmatmul.mubr.msk.f32.gmra.mxu0 %vm505_vm1, %v4467_v45  ;;  %v4607_v35 = vld [vmem:[%s5861_s15 + $0x260] sm:$0xff]  ;;  %v4608_v37 = vld [vmem:[%s5861_s15 + $0x268] sm:$0xff]  ;;  %v4609_v39 = vld [vmem:[%s5861_s15 + $0x270] sm:$0xff] }
  0x3f   : > { %4527 = vmatmul.mubr.msk.f32.gmra.mxu1 %vm505_vm1, %v445_v46  ;;  %691 = vmatprep.mubr.f32.mxu0 %v8189_v16  ;;  %v4552_v40 = vld [vmem:[%s5861_s15 + $0x1b8] sm:$0xff]  ;;  %v4553_v42 = vld [vmem:[%s5861_s15 + $0x1c0] sm:$0xff]  ;;  %v4554_v44 = vld [vmem:[%s5861_s15 + $0x1c8] sm:$0xff] }
  0x40   : > { %978 = vmatprep.mubr.f32.mxu1 %v8189_v16  ;;  %v4610_v41 = vld [vmem:[%s5861_s15 + $0x278] sm:$0xff]  ;;  %v4611_v43 = vld [vmem:[%s5861_s15 + $0x280] sm:$0xff]  ;;  %v4612_v45 = vld [vmem:[%s5861_s15 + $0x288] sm:$0xff] }
  0x41   : > { %v4555_v46 = vld [vmem:[%s5861_s15 + $0x1d0] sm:$0xff] }
  0x42   : > { %4502 = vmatmul.mubr.msk.f32.gmra.mxu0 %vm505_vm1, %v4468_v48  ;;  %v4613_v47 = vld [vmem:[%s5861_s15 + $0x290] sm:$0xff]  ;;  %v4556_v48 = vld [vmem:[%s5861_s15 + $0x1d8] sm:$0xff] }
  0x43   : > { %4528 = vmatmul.mubr.msk.f32.gmra.mxu1 %vm505_vm1, %v446_v49  ;;  %697 = vmatprep.mubr.f32.mxu0 %v8189_v16  ;;  %v4614_v49 = vld [vmem:[%s5861_s15 + $0x298] sm:$0xff] }
  0x44   : > { %984 = vmatprep.mubr.f32.mxu1 %v8189_v16 }
  0x46   : > { %4503 = vmatmul.mubr.msk.f32.gmra.mxu0 %vm505_vm1, %v4469_v50  ;;  %v4557_v50 = vld [vmem:[%s5861_s15 + $0x1e0] sm:$0xff] }
  0x47   : > { %4529 = vmatmul.mubr.msk.f32.gmra.mxu1 %vm505_vm1, %v447_v51  ;;  %703 = vmatprep.mubr.f32.mxu0 %v8189_v16  ;;  %v4615_v51 = vld [vmem:[%s5861_s15 + $0x2a0] sm:$0xff] }
  0x48   : > { %990 = vmatprep.mubr.f32.mxu1 %v8189_v16 }
  0x4a   : > { %4504 = vmatmul.mubr.msk.f32.gmra.mxu0 %vm505_vm1, %v4470_v52  ;;  %v4558_v52 = vld [vmem:[%s5861_s15 + $0x1e8] sm:$0xff] }
  0x4b   : > { %4530 = vmatmul.mubr.msk.f32.gmra.mxu1 %vm505_vm1, %v448_v53  ;;  %709 = vmatprep.mubr.f32.mxu0 %v8189_v16  ;;  %v4616_v53 = vld [vmem:[%s5861_s15 + $0x2a8] sm:$0xff] }
  0x4c   : > { %996 = vmatprep.mubr.f32.mxu1 %v8189_v16 }
  0x4e   : > { %4505 = vmatmul.mubr.msk.f32.gmra.mxu0 %vm505_vm1, %v4471_v54  ;;  %v4559_v54 = vld [vmem:[%s5861_s15 + $0x1f0] sm:$0xff] }
  0x4f   : > { %4531 = vmatmul.mubr.msk.f32.gmra.mxu1 %vm505_vm1, %v449_v55  ;;  %715 = vmatprep.mubr.f32.mxu0 %v8189_v16  ;;  %v4617_v55 = vld [vmem:[%s5861_s15 + $0x2b0] sm:$0xff] }
  0x50   : > { %1002 = vmatprep.mubr.f32.mxu1 %v8189_v16 }
  0x52   : > { %4506 = vmatmul.mubr.msk.f32.gmra.mxu0 %vm505_vm1, %v4472_v56  ;;  %v4560_v56 = vld [vmem:[%s5861_s15 + $0x1f8] sm:$0xff] }
  0x53   : > { %4532 = vmatmul.mubr.msk.f32.gmra.mxu1 %vm505_vm1, %v450_v57  ;;  %721 = vmatprep.mubr.f32.mxu0 %v8189_v16  ;;  %v4618_v57 = vld [vmem:[%s5861_s15 + $0x2b8] sm:$0xff] }
  0x54   : > { %1008 = vmatprep.mubr.f32.mxu1 %v8189_v16 }
  0x56   : > { %4507 = vmatmul.mubr.msk.f32.gmra.mxu0 %vm505_vm1, %v4473_v58  ;;  %v4561_v58 = vld [vmem:[%s5861_s15 + $0x200] sm:$0xff] }
  0x57   : > { %4533 = vmatmul.mubr.msk.f32.gmra.mxu1 %vm505_vm1, %v451_v59  ;;  %727 = vmatprep.mubr.f32.mxu0 %v8189_v16  ;;  %v4619_v59 = vld [vmem:[%s5861_s15 + $0x2c0] sm:$0xff] }
  0x58   : > { %1014 = vmatprep.mubr.f32.mxu1 %v8189_v16 }
  0x5a   : > { %4508 = vmatmul.mubr.msk.f32.gmra.mxu0 %vm505_vm1, %v4474_v60  ;;  %v4562_v60 = vld [vmem:[%s5861_s15 + $0x208] sm:$0xff] }
  0x5b   : > { %4534 = vmatmul.mubr.msk.f32.gmra.mxu1 %vm505_vm1, %v452_v61  ;;  %733 = vmatprep.mubr.f32.mxu0 %v8189_v16  ;;  %v4620_v61 = vld [vmem:[%s5861_s15 + $0x2c8] sm:$0xff] }
  0x5c   : > { %1020 = vmatprep.mubr.f32.mxu1 %v8189_v16 }
  0x5e   : > { %4509 = vmatmul.mubr.msk.f32.gmra.mxu0 %vm505_vm1, %v4475_v62  ;;  %v4563_v62 = vld [vmem:[%s5861_s15 + $0x210] sm:$0xff] }
  0x5f   : > { %4535 = vmatmul.mubr.msk.f32.gmra.mxu1 %vm505_vm1, %v453_v63  ;;  %739 = vmatprep.mubr.f32.mxu0 %v8189_v16  ;;  %v4621_v63 = vld [vmem:[%s5861_s15 + $0x2d0] sm:$0xff] }
  0x60   : > { %1026 = vmatprep.mubr.f32.mxu1 %v8189_v16 }
  0x62   : > { %4510 = vmatmul.mubr.msk.f32.gmra.mxu0 %vm505_vm1, %v4476_v0  ;;  %v4564_v0 = vld [vmem:[%s5861_s15 + $0x218] sm:$0xff] }
  0x63   : > { %4536 = vmatmul.mubr.msk.f32.gmra.mxu1 %vm505_vm1, %v454_v1  ;;  %745 = vmatprep.mubr.f32.mxu0 %v8189_v16  ;;  %v4622_v1 = vld [vmem:[%s5861_s15 + $0x2d8] sm:$0xff] }
  0x64   : > { %1032 = vmatprep.mubr.f32.mxu1 %v8189_v16 }
  0x66   : > { %4511 = vmatmul.mubr.msk.f32.gmra.mxu0 %vm505_vm1, %v4477_v2  ;;  %v4565_v2 = vld [vmem:[%s5861_s15 + $0x220] sm:$0xff] }
  0x67   : > { %4537 = vmatmul.mubr.msk.f32.gmra.mxu1 %vm505_vm1, %v455_v3  ;;  %751 = vmatprep.mubr.f32.mxu0 %v8189_v16  ;;  %v4623_v3 = vld [vmem:[%s5861_s15 + $0x2e0] sm:$0xff] }
  0x68   : > { %1038 = vmatprep.mubr.f32.mxu1 %v8189_v16 }
  0x6a   : > { %4512 = vmatmul.mubr.msk.f32.gmra.mxu0 %vm505_vm1, %v4478_v4  ;;  %v4566_v4 = vld [vmem:[%s5861_s15 + $0x228] sm:$0xff] }
  0x6b   : > { %4538 = vmatmul.mubr.msk.f32.gmra.mxu1 %vm505_vm1, %v456_v5  ;;  %757 = vmatprep.mubr.f32.mxu0 %v8189_v16  ;;  %v4624_v5 = vld [vmem:[%s5861_s15 + $0x2e8] sm:$0xff] }
  0x6c   : > { %1044 = vmatprep.mubr.f32.mxu1 %v8189_v16 }
  0x6e   : > { %4513 = vmatmul.mubr.msk.f32.gmra.mxu0 %vm505_vm1, %v4479_v6  ;;  %v4567_v6 = vld [vmem:[%s5861_s15 + $0x230] sm:$0xff] }
  0x6f   : > { %4539 = vmatmul.mubr.msk.f32.gmra.mxu1 %vm505_vm1, %v457_v7  ;;  %763 = vmatprep.mubr.f32.mxu0 %v8189_v16  ;;  %v4625_v7 = vld [vmem:[%s5861_s15 + $0x2f0] sm:$0xff] }
  0x70   : > { %1050 = vmatprep.mubr.f32.mxu1 %v8189_v16 }
  0x72   : > { %4514 = vmatmul.mubr.msk.f32.gmra.mxu0 %vm505_vm1, %v4480_v8  ;;  %v4568_v8 = vld [vmem:[%s5861_s15 + $0x238] sm:$0xff] }
  0x73   : > { %4540 = vmatmul.mubr.msk.f32.gmra.mxu1 %vm505_vm1, %v458_v9  ;;  %769 = vmatprep.mubr.f32.mxu0 %v8189_v16  ;;  %v4626_v9 = vld [vmem:[%s5861_s15 + $0x2f8] sm:$0xff] }
  0x74   : > { %1056 = vmatprep.mubr.f32.mxu1 %v8189_v16 }
  0x76   : > { %4515 = vmatmul.mubr.msk.f32.gmra.mxu0 %vm505_vm1, %v4481_v10  ;;  %v4661_v10 = vld [vmem:[%s5861_s15 + $0x300] sm:$0xff] }
  0x77   : > { %4541 = vmatmul.mubr.msk.f32.gmra.mxu1 %vm505_vm1, %v459_v11  ;;  %775 = vmatprep.mubr.f32.mxu0 %v8189_v16 }
  0x78   : > { %1062 = vmatprep.mubr.f32.mxu1 %v8189_v16 }
  0x7a   : > { %4516 = vmatmul.mubr.msk.f32.gmra.mxu0 %vm505_vm1, %v4482_v12 }
  0x7b   : > { %4542 = vmatmul.mubr.msk.f32.gmra.mxu1 %vm505_vm1, %v460_v13  ;;  %781 = vmatprep.mubr.f32.mxu0 %v8189_v16 }
  0x7c   : > { %1068 = vmatprep.mubr.f32.mxu1 %v8189_v16 }
  0x7e   : > { %4517 = vmatmul.mubr.msk.f32.gmra.mxu0 %vm505_vm1, %v4483_v14  ;;  %v4662_v14 = vld [vmem:[%s5861_s15 + $0x308] sm:$0xff] }
  0x7f   : > { %4543 = vmatmul.mubr.msk.f32.gmra.mxu1 %vm505_vm1, %v461_v15  ;;  %787 = vmatprep.mubr.f32.mxu0 %v8189_v16 }
  0x80   : > { %1074 = vmatprep.mubr.f32.mxu1 %v8189_v16 }
  0x82   : > { %4518 = vmatmul.mubr.msk.f32.gmra.mxu0 %vm505_vm1, %v4484_v17 }
  0x83   : > { %4544 = vmatmul.mubr.msk.f32.gmra.mxu1 %vm505_vm1, %v462_v18  ;;  %1257 = vmatprep.mubr.f32.mxu0 %v8189_v16 }
  0x84   : > { %1626 = vmatprep.mubr.f32.mxu1 %v8189_v16 }
  0x86   : > { %4579 = vmatmul.mubr.msk.f32.vlgmr.msra.gmra.mxu0 %vm505_vm1, %v4545_v19 }
  0x87   : > { %4637 = vmatmul.mubr.msk.f32.vlgmr.msra.gmra.mxu1 %vm505_vm1, %v4603_v20  ;;  %4694 = vmatpush1.msk.msra.mxu0 %vm578_vm0, %v4691_v21  ;;  %v4663_v21 = vld [vmem:[%s5861_s15 + $0x310] sm:$0xff] }
  0x88   : > { %1263 = vmatprep.mubr.f32.mxu0 %v8189_v16  ;;  %1632 = vmatprep.mubr.f32.mxu1 %v8189_v16 }
  0x89   : > { %1957 = vmatprep.subr.mxu0 %v4690_v22 }
  0x8a   : > { %1958 = vmatpush1.msra.mxu0 %v4689_v23 }
  0x8b   : > { %4580 = vmatmul.mubr.msk.f32.gmra.mxu0 %vm505_vm1, %v4546_v24  ;;  %4638 = vmatmul.mubr.msk.f32.gmra.mxu1 %vm505_vm1, %v4604_v25 }
  0x8c   : > { %1269 = vmatprep.mubr.f32.mxu0 %v8189_v16  ;;  %1638 = vmatprep.mubr.f32.mxu1 %v8189_v16 }
  0x8d   : > { %1959 = vmatprep.subr.mxu0 %v4688_v26 }
  0x8e   : > { %1960 = vmatpush1.msra.mxu0 %v4687_v27  ;;  %v4664_v27 = vld [vmem:[%s5861_s15 + $0x318] sm:$0xff] }
  0x8f   : > { %4581 = vmatmul.mubr.msk.f32.gmra.mxu0 %vm505_vm1, %v4547_v28  ;;  %4639 = vmatmul.mubr.msk.f32.gmra.mxu1 %vm505_vm1, %v4605_v29 }
  0x90   : > { %1275 = vmatprep.mubr.f32.mxu0 %v8189_v16  ;;  %1644 = vmatprep.mubr.f32.mxu1 %v8189_v16 }
  0x91   : > { %1961 = vmatprep.subr.mxu0 %v4686_v30 }
  0x92   : > { %1962 = vmatpush1.msra.mxu0 %v4685_v31 }
  0x93   : > { %4582 = vmatmul.mubr.msk.f32.gmra.mxu0 %vm505_vm1, %v4548_v32  ;;  %4640 = vmatmul.mubr.msk.f32.gmra.mxu1 %vm505_vm1, %v4606_v33  ;;  %v4665_v33 = vld [vmem:[%s5861_s15 + $0x320] sm:$0xff] }
  0x94   : > { %1281 = vmatprep.mubr.f32.mxu0 %v8189_v16  ;;  %1650 = vmatprep.mubr.f32.mxu1 %v8189_v16 }
  0x97   : > { %4583 = vmatmul.mubr.msk.f32.gmra.mxu0 %vm505_vm1, %v4549_v34  ;;  %4641 = vmatmul.mubr.msk.f32.gmra.mxu1 %vm505_vm1, %v4607_v35 }
  0x98   : > { %1287 = vmatprep.mubr.f32.mxu0 %v8189_v16  ;;  %1656 = vmatprep.mubr.f32.mxu1 %v8189_v16 }
  0x9b   : > { %4584 = vmatmul.mubr.msk.f32.gmra.mxu0 %vm505_vm1, %v4550_v36  ;;  %4642 = vmatmul.mubr.msk.f32.gmra.mxu1 %vm505_vm1, %v4608_v37 }
  0x9c   : > { %1293 = vmatprep.mubr.f32.mxu0 %v8189_v16  ;;  %1662 = vmatprep.mubr.f32.mxu1 %v8189_v16 }
  0x9f   : > { %4585 = vmatmul.mubr.msk.f32.gmra.mxu0 %vm505_vm1, %v4551_v38  ;;  %4643 = vmatmul.mubr.msk.f32.gmra.mxu1 %vm505_vm1, %v4609_v39  ;;  %v4666_v39 = vld [vmem:[%s5861_s15 + $0x328] sm:$0xff] }
  0xa0   : > { %1299 = vmatprep.mubr.f32.mxu0 %v8189_v16  ;;  %1668 = vmatprep.mubr.f32.mxu1 %v8189_v16 }
  0xa3   : > { %4586 = vmatmul.mubr.msk.f32.gmra.mxu0 %vm505_vm1, %v4552_v40  ;;  %4644 = vmatmul.mubr.msk.f32.gmra.mxu1 %vm505_vm1, %v4610_v41 }
  0xa4   : > { %1305 = vmatprep.mubr.f32.mxu0 %v8189_v16  ;;  %1674 = vmatprep.mubr.f32.mxu1 %v8189_v16 }
  0xa7   : > { %4587 = vmatmul.mubr.msk.f32.gmra.mxu0 %vm505_vm1, %v4553_v42  ;;  %4645 = vmatmul.mubr.msk.f32.gmra.mxu1 %vm505_vm1, %v4611_v43 }
  0xa8   : > { %1311 = vmatprep.mubr.f32.mxu0 %v8189_v16  ;;  %1680 = vmatprep.mubr.f32.mxu1 %v8189_v16 }
  0xab   : > { %4588 = vmatmul.mubr.msk.f32.gmra.mxu0 %vm505_vm1, %v4554_v44  ;;  %4646 = vmatmul.mubr.msk.f32.gmra.mxu1 %vm505_vm1, %v4612_v45  ;;  %v4667_v45 = vld [vmem:[%s5861_s15 + $0x330] sm:$0xff] }
  0xac   : > { %1317 = vmatprep.mubr.f32.mxu0 %v8189_v16  ;;  %1686 = vmatprep.mubr.f32.mxu1 %v8189_v16 }
  0xaf   : > { %4589 = vmatmul.mubr.msk.f32.gmra.mxu0 %vm505_vm1, %v4555_v46  ;;  %4647 = vmatmul.mubr.msk.f32.gmra.mxu1 %vm505_vm1, %v4613_v47 }
  0xb0   : > { %1323 = vmatprep.mubr.f32.mxu0 %v8189_v16  ;;  %1692 = vmatprep.mubr.f32.mxu1 %v8189_v16 }
  0xb3   : > { %4590 = vmatmul.mubr.msk.f32.gmra.mxu0 %vm505_vm1, %v4556_v48  ;;  %4648 = vmatmul.mubr.msk.f32.gmra.mxu1 %vm505_vm1, %v4614_v49 }
  0xb4   : > { %1329 = vmatprep.mubr.f32.mxu0 %v8189_v16  ;;  %1698 = vmatprep.mubr.f32.mxu1 %v8189_v16 }
  0xb7   : > { %4591 = vmatmul.mubr.msk.f32.gmra.mxu0 %vm505_vm1, %v4557_v50  ;;  %4649 = vmatmul.mubr.msk.f32.gmra.mxu1 %vm505_vm1, %v4615_v51  ;;  %v4668_v51 = vld [vmem:[%s5861_s15 + $0x338] sm:$0xff] }
  0xb8   : > { %1335 = vmatprep.mubr.f32.mxu0 %v8189_v16  ;;  %1704 = vmatprep.mubr.f32.mxu1 %v8189_v16 }
  0xbb   : > { %4592 = vmatmul.mubr.msk.f32.gmra.mxu0 %vm505_vm1, %v4558_v52  ;;  %4650 = vmatmul.mubr.msk.f32.gmra.mxu1 %vm505_vm1, %v4616_v53 }
  0xbc   : > { %1341 = vmatprep.mubr.f32.mxu0 %v8189_v16  ;;  %1710 = vmatprep.mubr.f32.mxu1 %v8189_v16 }
  0xbf   : > { %4593 = vmatmul.mubr.msk.f32.gmra.mxu0 %vm505_vm1, %v4559_v54  ;;  %4651 = vmatmul.mubr.msk.f32.gmra.mxu1 %vm505_vm1, %v4617_v55 }
  0xc0   : > { %1347 = vmatprep.mubr.f32.mxu0 %v8189_v16  ;;  %1716 = vmatprep.mubr.f32.mxu1 %v8189_v16 }
  0xc3   : > { %4594 = vmatmul.mubr.msk.f32.gmra.mxu0 %vm505_vm1, %v4560_v56  ;;  %4652 = vmatmul.mubr.msk.f32.gmra.mxu1 %vm505_vm1, %v4618_v57  ;;  %v4669_v57 = vld [vmem:[%s5861_s15 + $0x340] sm:$0xff] }
  0xc4   : > { %1353 = vmatprep.mubr.f32.mxu0 %v8189_v16  ;;  %1722 = vmatprep.mubr.f32.mxu1 %v8189_v16 }
  0xc7   : > { %4595 = vmatmul.mubr.msk.f32.gmra.mxu0 %vm505_vm1, %v4561_v58  ;;  %4653 = vmatmul.mubr.msk.f32.gmra.mxu1 %vm505_vm1, %v4619_v59  ;;  %v2335_v58 = vld [vmem:[%s8177_s3 + $0x78] sm:$0xff] }
  0xc8   : > { %1359 = vmatprep.mubr.f32.mxu0 %v8189_v16  ;;  %1728 = vmatprep.mubr.f32.mxu1 %v8189_v16 }
  0xc9   : > { %2376 = vmatpush1.msra.mxu1 %v2335_v58 }
  0xca   : > { %2377 = vmatprep.subr.mxu1 %v8189_v16 }
  0xcb   : > { %4596 = vmatmul.mubr.msk.f32.gmra.mxu0 %vm505_vm1, %v4562_v60  ;;  %4654 = vmatmul.mubr.msk.f32.gmra.mxu1 %vm505_vm1, %v4620_v61 }
  0xcc   : > { %1365 = vmatprep.mubr.f32.mxu0 %v8189_v16  ;;  %1734 = vmatprep.mubr.f32.mxu1 %v8189_v16 }
  0xcf   : > { %4597 = vmatmul.mubr.msk.f32.gmra.mxu0 %vm505_vm1, %v4563_v62  ;;  %4655 = vmatmul.mubr.msk.f32.gmra.mxu1 %vm505_vm1, %v4621_v63 }
  0xd0   : > { %1371 = vmatprep.mubr.f32.mxu0 %v8189_v16  ;;  %1740 = vmatprep.mubr.f32.mxu1 %v8189_v16 }
  0xd3   : > { %4598 = vmatmul.mubr.msk.f32.gmra.mxu0 %vm505_vm1, %v4564_v0  ;;  %4656 = vmatmul.mubr.msk.f32.gmra.mxu1 %vm505_vm1, %v4622_v1  ;;  %v4670_v0 = vld [vmem:[%s5861_s15 + $0x348] sm:$0xff] }
  0xd4   : > { %1377 = vmatprep.mubr.f32.mxu0 %v8189_v16  ;;  %1746 = vmatprep.mubr.f32.mxu1 %v8189_v16 }
  0xd7   : > { %4599 = vmatmul.mubr.msk.f32.gmra.mxu0 %vm505_vm1, %v4565_v2  ;;  %4657 = vmatmul.mubr.msk.f32.gmra.mxu1 %vm505_vm1, %v4623_v3  ;;  %v2334_v3 = vld [vmem:[%s8177_s3 + $0x70] sm:$0xff] }
  0xd8   : > { %1383 = vmatprep.mubr.f32.mxu0 %v8189_v16  ;;  %1752 = vmatprep.mubr.f32.mxu1 %v8189_v16 }
  0xd9   : > { %2378 = vmatpush1.msra.mxu1 %v2334_v3 }
  0xda   : > { %2379 = vmatprep.subr.mxu1 %v8189_v16 }
  0xdb   : > { %4600 = vmatmul.mubr.msk.f32.gmra.mxu0 %vm505_vm1, %v4566_v4  ;;  %4658 = vmatmul.mubr.msk.f32.gmra.mxu1 %vm505_vm1, %v4624_v5 }
  0xdc   : > { %1389 = vmatprep.mubr.f32.mxu0 %v8189_v16  ;;  %1758 = vmatprep.mubr.f32.mxu1 %v8189_v16 }
  0xdf   : > { %4601 = vmatmul.mubr.msk.f32.gmra.mxu0 %vm505_vm1, %v4567_v6  ;;  %4659 = vmatmul.mubr.msk.f32.gmra.mxu1 %vm505_vm1, %v4625_v7  ;;  %v4671_v7 = vld [vmem:[%s5861_s15 + $0x350] sm:$0xff] }
  0xe0   : > { %1395 = vmatprep.mubr.f32.mxu0 %v8189_v16  ;;  %1764 = vmatprep.mubr.f32.mxu1 %v8189_v16 }
  0xe3   : > { %4602 = vmatmul.mubr.msk.f32.gmra.mxu0 %vm505_vm1, %v4568_v8  ;;  %4660 = vmatmul.mubr.msk.f32.gmra.mxu1 %vm505_vm1, %v4626_v9 }
  0xe4   : > { %1995 = vmatprep.mubr.f32.mxu0 %v8189_v16 }
  0xe6   : > { %v651_v11 = vpop.f32.mrf.mxu0 }
  0xe7   : > { %v938_v12 = vpop.f32.mrf.mxu1  ;;  %4695 = vmatmul.mubr.msk.f32.vlgmr.msra.gmra.mxu0 %vm505_vm1, %v4661_v10 }
  0xe8   : > { %v6232_v13 = vadd.f32 %v938_v12, %v651_v11  ;;  %2001 = vmatprep.mubr.f32.mxu0 %v8189_v16  ;;  %v6236_v15 = vpop.f32.mrf.mxu0 }
  0xe9   : > { %v6238_v17 = vpop.f32.mrf.mxu1 }
  0xea   : > { %v657_v18 = vpop.f32.mrf.mxu0 }
  0xeb   : > { %v944_v19 = vpop.f32.mrf.mxu1  ;;  %4696 = vmatmul.mubr.msk.f32.gmra.mxu0 %vm505_vm1, %v4662_v14  ;;  %v4672_v14 = vld [vmem:[%s5861_s15 + $0x358] sm:$0xff] }
  0xec   : > { %v6241_v20 = vadd.f32 %v944_v19, %v657_v18  ;;  %2007 = vmatprep.mubr.f32.mxu0 %v8189_v16  ;;  %v6245_v22 = vpop.f32.mrf.mxu0  ;;  %v2333_v18 = vld [vmem:[%s8177_s3 + $0x68] sm:$0xff] }
  0xed   : > { %v6247_v23 = vpop.f32.mrf.mxu1  ;;  %2380 = vmatpush1.msra.mxu1 %v2333_v18 }
  0xee   : > { %v663_v24 = vpop.f32.mrf.mxu0  ;;  %2381 = vmatprep.subr.mxu1 %v8189_v16 }
  0xef   : > { %v950_v25 = vpop.f32.mrf.mxu1  ;;  %4697 = vmatmul.mubr.msk.f32.gmra.mxu0 %vm505_vm1, %v4663_v21 }
  0xf0   : > { %v6250_v26 = vadd.f32 %v950_v25, %v663_v24  ;;  %2013 = vmatprep.mubr.f32.mxu0 %v8189_v16  ;;  %v6254_v28 = vpop.f32.mrf.mxu0 }
  0xf1   : > { %v6256_v29 = vpop.f32.mrf.mxu1 }
  0xf2   : > { %v669_v30 = vpop.f32.mrf.mxu0 }
  0xf3   : > { %v956_v31 = vpop.f32.mrf.mxu1  ;;  %4698 = vmatmul.mubr.msk.f32.gmra.mxu0 %vm505_vm1, %v4664_v27 }
  0xf4   : > { %v6259_v32 = vadd.f32 %v956_v31, %v669_v30  ;;  %2019 = vmatprep.mubr.f32.mxu0 %v8189_v16  ;;  %v6263_v34 = vpop.f32.mrf.mxu0  ;;  %v4673_v30 = vld [vmem:[%s5861_s15 + $0x360] sm:$0xff] }
  0xf5   : > { %v6265_v35 = vpop.f32.mrf.mxu1  ;;  %v2332_v31 = vld [vmem:[%s8177_s3 + $0x60] sm:$0xff] }
  0xf6   : > { %v675_v36 = vpop.f32.mrf.mxu0  ;;  %2382 = vmatpush1.msra.mxu1 %v2332_v31 }
  0xf7   : > { %v962_v37 = vpop.f32.mrf.mxu1  ;;  %4699 = vmatmul.mubr.msk.f32.gmra.mxu0 %vm505_vm1, %v4665_v33  ;;  %2383 = vmatprep.subr.mxu1 %v8189_v16 }
  0xf8   : > { %v6268_v38 = vadd.f32 %v962_v37, %v675_v36  ;;  %2025 = vmatprep.mubr.f32.mxu0 %v8189_v16  ;;  %v6272_v40 = vpop.f32.mrf.mxu0 }
  0xf9   : > { %v6274_v41 = vpop.f32.mrf.mxu1 }
  0xfa   : > { %v681_v42 = vpop.f32.mrf.mxu0 }
  0xfb   : > { %v968_v43 = vpop.f32.mrf.mxu1  ;;  %4700 = vmatmul.mubr.msk.f32.gmra.mxu0 %vm505_vm1, %v4666_v39 }
  0xfc   : > { %v6277_v44 = vadd.f32 %v968_v43, %v681_v42  ;;  %2031 = vmatprep.mubr.f32.mxu0 %v8189_v16  ;;  %v6281_v46 = vpop.f32.mrf.mxu0  ;;  %v4674_v43 = vld [vmem:[%s5861_s15 + $0x368] sm:$0xff] }
  0xfd   : > { %v6283_v47 = vpop.f32.mrf.mxu1 }
  0xfe   : > { %v687_v48 = vpop.f32.mrf.mxu0 }
  0xff   : > { %v974_v49 = vpop.f32.mrf.mxu1  ;;  %4701 = vmatmul.mubr.msk.f32.gmra.mxu0 %vm505_vm1, %v4667_v45 }
 0x100   : > { %v6286_v50 = vadd.f32 %v974_v49, %v687_v48  ;;  %2037 = vmatprep.mubr.f32.mxu0 %v8189_v16  ;;  %v6290_v52 = vpop.f32.mrf.mxu0  ;;  %v2331_v49 = vld [vmem:[%s8177_s3 + $0x58] sm:$0xff] }
 0x101   : > { %8199 = vst [vmem:[#allocation7_spill] sm:$0xff] %v6290_v52  ;;  %v6292_v53 = vpop.f32.mrf.mxu1  ;;  %2384 = vmatpush1.msra.mxu1 %v2331_v49  ;;  %v4678_v49 = vld [vmem:[%s5861_s15 + $0x388] sm:$0xff] }
 0x102   : > { %8200 = vst [vmem:[#allocation8_spill] sm:$0xff] %v6292_v53  ;;  %v693_v54 = vpop.f32.mrf.mxu0  ;;  %2385 = vmatprep.subr.mxu1 %v8189_v16 }
 0x103   : > { %v980_v55 = vpop.f32.mrf.mxu1  ;;  %4702 = vmatmul.mubr.msk.f32.gmra.mxu0 %vm505_vm1, %v4668_v51 }
 0x104   : > { %v6295_v56 = vadd.f32 %v980_v55, %v693_v54  ;;  %2043 = vmatprep.mubr.f32.mxu0 %v8189_v16  ;;  %v6302_v59 = vpop.f32.mrf.mxu0 }
 0x105   : > { %v6304_v60 = vpop.f32.mrf.mxu1 }
 0x106   : > { %v699_v61 = vpop.f32.mrf.mxu0 }
 0x107   : > { %v986_v62 = vpop.f32.mrf.mxu1  ;;  %4703 = vmatmul.mubr.msk.f32.gmra.mxu0 %vm505_vm1, %v4669_v57  ;;  %v4675_v57 = vld [vmem:[%s5861_s15 + $0x370] sm:$0xff] }
 0x108   : > { %v6308_v63 = vadd.f32 %v986_v62, %v699_v61  ;;  %2049 = vmatprep.mubr.f32.mxu0 %v8189_v16  ;;  %v6312_v1 = vpop.f32.mrf.mxu0 }
 0x109   : > { %v6314_v2 = vpop.f32.mrf.mxu1 }
 0x10a   : > { %v705_v4 = vpop.f32.mrf.mxu0 }
 0x10b   : > { %v992_v5 = vpop.f32.mrf.mxu1  ;;  %4704 = vmatmul.mubr.msk.f32.gmra.mxu0 %vm505_vm1, %v4670_v0 }
 0x10c   : > { %v6320_v6 = vadd.f32 %v992_v5, %v705_v4  ;;  %2055 = vmatprep.mubr.f32.mxu0 %v8189_v16  ;;  %v6325_v8 = vpop.f32.mrf.mxu0  ;;  %v4676_v4 = vld [vmem:[%s5861_s15 + $0x378] sm:$0xff]  ;;  %v2330_v5 = vld [vmem:[%s8177_s3 + $0x50] sm:$0xff] }
 0x10d   : > { %v6327_v9 = vpop.f32.mrf.mxu1  ;;  %2386 = vmatpush1.msra.mxu1 %v2330_v5 }
 0x10e   : > { %v711_v10 = vpop.f32.mrf.mxu0  ;;  %2387 = vmatprep.subr.mxu1 %v8189_v16 }
 0x10f   : > { %v998_v11 = vpop.f32.mrf.mxu1  ;;  %4705 = vmatmul.mubr.msk.f32.gmra.mxu0 %vm505_vm1, %v4671_v7 }
 0x110   : > { %v6330_v12 = vadd.f32 %v998_v11, %v711_v10  ;;  %2061 = vmatprep.mubr.f32.mxu0 %v8189_v16  ;;  %v6337_v19 = vpop.f32.mrf.mxu0 }
 0x111   : > { %v6339_v21 = vpop.f32.mrf.mxu1 }
 0x112   : > { %v717_v24 = vpop.f32.mrf.mxu0 }
 0x113   : > { %v1004_v25 = vpop.f32.mrf.mxu1  ;;  %4706 = vmatmul.mubr.msk.f32.gmra.mxu0 %vm505_vm1, %v4672_v14 }
 0x114   : > { %v6343_v27 = vadd.f32 %v1004_v25, %v717_v24  ;;  %2067 = vmatprep.mubr.f32.mxu0 %v8189_v16  ;;  %v6350_v33 = vpop.f32.mrf.mxu0  ;;  %v4677_v24 = vld [vmem:[%s5861_s15 + $0x380] sm:$0xff]  ;;  %v2329_v25 = vld [vmem:[%s8177_s3 + $0x48] sm:$0xff] }
 0x115   : > { %v6352_v36 = vpop.f32.mrf.mxu1  ;;  %2388 = vmatpush1.msra.mxu1 %v2329_v25 }
 0x116   : > { %v723_v37 = vpop.f32.mrf.mxu0  ;;  %2389 = vmatprep.subr.mxu1 %v8189_v16 }
 0x117   : > { %v1010_v39 = vpop.f32.mrf.mxu1  ;;  %4707 = vmatmul.mubr.msk.f32.gmra.mxu0 %vm505_vm1, %v4673_v30 }
 0x118   : > { %v6356_v42 = vadd.f32 %v1010_v39, %v723_v37  ;;  %2073 = vmatprep.mubr.f32.mxu0 %v8189_v16  ;;  %v6360_v45 = vpop.f32.mrf.mxu0 }
 0x119   : > { %v6362_v48 = vpop.f32.mrf.mxu1 }
 0x11a   : > { %v729_v51 = vpop.f32.mrf.mxu0 }
 0x11b   : > { %v1016_v54 = vpop.f32.mrf.mxu1  ;;  %4708 = vmatmul.mubr.msk.f32.gmra.mxu0 %vm505_vm1, %v4674_v43 }
 0x11c   : > { %v6368_v55 = vadd.f32 %v1016_v54, %v729_v51  ;;  %2079 = vmatprep.mubr.f32.mxu0 %v8189_v16  ;;  %v6373_v58 = vpop.f32.mrf.mxu0 }
 0x11d   : > { %v6375_v61 = vpop.f32.mrf.mxu1 }
 0x11e   : > { %v735_v62 = vpop.f32.mrf.mxu0 }
 0x11f   : > { %v1022_v0 = vpop.f32.mrf.mxu1  ;;  %4709 = vmatmul.mubr.msk.f32.gmra.mxu0 %vm505_vm1, %v4675_v57 }
 0x120   : > { %v6378_v3 = vadd.f32 %v1022_v0, %v735_v62  ;;  %2085 = vmatprep.mubr.f32.mxu0 %v8189_v16  ;;  %v6385_v7 = vpop.f32.mrf.mxu0 }
 0x121   : > { %v6387_v10 = vpop.f32.mrf.mxu1 }
 0x122   : > { %v741_v11 = vpop.f32.mrf.mxu0 }
 0x123   : > { %v1028_v14 = vpop.f32.mrf.mxu1  ;;  %4710 = vmatmul.mubr.msk.f32.gmra.mxu0 %vm505_vm1, %v4676_v4  ;;  %v4679_v4 = vld [vmem:[%s5861_s15 + $0x390] sm:$0xff] }
 0x124   : > { %v6391_v18 = vadd.f32 %v1028_v14, %v741_v11  ;;  %2091 = vmatprep.mubr.f32.mxu0 %v8189_v16  ;;  %v6398_v30 = vpop.f32.mrf.mxu0  ;;  %v2328_v14 = vld [vmem:[%s8177_s3 + $0x40] sm:$0xff] }
 0x125   : > { %v6400_v31 = vpop.f32.mrf.mxu1  ;;  %2390 = vmatpush1.msra.mxu1 %v2328_v14  ;;  %v2327_v14 = vld [vmem:[%s8177_s3 + $0x38] sm:$0xff] }
 0x126   : > { %v747_v37 = vpop.f32.mrf.mxu0  ;;  %2391 = vmatprep.subr.mxu1 %v8189_v16 }
 0x127   : > { %v1034_v39 = vpop.f32.mrf.mxu1  ;;  %4711 = vmatmul.mubr.msk.f32.gmra.mxu0 %vm505_vm1, %v4677_v24  ;;  %2392 = vmatpush1.msra.mxu1 %v2327_v14 }
 0x128   : > { %v6404_v43 = vadd.f32 %v1034_v39, %v747_v37  ;;  %2097 = vmatprep.mubr.f32.mxu0 %v8189_v16  ;;  %v6408_v51 = vpop.f32.mrf.mxu0  ;;  %v4680_v39 = vld [vmem:[%s5861_s15 + $0x398] sm:$0xff]  ;;  %2393 = vmatprep.subr.mxu1 %v8189_v16 }
 0x129   : > { %8201 = vst [vmem:[#allocation9_spill] sm:$0xff] %v6408_v51  ;;  %v6410_v54 = vpop.f32.mrf.mxu1 }
 0x12a   : > { %8202 = vst [vmem:[#allocation10_spill] sm:$0xff] %v6410_v54  ;;  %v753_v57 = vpop.f32.mrf.mxu0 }
 0x12b   : > { %v1040_v62 = vpop.f32.mrf.mxu1  ;;  %4712 = vmatmul.mubr.msk.f32.gmra.mxu0 %vm505_vm1, %v4678_v49 }
 0x12c   : > { %v6413_v0 = vadd.f32 %v1040_v62, %v753_v57  ;;  %2103 = vmatprep.mubr.f32.mxu0 %v8189_v16  ;;  %v6417_v5 = vpop.f32.mrf.mxu0 }
 0x12d   : > { %8203 = vst [vmem:[#allocation11_spill] sm:$0xff] %v6417_v5  ;;  %v6419_v11 = vpop.f32.mrf.mxu1 }
 0x12e   : > { %8204 = vst [vmem:[#allocation12_spill] sm:$0xff] %v6419_v11  ;;  %v759_v24 = vpop.f32.mrf.mxu0 }
 0x12f   : > { %v1046_v25 = vpop.f32.mrf.mxu1  ;;  %4713 = vmatmul.mubr.msk.f32.gmra.mxu0 %vm505_vm1, %v4679_v4  ;;  %v4681_v4 = vld [vmem:[%s5861_s15 + $0x3a0] sm:$0xff] }
 0x130   : > { %v6425_v37 = vadd.f32 %v1046_v25, %v759_v24  ;;  %2109 = vmatprep.mubr.f32.mxu0 %v8189_v16  ;;  %v6430_v49 = vpop.f32.mrf.mxu0 }
 0x131   : > { %8205 = vst [vmem:[#allocation13_spill] sm:$0xff] %v6430_v49  ;;  %v6432_v57 = vpop.f32.mrf.mxu1 }
 0x132   : > { %8206 = vst [vmem:[#allocation14_spill] sm:$0xff] %v6432_v57  ;;  %v765_v62 = vpop.f32.mrf.mxu0 }
 0x133   : > { %v1052_v11 = vpop.f32.mrf.mxu1  ;;  %4714 = vmatmul.mubr.msk.f32.gmra.mxu0 %vm505_vm1, %v4680_v39  ;;  %v4682_v39 = vld [vmem:[%s5861_s15 + $0x3a8] sm:$0xff] }
 0x134   : > { %v6435_v5 = vadd.f32 %v1052_v11, %v765_v62  ;;  %2115 = vmatprep.mubr.f32.mxu0 %v8189_v16  ;;  %v6442_v24 = vpop.f32.mrf.mxu0  ;;  %v2326_v62 = vld [vmem:[%s8177_s3 + $0x30] sm:$0xff] }
 0x135   : > { %8207 = vst [vmem:[#allocation15_spill] sm:$0xff] %v6442_v24  ;;  %v6444_v25 = vpop.f32.mrf.mxu1  ;;  %2394 = vmatpush1.msra.mxu1 %v2326_v62  ;;  %v2325_v62 = vld [vmem:[%s8177_s3 + $0x28] sm:$0xff] }
 0x136   : > { %8208 = vst [vmem:[#allocation16_spill] sm:$0xff] %v6444_v25  ;;  %v771_v57 = vpop.f32.mrf.mxu0  ;;  %2395 = vmatprep.subr.mxu1 %v8189_v16 }
 0x137   : > { %v1058_v49 = vpop.f32.mrf.mxu1  ;;  %4715 = vmatmul.mubr.msk.f32.gmra.mxu0 %vm505_vm1, %v4681_v4  ;;  %2396 = vmatpush1.msra.mxu1 %v2325_v62 }
 0x138   : > { %v6448_v11 = vadd.f32 %v1058_v49, %v771_v57  ;;  %2121 = vmatprep.mubr.f32.mxu0 %v8189_v16  ;;  %v6455_v24 = vpop.f32.mrf.mxu0  ;;  %v4683_v57 = vld [vmem:[%s5861_s15 + $0x3b0] sm:$0xff]  ;;  %2397 = vmatprep.subr.mxu1 %v8189_v16 }
 0x139   : > { %8209 = vst [vmem:[#allocation17_spill] sm:$0xff] %v6455_v24  ;;  %v6457_v25 = vpop.f32.mrf.mxu1 }
 0x13a   : > { %8210 = vst [vmem:[#allocation18_spill] sm:$0xff] %v6457_v25  ;;  %v777_v14 = vpop.f32.mrf.mxu0 }
 0x13b   : > { %v1064_v54 = vpop.f32.mrf.mxu1  ;;  %4716 = vmatmul.mubr.msk.f32.gmra.mxu0 %vm505_vm1, %v4682_v39 }
 0x13c   : > { %v6461_v49 = vadd.f32 %v1064_v54, %v777_v14  ;;  %2127 = vmatprep.mubr.f32.mxu0 %v8189_v16  ;;  %v6465_v4 = vpop.f32.mrf.mxu0  ;;  %v4684_v54 = vld [vmem:[%s5861_s15 + $0x3b8] sm:$0xff]  ;;  %s431_s15 = sand.u32 1, %s5672_s26  }
 0x13d   : > { %8211 = vst [vmem:[#allocation19_spill] sm:$0xff] %v6465_v4  ;;  %v6467_v51 = vpop.f32.mrf.mxu1  ;;  %s4459_s16 = sshll.u32 %s431_s15, 3  ;;  %s4383_s0 = scalar_lea.sflag [#allocation3], %s431_s15 }
 0x13e   : > { %8212 = vst [vmem:[#allocation20_spill] sm:$0xff] %v6467_v51  ;;  %v783_v25 = vpop.f32.mrf.mxu0  ;;  %s433_s21 = scalar_lea.vmem [#allocation2], %s4459_s16  ;;  %s5626_s16 = scalar_lea.vmem %s5625_s29, 256 }
 0x13f   : > { %v1070_v24 = vpop.f32.mrf.mxu1  ;;  %4717 = vmatmul.mubr.msk.f32.gmra.mxu0 %vm505_vm1, %v4683_v57  ;;  %s4396_s22 = sshll.u32 %s433_s21, 4  ;;  %s4397_s22 = int_to_ptr.vmem [resolvable:$true] %s4396_s22 }
 0x140   : > { %v6473_v53 = vadd.f32 %v1070_v24, %v783_v25  ;;  %2133 = vmatprep.mubr.f32.mxu0 %v8189_v16  ;;  %v6478_v39 = vpop.f32.mrf.mxu0  ;;  %v2324_v24 = vld [vmem:[%s8177_s3 + $0x20] sm:$0xff]  ;;  %s5620_s1 = scalar_lea.vmem %s4397_s22, 128  ;;  %p5627_p0 = scmp.lt.s32.totalorder %s4397_s22, %s5625_s29 }
 0x141   : > { %8213 = vst [vmem:[#allocation21_spill] sm:$0xff] %v6478_v39  ;;  %v6480_v14 = vpop.f32.mrf.mxu1  ;;  %2398 = vmatpush1.msra.mxu1 %v2324_v24  ;;  %p5621_p11 = scmp.ne.s32.totalorder %s4397_s22, %s5620_s1  ;;  %p5628_p1 = scmp.lt.s32.totalorder %s5626_s16, %s5620_s1 }
 0x142   : > { %8214 = vst [vmem:[#allocation22_spill] sm:$0xff] %v6480_v14  ;;  %v789_v51 = vpop.f32.mrf.mxu0  ;;  %2399 = vmatprep.subr.mxu1 %v8189_v16 }
 0x143   : > { %v1076_v4 = vpop.f32.mrf.mxu1  ;;  %4718 = vmatmul.mubr.msk.f32.gmra.mxu0 %vm505_vm1, %v4684_v54  ;;  %p5622_p12 = pnand %p5621_p11, %p5793_p5  ;;  %p5629_p2 = por %p5628_p1, %p5627_p0 }
 0x144   : > { %v6483_v52 = vadd.f32 %v1076_v4, %v789_v51  ;;  %v6488_v25 = vpop.f32.mrf.mxu0  ;;  %v2323_v51 = vld [vmem:[%s8177_s3 + $0x18] sm:$0xff] }
 0x145   : > { %8215 = vst [vmem:[#allocation23_spill] sm:$0xff] %v6488_v25  ;;  %v6490_v57 = vpop.f32.mrf.mxu1  ;;  %2400 = vmatpush1.msra.mxu1 %v2323_v51  ;;  %p5623_p13 = pneg %p5622_p12 }
 0x146   : > { %8216 = vst [vmem:[#allocation24_spill] sm:$0xff] %v6490_v57  ;;  %v1259_v62 = vpop.f32.mrf.mxu0  ;;  %2401 = vmatprep.subr.mxu1 %v8189_v16 }
 0x147   : > { %v6493_v39 = vpop.f32.mrf.mxu1  ;;  %v6496_v14 = vadd.f32 %v1259_v62, %v6232_v13  ;;  %v2322_v13 = vld [vmem:[%s8177_s3 + $0x10] sm:$0xff]  ;;  %p5630_p3 = pnand %p5629_p2, %p5623_p13 }
 0x148   : > { %8217 = vst [vmem:[#allocation25_spill] sm:$0xff] %v6493_v39  ;;  %v6501_v4 = vpop.f32.mrf.mxu0  ;;  %2402 = vmatpush1.msra.mxu1 %v2322_v13 }
 0x149   : > { %8218 = vst [vmem:[#allocation26_spill] sm:$0xff] %v6496_v14  ;;  %v6503_v54 = vpop.f32.mrf.mxu1  ;;  %2403 = vmatprep.subr.mxu1 %v8189_v16 }
 0x14a   : > { %8219 = vst [vmem:[#allocation27_spill] sm:$0xff] %v6503_v54 }
 0x14b   : > { %v1265_v24 = vpop.f32.mrf.mxu0  ;;  %v6509_v25 = vpop.f32.mrf.mxu1 }
 0x14c   : > { %v6507_v57 = vadd.f32 %v1265_v24, %v6241_v20  ;;  %8221 = vst [vmem:[#allocation29_spill] sm:$0xff] %v6509_v25 }
 0x14d   : > { %v6511_v39 = vpop.f32.mrf.mxu0  ;;  %v6519_v51 = vpop.f32.mrf.mxu1 }
 0x14e   : > { %8220 = vst [vmem:[#allocation28_spill] sm:$0xff] %v6507_v57  ;;  %8223 = vst [vmem:[#allocation31_spill] sm:$0xff] %v6519_v51  ;;  %v2321_v57 = vld [vmem:[%s8177_s3 + $0x8] sm:$0xff] }
 0x14f   : > { %v1271_v62 = vpop.f32.mrf.mxu0  ;;  %v6524_v24 = vpop.f32.mrf.mxu1  ;;  %2404 = vmatpush1.msra.mxu1 %v2321_v57 }
 0x150   : > { %v6517_v14 = vadd.f32 %v1271_v62, %v6250_v26  ;;  %8224 = vst [vmem:[#allocation32_spill] sm:$0xff] %v6524_v24  ;;  %2405 = vmatprep.subr.mxu1 %v8189_v16 }
 0x151   : > { %v6522_v54 = vpop.f32.mrf.mxu0  ;;  %v6535_v62 = vpop.f32.mrf.mxu1 }
 0x152   : > { %8222 = vst [vmem:[#allocation30_spill] sm:$0xff] %v6517_v14  ;;  %8226 = vst [vmem:[#allocation34_spill] sm:$0xff] %v6535_v62 }
 0x153   : > { %v1277_v20 = vpop.f32.mrf.mxu0  ;;  %v6546_v24 = vpop.f32.mrf.mxu1 }
 0x154   : > { %v6527_v25 = vadd.f32 %v1277_v20, %v6259_v32  ;;  %v2320_v32 = vld [vmem:[%s8177_s3] sm:$0xff]  ;;  %8228 = vst [vmem:[#allocation36_spill] sm:$0xff] %v6546_v24  ;;  %v989_v24 = vadd.f32 %v6314_v2, %v6312_v1 }
 0x155   : > { %v6532_v13 = vpop.f32.mrf.mxu0  ;;  %2406 = vmatpush1.msra.mxu1 %v2320_v32 }
 0x156   : > { %8225 = vst [vmem:[#allocation33_spill] sm:$0xff] %v6527_v25  ;;  %2435 = vmatprep.subr.mxu1 %v8189_v16 }
 0x157   : > { %v1283_v26 = vpop.f32.mrf.mxu0 }
 0x158   : > { %v6538_v14 = vadd.f32 %v1283_v26, %v6268_v38  ;;  %v2337_v38 = vld [vmem:[%s8177_s3 + $0x88] sm:$0xff]  ;;  %v6556_v26 = vpop.f32.mrf.mxu1 }
 0x159   : > { %v6543_v20 = vpop.f32.mrf.mxu0  ;;  %8231 = vst [vmem:[#allocation39_spill] sm:$0xff] %v6556_v26  ;;  %2436 = vmatpush2.msra.mxu1 %v2337_v38 }
 0x15a   : > { %8227 = vst [vmem:[#allocation35_spill] sm:$0xff] %v6538_v14  ;;  %2437 = vmatprep.subr.mxu1 %v8189_v16  ;;  %v6570_v26 = vpop.f32.mrf.mxu1 }
 0x15b   : > { %v1289_v25 = vpop.f32.mrf.mxu0 }
 0x15c   : > { %v6549_v57 = vadd.f32 %v1289_v25, %v6277_v44  ;;  %v2336_v44 = vld [vmem:[%s8177_s3 + $0x80] sm:$0xff] }
 0x15d   : > { %v6551_v51 = vpop.f32.mrf.mxu0  ;;  %2438 = vmatpush2.msra.mxu1 %v2336_v44 }
 0x15e   : > { %8229 = vst [vmem:[#allocation37_spill] sm:$0xff] %v6549_v57  ;;  %8230 = vst [vmem:[#allocation38_spill] sm:$0xff] %v6551_v51  ;;  %2519 = vmatprep.subr.mxu1 %v8189_v16  ;;  %v983_v57 = vadd.f32 %v6304_v60, %v6302_v59 }
 0x15f   : > { %v1295_v62 = vpop.f32.mrf.mxu0 }
 0x160   : > { %v6559_v14 = vadd.f32 %v1295_v62, %v6286_v50 }
 0x161   : > { %v6561_v32 = vpop.f32.mrf.mxu0 }
 0x162   : > { %8232 = vst [vmem:[#allocation40_spill] sm:$0xff] %v6559_v14  ;;  %8233 = vst [vmem:[#allocation41_spill] sm:$0xff] %v6561_v32  ;;  %v6579_v32 = vpop.f32.mrf.mxu1 }
 0x163   : > { %v1301_v25 = vpop.f32.mrf.mxu0 }
 0x164   : > { %v6573_v50 = vadd.f32 %v1301_v25, %v6295_v56  ;;  %v995_v56 = vadd.f32 %v6327_v9, %v6325_v8  ;;  %v6588_v60 = vpop.f32.mrf.mxu1 }
 0x165   : > { %v1303_v62 = vpop.f32.mrf.mxu0 }
 0x166   : > { %v6575_v38 = vadd.f32 %v1303_v62, %v983_v57  ;;  %v6597_v2 = vpop.f32.mrf.mxu1 }
 0x167   : > { %v1307_v14 = vpop.f32.mrf.mxu0 }
 0x168   : > { %v6582_v44 = vadd.f32 %v1307_v14, %v6308_v63  ;;  %v1001_v63 = vadd.f32 %v6339_v21, %v6337_v19  ;;  %v6606_v9 = vpop.f32.mrf.mxu1 }
 0x169   : > { %v1309_v16 = vpop.f32.mrf.mxu0 }
 0x16a   : > { %v6584_v51 = vadd.f32 %v1309_v16, %v989_v24  ;;  %v6615_v21 = vpop.f32.mrf.mxu1 }
 0x16b   : > { %v1313_v59 = vpop.f32.mrf.mxu0 }
 0x16c   : > { %v6591_v57 = vadd.f32 %v1313_v59, %v6320_v6  ;;  %v1007_v6 = vadd.f32 %v6352_v36, %v6350_v33  ;;  %v6624_v36 = vpop.f32.mrf.mxu1 }
 0x16d   : > { %v1315_v25 = vpop.f32.mrf.mxu0 }
 0x16e   : > { %v6593_v62 = vadd.f32 %v1315_v25, %v995_v56 }
 0x16f   : > { %v1319_v1 = vpop.f32.mrf.mxu0 }
 0x170   : > { %v6600_v16 = vadd.f32 %v1319_v1, %v6330_v12  ;;  %v1013_v12 = vadd.f32 %v6362_v48, %v6360_v45  ;;  %v6633_v48 = vpop.f32.mrf.mxu1 }
 0x171   : > { %v1321_v14 = vpop.f32.mrf.mxu0 }
 0x172   : > { %v6602_v24 = vadd.f32 %v1321_v14, %v1001_v63 }
 0x173   : > { %v1325_v8 = vpop.f32.mrf.mxu0 }
 0x174   : > { %v6609_v59 = vadd.f32 %v1325_v8, %v6343_v27  ;;  %v1019_v27 = vadd.f32 %v6375_v61, %v6373_v58  ;;  %v6642_v61 = vpop.f32.mrf.mxu1 }
 0x175   : > { %v1327_v56 = vpop.f32.mrf.mxu0 }
 0x176   : > { %v6611_v25 = vadd.f32 %v1327_v56, %v1007_v6 }
 0x177   : > { %v1331_v19 = vpop.f32.mrf.mxu0 }
 0x178   : > { %v6618_v1 = vadd.f32 %v1331_v19, %v6356_v42  ;;  %v1025_v42 = vadd.f32 %v6387_v10, %v6385_v7  ;;  %v6649_v10 = vpop.f32.mrf.mxu1 }
 0x179   : > { %v1333_v63 = vpop.f32.mrf.mxu0 }
 0x17a   : > { %v6620_v14 = vadd.f32 %v1333_v63, %v1013_v12 }
 0x17b   : > { %v1337_v33 = vpop.f32.mrf.mxu0 }
 0x17c   : > { %v6627_v8 = vadd.f32 %v1337_v33, %v6368_v55  ;;  %v1031_v55 = vadd.f32 %v6400_v31, %v6398_v30 }
 0x17d   : > { %v1339_v6 = vpop.f32.mrf.mxu0 }
 0x17e   : > { %v6629_v56 = vadd.f32 %v1339_v6, %v1019_v27 }
 0x17f   : > { %v1343_v45 = vpop.f32.mrf.mxu0 }
 0x180   : > { %8234 = vst [vmem:[#allocation42_spill] sm:$0xff] %v6629_v56  ;;  %v6636_v19 = vadd.f32 %v1343_v45, %v6378_v3 }
 0x181   : > { %v1345_v12 = vpop.f32.mrf.mxu0 }
 0x182   : > { %8235 = vst [vmem:[#allocation43_spill] sm:$0xff] %v6636_v19  ;;  %v6638_v63 = vadd.f32 %v1345_v12, %v1025_v42  ;;  %v6656_v12 = vpop.f32.mrf.mxu1 }
 0x183   : > { %v1349_v58 = vpop.f32.mrf.mxu0 }
 0x184   : > { %8236 = vst [vmem:[#allocation44_spill] sm:$0xff] %v6638_v63  ;;  %v6645_v33 = vadd.f32 %v1349_v58, %v6391_v18  ;;  %v6663_v58 = vpop.f32.mrf.mxu1 }
 0x185   : > { %v1351_v27 = vpop.f32.mrf.mxu0 }
 0x186   : > { %8237 = vst [vmem:[#allocation45_spill] sm:$0xff] %v6645_v33  ;;  %v6647_v6 = vadd.f32 %v1351_v27, %v1031_v55 }
 0x187   : > { %v1355_v7 = vpop.f32.mrf.mxu0 }
 0x188   : > { %8238 = vst [vmem:[#allocation46_spill] sm:$0xff] %v6647_v6  ;;  %v6652_v3 = vadd.f32 %v1355_v7, %v6404_v43  ;;  %v6670_v7 = vpop.f32.mrf.mxu1 }
 0x189   : > { %v6654_v45 = vpop.f32.mrf.mxu0 }
 0x18a   : > { %8239 = vst [vmem:[#allocation47_spill] sm:$0xff] %v6652_v3  ;;  %8240 = vst [vmem:[#allocation48_spill] sm:$0xff] %v6654_v45 }
 0x18b   : > { %v1361_v42 = vpop.f32.mrf.mxu0 }
 0x18c   : > { %v6659_v30 = vadd.f32 %v1361_v42, %v6413_v0  ;;  %v6677_v42 = vpop.f32.mrf.mxu1 }
 0x18d   : > { %v6661_v31 = vpop.f32.mrf.mxu0 }
 0x18e   : > { %8241 = vst [vmem:[#allocation49_spill] sm:$0xff] %v6659_v30  ;;  %8242 = vst [vmem:[#allocation50_spill] sm:$0xff] %v6661_v31 }
 0x18f   : > { %v1367_v18 = vpop.f32.mrf.mxu0 }
 0x190   : > { %v6666_v55 = vadd.f32 %v1367_v18, %v6425_v37  ;;  %v6684_v18 = vpop.f32.mrf.mxu1 }
 0x191   : > { %v6668_v27 = vpop.f32.mrf.mxu0 }
 0x192   : > { %8243 = vst [vmem:[#allocation51_spill] sm:$0xff] %v6666_v55  ;;  %8244 = vst [vmem:[#allocation52_spill] sm:$0xff] %v6668_v27 }
 0x193   : > { %v1373_v43 = vpop.f32.mrf.mxu0 }
 0x194   : > { %v6673_v3 = vadd.f32 %v1373_v43, %v6435_v5  ;;  %v6691_v43 = vpop.f32.mrf.mxu1 }
 0x195   : > { %v6675_v6 = vpop.f32.mrf.mxu0 }
 0x196   : > { %8245 = vst [vmem:[#allocation53_spill] sm:$0xff] %v6673_v3  ;;  %8246 = vst [vmem:[#allocation54_spill] sm:$0xff] %v6675_v6 }
 0x197   : > { %v1379_v0 = vpop.f32.mrf.mxu0 }
 0x198   : > { %v6680_v30 = vadd.f32 %v1379_v0, %v6448_v11  ;;  %v6698_v0 = vpop.f32.mrf.mxu1 }
 0x199   : > { %v6682_v31 = vpop.f32.mrf.mxu0 }
 0x19a   : > { %8247 = vst [vmem:[#allocation55_spill] sm:$0xff] %v6680_v30  ;;  %8248 = vst [vmem:[#allocation56_spill] sm:$0xff] %v6682_v31 }
 0x19b   : > { %v1385_v37 = vpop.f32.mrf.mxu0 }
 0x19c   : > { %v6687_v55 = vadd.f32 %v1385_v37, %v6461_v49  ;;  %v6707_v37 = vpop.f32.mrf.mxu1 }
 0x19d   : > { %v6689_v27 = vpop.f32.mrf.mxu0 }
 0x19e   : > { %8249 = vst [vmem:[#allocation57_spill] sm:$0xff] %v6687_v55  ;;  %8250 = vst [vmem:[#allocation58_spill] sm:$0xff] %v6689_v27 }
 0x19f   : > { %v1391_v5 = vpop.f32.mrf.mxu0 }
 0x1a0   : > { %v6694_v3 = vadd.f32 %v1391_v5, %v6473_v53  ;;  %v6713_v53 = vpop.f32.mrf.mxu1 }
 0x1a1   : > { %v6696_v6 = vpop.f32.mrf.mxu0 }
 0x1a2   : > { %8251 = vst [vmem:[#allocation59_spill] sm:$0xff] %v6694_v3  ;;  %8252 = vst [vmem:[#allocation60_spill] sm:$0xff] %v6696_v6  ;;  %v6719_v6 = vpop.f32.mrf.mxu1 }
 0x1a3   : > { %v1397_v11 = vpop.f32.mrf.mxu0  ;;  %8258 = vst [vmem:[#allocation66_spill] sm:$0xff] %v6719_v6 }
 0x1a4   : > { %v6701_v30 = vadd.f32 %v1397_v11, %v6483_v52 }
 0x1a5   : > { %v6703_v31 = vpop.f32.mrf.mxu0 }
 0x1a6   : > { %8253 = vst [vmem:[#allocation61_spill] sm:$0xff] %v6701_v30  ;;  %8254 = vst [vmem:[#allocation62_spill] sm:$0xff] %v6703_v31  ;;  %v6725_v30 = vpop.f32.mrf.mxu1 }
 0x1a7   : > { %v6705_v49 = vpop.f32.mrf.mxu0  ;;  %8261 = vst [vmem:[#allocation69_spill] sm:$0xff] %v6725_v30 }
 0x1a8   : > { %v6731_v63 = vpop.f32.mrf.mxu1 }
 0x1a9   : > { %v6709_v55 = vpop.f32.mrf.mxu0  ;;  %8264 = vst [vmem:[#allocation72_spill] sm:$0xff] %v6731_v63 }
 0x1ab   : > { %v6711_v27 = vpop.f32.mrf.mxu0 }
 0x1ac   : > { %8255 = vst [vmem:[#allocation63_spill] sm:$0xff] %v6711_v27 }
 0x1ad   : > { %v6715_v5 = vpop.f32.mrf.mxu0 }
 0x1ae   : > { %8256 = vst [vmem:[#allocation64_spill] sm:$0xff] %v6715_v5  ;;  %v6737_v5 = vpop.f32.mrf.mxu1 }
 0x1af   : > { %v6717_v3 = vpop.f32.mrf.mxu0  ;;  %8267 = vst [vmem:[#allocation75_spill] sm:$0xff] %v6737_v5 }
 0x1b0   : > { %8257 = vst [vmem:[#allocation65_spill] sm:$0xff] %v6717_v3 }
 0x1b1   : > { %v6721_v52 = vpop.f32.mrf.mxu0 }
 0x1b2   : > { %8259 = vst [vmem:[#allocation67_spill] sm:$0xff] %v6721_v52  ;;  %v2190_v52 = vlaneseq }
 0x1b3   : > { %v6723_v11 = vpop.f32.mrf.mxu0 }
 0x1b4   : > { %8260 = vst [vmem:[#allocation68_spill] sm:$0xff] %v6723_v11  ;;  %v4769_v11 = vld [vmem:[%s8178_s4 + $0x88] sm:$0xff] }
 0x1b5   : > { %v6727_v31 = vpop.f32.mrf.mxu0  ;;  %5126 = vmatprep.subr.mxu0 %v4769_v11 }
 0x1b6   : > { %8262 = vst [vmem:[#allocation70_spill] sm:$0xff] %v6727_v31  ;;  %v6749_v31 = vpop.f32.mrf.mxu1  ;;  %5127 = vmatpush3.msra.mxu0 %v4769_v11 }
 0x1b7   : > { %v6729_v33 = vpop.f32.mrf.mxu0  ;;  %8270 = vst [vmem:[#allocation78_spill] sm:$0xff] %v6749_v31 }
 0x1b8   : > { %8263 = vst [vmem:[#allocation71_spill] sm:$0xff] %v6729_v33  ;;  %v4768_v33 = vld [vmem:[%s8178_s4 + $0x80] sm:$0xff] }
 0x1b9   : > { %v6733_v19 = vpop.f32.mrf.mxu0  ;;  %5128 = vmatprep.subr.mxu0 %v4768_v33 }
 0x1ba   : > { %8265 = vst [vmem:[#allocation73_spill] sm:$0xff] %v6733_v19  ;;  %5129 = vmatpush3.msra.mxu0 %v4768_v33  ;;  %v941_v33 = vadd.f32 %v6238_v17, %v6236_v15  ;;  %v8281_v15 = vld [vmem:[#allocation9_spill] sm:$0xff]  ;;  %v8282_v17 = vld [vmem:[#allocation10_spill] sm:$0xff] }
 0x1bb   : > { %v6735_v56 = vpop.f32.mrf.mxu0 }
 0x1bc   : > { %8266 = vst [vmem:[#allocation74_spill] sm:$0xff] %v6735_v56 }
 0x1bd   : > { %v6739_v3 = vpop.f32.mrf.mxu0 }
 0x1be   : > { %8268 = vst [vmem:[#allocation76_spill] sm:$0xff] %v6739_v3  ;;  %v2191_v3 = vshrl.u32 %v2190_v52, 7  ;;  %v947_v52 = vadd.f32 %v6247_v23, %v6245_v22  ;;  %v1037_v22 = vadd.f32 %v8282_v17, %v8281_v15  ;;  %v1403_v23 = vadd.f32 %v6501_v4, %v941_v33  ;;  %v8291_v4 = vld [vmem:[#allocation15_spill] sm:$0xff]  ;;  %v8292_v33 = vld [vmem:[#allocation16_spill] sm:$0xff] }
 0x1bf   : > { %v6741_v6 = vpop.f32.mrf.mxu0 }
 0x1c0   : > { %8269 = vst [vmem:[#allocation77_spill] sm:$0xff] %v6741_v6  ;;  %v6755_v6 = vpop.f32.mrf.mxu1  ;;  %v2192_v27 = vsub.s32 0, %v2191_v3  ;;  %v2196_v31 = vsub.s32 1, %v2191_v3  ;;  %v965_v3 = vadd.f32 %v6274_v41, %v6272_v40  ;;  %v8285_v40 = vld [vmem:[#allocation12_spill] sm:$0xff] }
 0x1c1   : > { %v6751_v19 = vpop.f32.mrf.mxu0  ;;  %8273 = vst [vmem:[#allocation81_spill] sm:$0xff] %v6755_v6 }
 0x1c2   : > { %8271 = vst [vmem:[#allocation79_spill] sm:$0xff] %v6751_v19  ;;  %v6761_v30 = vpop.f32.mrf.mxu1  ;;  %v2188_v19 = vld [vmem:[%s8176_s2] sm:$0x3] }
 0x1c3   : > { %v6753_v56 = vpop.f32.mrf.mxu0  ;;  %8276 = vst [vmem:[#allocation84_spill] sm:$0xff] %v6761_v30  ;;  %v8278_v30 = vld [vmem:[#allocation7_spill] sm:$0xff] }
 0x1c4   : > { %8272 = vst [vmem:[#allocation80_spill] sm:$0xff] %v6753_v56  ;;  %v971_v56 = vadd.f32 %v6283_v47, %v6281_v46  ;;  %v8287_v46 = vld [vmem:[#allocation13_spill] sm:$0xff]  ;;  %v8288_v47 = vld [vmem:[#allocation14_spill] sm:$0xff] }
 0x1c5   : > { %v6757_v5 = vpop.f32.mrf.mxu0 }
 0x1c6   : > { %8274 = vst [vmem:[#allocation82_spill] sm:$0xff] %v6757_v5  ;;  %v953_v5 = vadd.f32 %v6256_v29, %v6254_v28  ;;  %v6787_v28 = vpop.f32.mrf.mxu1  ;;  %v6789_v29 = vrot.slane %v2188_v19, %v2192_v27  ;;  %v6807_v27 = vadd.f32 %v8292_v33, %v8291_v4  ;;  %v8304_v4 = vld [vmem:[#allocation41_spill] sm:$0xff] }
 0x1c7   : > { %v6759_v63 = vpop.f32.mrf.mxu0 }
 0x1c8   : > { %8275 = vst [vmem:[#allocation83_spill] sm:$0xff] %v6759_v63  ;;  %v959_v63 = vadd.f32 %v6265_v35, %v6263_v34  ;;  %v6791_v34 = vrot.slane %v2188_v19, %v2196_v31  ;;  %v8284_v35 = vld [vmem:[#allocation11_spill] sm:$0xff]  ;;  %v1407_v15 = vadd.f32 %v6522_v54, %v953_v5  ;;  %8293 = vst [vmem:[#allocation12_spill] sm:$0xff] %v6807_v27  ;;  %v8294_v19 = vld [vmem:[#allocation17_spill] sm:$0xff] }
 0x1c9   : > { %v6766_v11 = vpop.f32.mrf.mxu0  ;;  %v6795_v41 = vadd.f32 %v8285_v40, %v8284_v35  ;;  %v8295_v31 = vld [vmem:[#allocation18_spill] sm:$0xff]  ;;  %v1411_v40 = vadd.f32 %v6543_v20, %v965_v3  ;;  %v8310_v20 = vld [vmem:[#allocation25_spill] sm:$0xff]  ;;  %v8311_v3 = vld [vmem:[#allocation27_spill] sm:$0xff] }
 0x1ca   : > { %8277 = vst [vmem:[#allocation85_spill] sm:$0xff] %v6766_v11  ;;  %v8279_v11 = vld [vmem:[#allocation8_spill] sm:$0xff]  ;;  %v1409_v35 = vadd.f32 %v6532_v13, %v959_v63  ;;  %v8301_v54 = vld [vmem:[#allocation22_spill] sm:$0xff] }
 0x1cb   : > { %v977_v6 = vadd.f32 %v8279_v11, %v8278_v30  ;;  %v6782_v45 = vpop.f32.mrf.mxu0  ;;  %8283 = vst [vmem:[#allocation8_spill] sm:$0xff] %v6787_v28  ;;  %8286 = vst [vmem:[#allocation9_spill] sm:$0xff] %v6795_v41  ;;  %v6799_v30 = vadd.f32 %v8288_v47, %v8287_v46  ;;  %v1405_v11 = vadd.f32 %v6511_v39, %v947_v52  ;;  %v8297_v46 = vld [vmem:[#allocation19_spill] sm:$0xff]  ;;  %v8298_v47 = vld [vmem:[#allocation20_spill] sm:$0xff] }
 0x1cc   : > { %8280 = vst [vmem:[#allocation7_spill] sm:$0xff] %v6782_v45  ;;  %v6811_v45 = vadd.f32 %v8295_v31, %v8294_v19  ;;  %v8300_v39 = vld [vmem:[#allocation21_spill] sm:$0xff]  ;;  %v8303_v52 = vld [vmem:[#allocation38_spill] sm:$0xff]  ;;  %v8306_v19 = vld [vmem:[#allocation23_spill] sm:$0xff] }
 0x1cd   : > { %8289 = vst [vmem:[#allocation10_spill] sm:$0xff] %v6799_v30  ;;  %v6803_v17 = vpop.f32.mrf.mxu0  ;;  %v6817_v30 = vadd.f32 %v8298_v47, %v8297_v46  ;;  %v6821_v5 = vadd.f32 %v8301_v54, %v8300_v39  ;;  %v1415_v33 = vadd.f32 %v8304_v4, %v977_v6  ;;  %v8307_v31 = vld [vmem:[#allocation24_spill] sm:$0xff]  ;;  %v8309_v13 = vld [vmem:[#allocation26_spill] sm:$0xff]  ;;  %v1772_v46 = vadd.f32 %v8311_v3, %v1403_v23  ;;  %v6836_v39 = vpop.f32.mrf.mxu1  ;;  %v8314_v54 = vld [vmem:[#allocation31_spill] sm:$0xff] }
 0x1ce   : > { %8290 = vst [vmem:[#allocation11_spill] sm:$0xff] %v6803_v17  ;;  %8296 = vst [vmem:[#allocation13_spill] sm:$0xff] %v6811_v45  ;;  %v1413_v17 = vadd.f32 %v8303_v52, %v971_v56  ;;  %v6829_v45 = vadd.f32 %v8307_v31, %v8306_v19  ;;  %v1771_v63 = vadd.f32 %v8310_v20, %v8309_v13  ;;  %v8312_v47 = vld [vmem:[#allocation28_spill] sm:$0xff]  ;;  %v8315_v52 = vld [vmem:[#allocation30_spill] sm:$0xff] }
 0x1cf   : > { %8299 = vst [vmem:[#allocation14_spill] sm:$0xff] %v6817_v30  ;;  %8302 = vst [vmem:[#allocation15_spill] sm:$0xff] %v6821_v5  ;;  %v6825_v27 = vpop.f32.mrf.mxu0  ;;  %v8313_v30 = vld [vmem:[#allocation29_spill] sm:$0xff]  ;;  %v1774_v56 = vadd.f32 %v8314_v54, %v1405_v11  ;;  %v8316_v6 = vld [vmem:[#allocation32_spill] sm:$0xff]  ;;  %v6856_v11 = vadd.f32 %v6579_v32, %v1411_v40 }
 0x1d0   : > { %8305 = vst [vmem:[#allocation16_spill] sm:$0xff] %v6825_v27  ;;  %8308 = vst [vmem:[#allocation17_spill] sm:$0xff] %v6829_v45  ;;  %v1773_v28 = vadd.f32 %v8313_v30, %v8312_v47  ;;  %v1775_v4 = vadd.f32 %v8316_v6, %v8315_v52  ;;  %v8317_v27 = vld [vmem:[#allocation34_spill] sm:$0xff]  ;;  %v8318_v41 = vld [vmem:[#allocation33_spill] sm:$0xff] }
 0x1d1   : > { %v1776_v5 = vadd.f32 %v8317_v27, %v1407_v15  ;;  %v8319_v19 = vld [vmem:[#allocation36_spill] sm:$0xff]  ;;  %v6846_v45 = vpop.f32.mrf.mxu0  ;;  %v8320_v13 = vld [vmem:[#allocation39_spill] sm:$0xff]  ;;  %v8322_v3 = vld [vmem:[#allocation37_spill] sm:$0xff]  ;;  %v6863_v15 = vadd.f32 %v6597_v2, %v1413_v17  ;;  %v6884_v2 = vadd.f32 %v6642_v61, %v6582_v44  ;;  %v2140_v17 = vadd.f32 %v6705_v49, %v1771_v63 }
 0x1d2   : > { %v6844_v31 = vadd.f32 %v8319_v19, %v8318_v41  ;;  %v6849_v23 = vadd.f32 %v8320_v13, %v1409_v35  ;;  %v8321_v20 = vld [vmem:[#allocation35_spill] sm:$0xff]  ;;  %v6860_v47 = vadd.f32 %v6588_v60, %v8322_v3  ;;  %v8323_v41 = vld [vmem:[#allocation40_spill] sm:$0xff]  ;;  %v6870_v35 = vadd.f32 %v6615_v21, %v1415_v33  ;;  %v6890_v21 = vpop.f32.mrf.mxu1  ;;  %v8335_v52 = vld [vmem:[#allocation46_spill] sm:$0xff] }
 0x1d3   : > { %v6853_v30 = vadd.f32 %v6570_v26, %v8321_v20  ;;  %v6867_v27 = vadd.f32 %v6606_v9, %v8323_v41  ;;  %v6874_v26 = vadd.f32 %v6624_v36, %v6573_v50  ;;  %v6876_v32 = vpop.f32.mrf.mxu0  ;;  %v6880_v60 = vadd.f32 %v6633_v48, %v6575_v38  ;;  %v8334_v63 = vld [vmem:[#allocation64_spill] sm:$0xff]  ;;  %v8336_v6 = vld [vmem:[#allocation78_spill] sm:$0xff]  ;;  %v8337_v13 = vld [vmem:[#allocation47_spill] sm:$0xff] }
 0x1d4   : > { %v6888_v9 = vadd.f32 %v6649_v10, %v6584_v51  ;;  %v6895_v50 = vadd.f32 %v6656_v12, %v6591_v57  ;;  %v6899_v38 = vadd.f32 %v6663_v58, %v6593_v62  ;;  %v6903_v44 = vadd.f32 %v6670_v7, %v6600_v16  ;;  %v8324_v12 = vld [vmem:[#allocation48_spill] sm:$0xff]  ;;  %v8325_v58 = vld [vmem:[#allocation63_spill] sm:$0xff]  ;;  %v6932_v40 = vpop.f32.mrf.mxu1  ;;  %v8338_v20 = vld [vmem:[#allocation81_spill] sm:$0xff] }
 0x1d5   : > { %v2141_v36 = vadd.f32 %v6709_v55, %v1772_v46  ;;  %v6906_v51 = vpop.f32.mrf.mxu0  ;;  %v6910_v48 = vadd.f32 %v6677_v42, %v6602_v24  ;;  %v6914_v57 = vadd.f32 %v6684_v18, %v6609_v59  ;;  %v6918_v62 = vadd.f32 %v6691_v43, %v6611_v25  ;;  %v8326_v59 = vld [vmem:[#allocation42_spill] sm:$0xff]  ;;  %v8328_v25 = vld [vmem:[#allocation43_spill] sm:$0xff]  ;;  %v8329_v43 = vld [vmem:[#allocation69_spill] sm:$0xff] }
 0x1d6   : > { %v1795_v16 = vadd.f32 %v6698_v0, %v6618_v1  ;;  %v1796_v61 = vadd.f32 %v6707_v37, %v6620_v14  ;;  %v1797_v10 = vadd.f32 %v6713_v53, %v6627_v8  ;;  %v1435_v24 = vadd.f32 %v8324_v12, %v1037_v22  ;;  %v8327_v42 = vld [vmem:[#allocation66_spill] sm:$0xff]  ;;  %v8330_v0 = vld [vmem:[#allocation44_spill] sm:$0xff]  ;;  %v8332_v53 = vld [vmem:[#allocation45_spill] sm:$0xff] }
 0x1d7   : > { %v2142_v55 = vadd.f32 %v8325_v58, %v1773_v28  ;;  %v2069_v7 = vpop.f32.mrf.mxu0  ;;  %v1798_v18 = vadd.f32 %v8327_v42, %v8326_v59  ;;  %v1799_v49 = vadd.f32 %v8329_v43, %v8328_v25  ;;  %v2200_v1 = vadd.f32 %v6789_v29, %v2140_v17  ;;  %v8331_v37 = vld [vmem:[#allocation72_spill] sm:$0xff]  ;;  %v8333_v22 = vld [vmem:[#allocation75_spill] sm:$0xff]  ;;  %v8340_v58 = vld [vmem:[#allocation9_spill] sm:$0xff]  ;;  %v6957_v43 = vpop.f32.mrf.mxu1 }
 0x1d8   : > { %v2164_v14 = vadd.f32 %v2069_v7, %v1795_v16  ;;  %v1800_v8 = vadd.f32 %v8331_v37, %v8330_v0  ;;  %v1801_v33 = vadd.f32 %v8333_v22, %v8332_v53  ;;  %v2201_v28 = vadd.f32 %v6791_v34, %v2141_v36  ;;  %v8339_v16 = vld [vmem:[#allocation84_spill] sm:$0xff]  ;;  %v8341_v7 = vld [vmem:[#allocation50_spill] sm:$0xff]  ;;  %v8342_v59 = vld [vmem:[#allocation65_spill] sm:$0xff] }
 0x1d9   : > { %v2143_v46 = vadd.f32 %v8334_v63, %v1774_v56  ;;  %v2071_v54 = vpop.f32.mrf.mxu0  ;;  %v6943_v19 = vadd.f32 %v8336_v6, %v8335_v52  ;;  %v6947_v3 = vadd.f32 %v8338_v20, %v8337_v13  ;;  %v6951_v12 = vadd.f32 %v8339_v16, %v1435_v24  ;;  %v8345_v52 = vld [vmem:[#allocation67_spill] sm:$0xff]  ;;  %v8346_v16 = vld [vmem:[#allocation68_spill] sm:$0xff] }
 0x1da   : > { %v2224_v41 = vadd.f32 %v6789_v29, %v2164_v14  ;;  %v2165_v17 = vadd.f32 %v2071_v54, %v1796_v61  ;;  %v1437_v36 = vadd.f32 %v8341_v7, %v8340_v58  ;;  %v2202_v56 = vadd.f32 %v6789_v29, %v2142_v55  ;;  %v8343_v14 = vld [vmem:[#allocation49_spill] sm:$0xff]  ;;  %v8344_v61 = vld [vmem:[#allocation8_spill] sm:$0xff] }
 0x1db   : > { %v2144_v42 = vadd.f32 %v8342_v59, %v1775_v4  ;;  %v2075_v25 = vpop.f32.mrf.mxu0  ;;  %v2248_v0 = vmax.f32 %v2200_v1, 0.0  ;;  %v6962_v63 = vadd.f32 %v8344_v61, %v8343_v14  ;;  %v2249_v24 = vmax.f32 %v2201_v28, 0.0 }
 0x1dc   : > { %v2272_v37 = vmax.f32 %v2224_v41, 0.0  ;;  %v2225_v53 = vadd.f32 %v6791_v34, %v2165_v17  ;;  %v2166_v22 = vadd.f32 %v2075_v25, %v1797_v10  ;;  %v2203_v54 = vadd.f32 %v6791_v34, %v2143_v46  ;;  %v6975_v46 = vpop.f32.mrf.mxu1 }
 0x1dd   : > { %v2145_v6 = vadd.f32 %v8345_v52, %v1776_v5  ;;  %v2077_v55 = vpop.f32.mrf.mxu0  ;;  %v6970_v41 = vadd.f32 %v6836_v39, %v1437_v36  ;;  %v2250_v10 = vmax.f32 %v2202_v56, 0.0  ;;  %v2204_v17 = vadd.f32 %v6789_v29, %v2144_v42  ;;  %v8349_v56 = vld [vmem:[#allocation70_spill] sm:$0xff] }
 0x1de   : > { %v6966_v13 = vmax.f32 %v2248_v0, %v2272_v37  ;;  %v2273_v4 = vmax.f32 %v2225_v53, 0.0  ;;  %v2226_v20 = vadd.f32 %v6789_v29, %v2166_v22  ;;  %v2167_v1 = vadd.f32 %v2077_v55, %v1798_v18  ;;  %v8347_v0 = vld [vmem:[#allocation10_spill] sm:$0xff]  ;;  %v8348_v18 = vld [vmem:[#allocation52_spill] sm:$0xff] }
 0x1df   : > { %v2146_v28 = vadd.f32 %v8346_v16, %v6844_v31  ;;  %v2081_v58 = vpop.f32.mrf.mxu0  ;;  %v1439_v37 = vadd.f32 %v8348_v18, %v8347_v0  ;;  %v2251_v39 = vmax.f32 %v2203_v54, 0.0  ;;  %v2205_v36 = vadd.f32 %v6791_v34, %v2145_v6  ;;  %v4746_v31 = vld [vmem:[%s8177_s3 + $0x108] sm:$0xff]  ;;  %v8351_v6 = vld [vmem:[#allocation71_spill] sm:$0xff]  ;;  %v4744_v0 = vld [vmem:[%s8177_s3 + $0xf8] sm:$0xff] }
 0x1e0   : > { %v6977_v5 = vmax.f32 %v2249_v24, %v2273_v4  ;;  %v2274_v7 = vmax.f32 %v2226_v20, 0.0  ;;  %v2227_v59 = vadd.f32 %v6791_v34, %v2167_v1  ;;  %v2168_v25 = vadd.f32 %v2081_v58, %v1799_v49  ;;  %v8350_v24 = vld [vmem:[#allocation51_spill] sm:$0xff]  ;;  %v7004_v20 = vpop.f32.mrf.mxu1  ;;  %v8352_v58 = vld [vmem:[#allocation73_spill] sm:$0xff] }
 0x1e1   : > { %v2147_v42 = vadd.f32 %v8349_v56, %v6849_v23  ;;  %v2083_v53 = vpop.f32.mrf.mxu0  ;;  %v6995_v54 = vadd.f32 %v6890_v21, %v8350_v24  ;;  %v2252_v52 = vmax.f32 %v2204_v17, 0.0  ;;  %v2206_v23 = vadd.f32 %v6789_v29, %v2146_v28 }
 0x1e2   : > { %v2275_v22 = vmax.f32 %v2227_v59, 0.0  ;;  %v2228_v14 = vadd.f32 %v6789_v29, %v2168_v25  ;;  %v2169_v61 = vadd.f32 %v2083_v53, %v1800_v8  ;;  %4719 = vmatprep.mubr.msk.f32.mxu1 %vm2338_vm2, %v6977_v5  ;;  %v6991_v49 = vmax.f32 %v2250_v10, %v2274_v7  ;;  %v4745_v8 = vld [vmem:[%s8177_s3 + $0x100] sm:$0xff]  ;;  %v8356_v53 = vld [vmem:[#allocation74_spill] sm:$0xff] }
 0x1e3   : > { %v2148_v55 = vadd.f32 %v8351_v6, %v6853_v30  ;;  %v2087_v4 = vpop.f32.mrf.mxu0  ;;  %2440 = vmatmul.mubr.f32.vlgmr.msra.gmra.mxu1 %v6966_v13  ;;  %v7010_v16 = vadd.f32 %v6932_v40, %v1439_v37  ;;  %v2253_v30 = vmax.f32 %v2205_v36, 0.0  ;;  %v2207_v28 = vadd.f32 %v6791_v34, %v2147_v42  ;;  %v8354_v37 = vld [vmem:[#allocation12_spill] sm:$0xff]  ;;  %v8357_v6 = vld [vmem:[#allocation53_spill] sm:$0xff] }
 0x1e4   : > { %v7006_v1 = vmax.f32 %v2251_v39, %v2275_v22  ;;  %v2276_v10 = vmax.f32 %v2228_v14, 0.0  ;;  %v2229_v21 = vadd.f32 %v6791_v34, %v2169_v61  ;;  %v2170_v17 = vadd.f32 %v2087_v4, %v1801_v33  ;;  %2520 = vmatpush1.msra.mxu1 %v4746_v31  ;;  %v1750_v14 = vpop.f32.mrf.mxu1 }
 0x1e5   : > { %v2149_v7 = vadd.f32 %v8352_v58, %v6856_v11  ;;  %v2089_v59 = vpop.f32.mrf.mxu0  ;;  %v8353_v25 = vmov 0.0   ;;  %v8355_v11 = vld [vmem:[#allocation54_spill] sm:$0xff]  ;;  %v2254_v56 = vmax.f32 %v2206_v23, 0.0  ;;  %v2208_v42 = vadd.f32 %v6789_v29, %v2148_v55 }
 0x1e6   : > { %2521 = vmatprep.subr.mxu1 %v8353_v25  ;;  %v2277_v18 = vmax.f32 %v2229_v21, 0.0  ;;  %v2230_v33 = vadd.f32 %v6789_v29, %v2170_v17  ;;  %v2171_v39 = vadd.f32 %v2089_v59, %v6943_v19  ;;  %4720 = vmatprep.mubr.msk.f32.mxu1 %vm2338_vm2, %v7006_v1  ;;  %v7023_v40 = vmax.f32 %v2252_v52, %v2276_v10  ;;  %v4743_v19 = vld [vmem:[%s8177_s3 + $0xf0] sm:$0xff]  ;;  %v4742_v17 = vld [vmem:[%s8177_s3 + $0xe8] sm:$0xff]  ;;  %v8359_v59 = vld [vmem:[#allocation77_spill] sm:$0xff] }
 0x1e7   : > { %2522 = vmatpush1.msra.mxu1 %v4745_v8  ;;  %v1441_v36 = vadd.f32 %v8355_v11, %v8354_v37  ;;  %v2150_v31 = vadd.f32 %v8356_v53, %v6860_v47  ;;  %v2093_v22 = vpop.f32.mrf.mxu0  ;;  %v7041_v47 = vadd.f32 %v6957_v43, %v8357_v6  ;;  %v2255_v55 = vmax.f32 %v2207_v28, 0.0  ;;  %v8358_v8 = vld [vmem:[#allocation76_spill] sm:$0xff] }
 0x1e8   : > { %2445 = vmatmul.mubr.f32.gmra.mxu1 %v6991_v49  ;;  %2523 = vmatprep.subr.mxu1 %v8353_v25  ;;  %v7035_v61 = vmax.f32 %v2253_v30, %v2277_v18  ;;  %v2278_v24 = vmax.f32 %v2230_v33, 0.0  ;;  %v2231_v52 = vadd.f32 %v6791_v34, %v2171_v39  ;;  %v2172_v23 = vadd.f32 %v2093_v22, %v6947_v3  ;;  %v1754_v33 = vpop.f32.mrf.mxu1 }
 0x1e9   : > { %2524 = vmatpush1.msra.mxu1 %v4744_v0  ;;  %v2209_v4 = vadd.f32 %v6791_v34, %v2149_v7  ;;  %v2151_v10 = vadd.f32 %v8358_v8, %v6863_v15  ;;  %v2095_v21 = vpop.f32.mrf.mxu0  ;;  %v7057_v15 = vadd.f32 %v6975_v46, %v1441_v36  ;;  %v2256_v28 = vmax.f32 %v2208_v42, 0.0  ;;  %v8360_v36 = vld [vmem:[#allocation13_spill] sm:$0xff] }
 0x1ea   : > { %2525 = vmatprep.subr.mxu1 %v8353_v25  ;;  %v2279_v30 = vmax.f32 %v2231_v52, 0.0  ;;  %v2232_v3 = vadd.f32 %v6789_v29, %v2172_v23  ;;  %v2173_v58 = vadd.f32 %v2095_v21, %v6951_v12  ;;  %4721 = vmatprep.mubr.msk.f32.mxu1 %vm2338_vm2, %v7035_v61  ;;  %v7054_v43 = vmax.f32 %v2254_v56, %v2278_v24  ;;  %v4741_v12 = vld [vmem:[%s8177_s3 + $0xe0] sm:$0xff]  ;;  %v4740_v24 = vld [vmem:[%s8177_s3 + $0xd8] sm:$0xff] }
 0x1eb   : > { %2526 = vmatpush1.msra.mxu1 %v4743_v19  ;;  %v2210_v7 = vadd.f32 %v6789_v29, %v2150_v31  ;;  %v2152_v0 = vadd.f32 %v8359_v59, %v6867_v27  ;;  %v2099_v18 = vpop.f32.mrf.mxu0  ;;  %v8361_v27 = vld [vmem:[#allocation56_spill] sm:$0xff]  ;;  %v2257_v42 = vmax.f32 %v2209_v4, 0.0  ;;  %v2211_v53 = vadd.f32 %v6791_v34, %v2151_v10  ;;  %v8362_v31 = vld [vmem:[#allocation79_spill] sm:$0xff] }
 0x1ec   : > { %2450 = vmatmul.mubr.f32.gmra.mxu1 %v7023_v40  ;;  %2527 = vmatprep.subr.mxu1 %v8353_v25  ;;  %v7067_v39 = vmax.f32 %v2255_v55, %v2279_v30  ;;  %v2280_v46 = vmax.f32 %v2232_v3, 0.0  ;;  %v2233_v37 = vadd.f32 %v6791_v34, %v2173_v58  ;;  %v2174_v11 = vadd.f32 %v2099_v18, %v6962_v63  ;;  %v8363_v55 = vld [vmem:[#allocation55_spill] sm:$0xff]  ;;  %v8364_v10 = vld [vmem:[#allocation80_spill] sm:$0xff]  ;;  %v1756_v30 = vpop.f32.mrf.mxu1 }
 0x1ed   : > { %2528 = vmatpush1.msra.mxu1 %v4742_v17  ;;  %v1443_v56 = vadd.f32 %v8361_v27, %v8360_v36  ;;  %v2153_v22 = vadd.f32 %v8362_v31, %v6870_v35  ;;  %v2101_v19 = vpop.f32.mrf.mxu0  ;;  %v7088_v35 = vadd.f32 %v7004_v20, %v8363_v55  ;;  %v2258_v4 = vmax.f32 %v2210_v7, 0.0  ;;  %v8366_v36 = vld [vmem:[#allocation14_spill] sm:$0xff]  ;;  %v8369_v55 = vld [vmem:[#allocation57_spill] sm:$0xff] }
 0x1ee   : > { %2529 = vmatprep.subr.mxu1 %v8353_v25  ;;  %v2281_v52 = vmax.f32 %v2233_v37, 0.0  ;;  %v2234_v63 = vadd.f32 %v6789_v29, %v2174_v11  ;;  %v2175_v23 = vadd.f32 %v2101_v19, %v6970_v41  ;;  %4722 = vmatprep.mubr.msk.f32.mxu1 %vm2338_vm2, %v7067_v39  ;;  %v7084_v6 = vmax.f32 %v2256_v28, %v2280_v46  ;;  %v4739_v41 = vld [vmem:[%s8177_s3 + $0xd0] sm:$0xff]  ;;  %v4738_v46 = vld [vmem:[%s8177_s3 + $0xc8] sm:$0xff]  ;;  %v1760_v19 = vpop.f32.mrf.mxu1 }
 0x1ef   : > { %2530 = vmatpush1.msra.mxu1 %v4741_v12  ;;  %v2212_v8 = vadd.f32 %v6789_v29, %v2152_v0  ;;  %v2154_v21 = vadd.f32 %v8364_v10, %v6874_v26  ;;  %v2105_v17 = vpop.f32.mrf.mxu0  ;;  %v7102_v7 = vadd.f32 %v1750_v14, %v1443_v56  ;;  %v2259_v26 = vmax.f32 %v2211_v53, 0.0  ;;  %v8365_v0 = vld [vmem:[#allocation82_spill] sm:$0xff]  ;;  %v8368_v53 = vld [vmem:[#allocation83_spill] sm:$0xff]  ;;  %v8370_v10 = vld [vmem:[#allocation85_spill] sm:$0xff] }
 0x1f0   : > { %2455 = vmatmul.mubr.f32.gmra.mxu1 %v7054_v43  ;;  %2531 = vmatprep.subr.mxu1 %v8353_v25  ;;  %v7098_v3 = vmax.f32 %v2257_v42, %v2281_v52  ;;  %v2282_v20 = vmax.f32 %v2234_v63, 0.0  ;;  %v2235_v58 = vadd.f32 %v6791_v34, %v2175_v23  ;;  %v2176_v28 = vadd.f32 %v2105_v17, %v6995_v54 }
 0x1f1   : > { %2532 = vmatpush1.msra.mxu1 %v4740_v24  ;;  %v2213_v59 = vadd.f32 %v6791_v34, %v2153_v22  ;;  %v2155_v18 = vadd.f32 %v8365_v0, %v6880_v60  ;;  %v2107_v12 = vpop.f32.mrf.mxu0  ;;  %v8367_v60 = vld [vmem:[#allocation58_spill] sm:$0xff]  ;;  %v2260_v56 = vmax.f32 %v2212_v8, 0.0  ;;  %v2214_v42 = vadd.f32 %v6789_v29, %v2154_v21 }
 0x1f2   : > { %2533 = vmatprep.subr.mxu1 %v8353_v25  ;;  %v2283_v37 = vmax.f32 %v2235_v58, 0.0  ;;  %v2236_v11 = vadd.f32 %v6789_v29, %v2176_v28  ;;  %v2177_v54 = vadd.f32 %v2107_v12, %v7010_v16  ;;  %4723 = vmatprep.mubr.msk.f32.mxu1 %vm2338_vm2, %v7098_v3  ;;  %v7115_v14 = vmax.f32 %v2258_v4, %v2282_v20  ;;  %v4737_v16 = vld [vmem:[%s8177_s3 + $0xc0] sm:$0xff]  ;;  %v1762_v12 = vpop.f32.mrf.mxu1 }
 0x1f3   : > { %2534 = vmatpush1.msra.mxu1 %v4739_v41  ;;  %v1445_v27 = vadd.f32 %v8367_v60, %v8366_v36  ;;  %v2156_v31 = vadd.f32 %v8368_v53, %v6884_v2  ;;  %v2111_v22 = vpop.f32.mrf.mxu0  ;;  %v1813_v2 = vadd.f32 %v1754_v33, %v8369_v55  ;;  %v2261_v4 = vmax.f32 %v2213_v59, 0.0  ;;  %v4736_v41 = vld [vmem:[%s8177_s3 + $0xb8] sm:$0xff]  ;;  %v8371_v59 = vld [vmem:[#allocation7_spill] sm:$0xff] }
 0x1f4   : > { %2460 = vmatmul.mubr.f32.gmra.mxu1 %v7084_v6  ;;  %2535 = vmatprep.subr.mxu1 %v8353_v25  ;;  %v7127_v24 = vmax.f32 %v2259_v26, %v2283_v37  ;;  %v2284_v52 = vmax.f32 %v2236_v11, 0.0  ;;  %v2237_v63 = vadd.f32 %v6791_v34, %v2177_v54  ;;  %v2178_v23 = vadd.f32 %v2111_v22, %v7041_v47  ;;  %v8372_v54 = vld [vmem:[#allocation15_spill] sm:$0xff] }
 0x1f5   : > { %2536 = vmatpush1.msra.mxu1 %v4738_v46  ;;  %v2215_v8 = vadd.f32 %v6791_v34, %v2155_v18  ;;  %v2157_v21 = vadd.f32 %v8370_v10, %v6888_v9  ;;  %v2113_v17 = vpop.f32.mrf.mxu0  ;;  %v1814_v28 = vadd.f32 %v1756_v30, %v1445_v27  ;;  %v2262_v9 = vmax.f32 %v2214_v42, 0.0 }
 0x1f6   : > { %2537 = vmatprep.subr.mxu1 %v8353_v25  ;;  %v2285_v20 = vmax.f32 %v2237_v63, 0.0  ;;  %v2238_v58 = vadd.f32 %v6789_v29, %v2178_v23  ;;  %v2179_v47 = vadd.f32 %v2113_v17, %v7057_v15  ;;  %4724 = vmatprep.mubr.msk.f32.mxu1 %vm2338_vm2, %v7127_v24  ;;  %v7143_v33 = vmax.f32 %v2260_v56, %v2284_v52  ;;  %v4735_v15 = vld [vmem:[%s8177_s3 + $0xb0] sm:$0xff] }
 0x1f7   : > { %2538 = vmatpush1.msra.mxu1 %v4737_v16  ;;  %v2216_v26 = vadd.f32 %v6789_v29, %v2156_v31  ;;  %v2158_v0 = vadd.f32 %v8371_v59, %v6895_v50  ;;  %v2117_v18 = vpop.f32.mrf.mxu0  ;;  %v8373_v50 = vld [vmem:[#allocation60_spill] sm:$0xff]  ;;  %v2263_v60 = vmax.f32 %v2215_v8, 0.0  ;;  %v2217_v27 = vadd.f32 %v6791_v34, %v2157_v21  ;;  %v8374_v56 = vld [vmem:[#allocation11_spill] sm:$0xff]  ;;  %v4734_v31 = vld [vmem:[%s8177_s3 + $0xa8] sm:$0xff]  ;;  %v1766_v21 = vpop.f32.mrf.mxu1 }
 0x1f8   : > { %2465 = vmatmul.mubr.f32.gmra.mxu1 %v7115_v14  ;;  %2539 = vmatprep.subr.mxu1 %v8353_v25  ;;  %v7153_v46 = vmax.f32 %v2261_v4, %v2285_v20  ;;  %v2286_v37 = vmax.f32 %v2238_v58, 0.0  ;;  %v2239_v30 = vadd.f32 %v6791_v34, %v2179_v47  ;;  %v2180_v11 = vadd.f32 %v2117_v18, %v7088_v35  ;;  %v8375_v63 = vld [vmem:[#allocation59_spill] sm:$0xff]  ;;  %v8376_v4 = vld [vmem:[#allocation16_spill] sm:$0xff] }
 0x1f9   : > { %2540 = vmatpush1.msra.mxu1 %v4736_v41  ;;  %v1447_v36 = vadd.f32 %v8373_v50, %v8372_v54  ;;  %v2159_v42 = vadd.f32 %v8374_v56, %v6899_v38  ;;  %v2119_v53 = vpop.f32.mrf.mxu0  ;;  %v1815_v38 = vadd.f32 %v1760_v19, %v8375_v63  ;;  %v2264_v23 = vmax.f32 %v2216_v26, 0.0  ;;  %v4732_v59 = vld [vmem:[%s8177_s3 + $0x98] sm:$0xff]  ;;  %v1768_v50 = vpop.f32.mrf.mxu1 }
 0x1fa   : > { %2541 = vmatprep.subr.mxu1 %v8353_v25  ;;  %v2287_v22 = vmax.f32 %v2239_v30, 0.0  ;;  %v2240_v35 = vadd.f32 %v6789_v29, %v2180_v11  ;;  %v2181_v16 = vadd.f32 %v2119_v53, %v7102_v7  ;;  %4725 = vmatprep.mubr.msk.f32.mxu1 %vm2338_vm2, %v7153_v46  ;;  %v7170_v52 = vmax.f32 %v2262_v9, %v2286_v37  ;;  %v4733_v7 = vld [vmem:[%s8177_s3 + $0xa0] sm:$0xff]  ;;  %v8378_v37 = vld [vmem:[#allocation62_spill] sm:$0xff] }
 0x1fb   : > { %2542 = vmatpush1.msra.mxu1 %v4735_v15  ;;  %v2218_v55 = vadd.f32 %v6789_v29, %v2158_v0  ;;  %v2160_v8 = vadd.f32 %v8376_v4, %v6903_v44  ;;  %v2123_v10 = vpop.f32.mrf.mxu0  ;;  %v1816_v58 = vadd.f32 %v1762_v12, %v1447_v36  ;;  %v2265_v47 = vmax.f32 %v2217_v27, 0.0  ;;  %v8377_v12 = vld [vmem:[#allocation17_spill] sm:$0xff] }
 0x1fc   : > { %2470 = vmatmul.mubr.f32.gmra.mxu1 %v7143_v33  ;;  %2543 = vmatprep.subr.mxu1 %v8353_v25  ;;  %v7181_v17 = vmax.f32 %v2263_v60, %v2287_v22  ;;  %v2288_v41 = vmax.f32 %v2240_v35, 0.0  ;;  %v2241_v19 = vadd.f32 %v6791_v34, %v2181_v16  ;;  %v2182_v20 = vadd.f32 %v2123_v10, %v1813_v2  ;;  %v4748_v35 = vld [vmem:[%s8177_s3 + $0x118] sm:$0xff] }
 0x1fd   : > { %2544 = vmatpush1.msra.mxu1 %v4734_v31  ;;  %v2219_v44 = vadd.f32 %v6791_v34, %v2159_v42  ;;  %v2161_v9 = vadd.f32 %v6846_v45, %v6910_v48  ;;  %v2125_v26 = vpop.f32.mrf.mxu0  ;;  %v1449_v45 = vadd.f32 %v8378_v37, %v8377_v12  ;;  %v2266_v48 = vmax.f32 %v2218_v55, 0.0  ;;  %v8379_v42 = vld [vmem:[#allocation61_spill] sm:$0xff] }
 0x1fe   : > { %2545 = vmatprep.subr.mxu1 %v8353_v25  ;;  %v7191_v0 = vmax.f32 %v2264_v23, %v2288_v41  ;;  %v2289_v18 = vmax.f32 %v2241_v19, 0.0  ;;  %v2242_v2 = vadd.f32 %v6789_v29, %v2182_v20  ;;  %v2183_v15 = vadd.f32 %v2125_v26, %v1814_v28  ;;  %4726 = vmatprep.mubr.msk.f32.mxu1 %vm2338_vm2, %v7181_v17  ;;  %v4731_v28 = vld [vmem:[%s8177_s3 + $0x90] sm:$0xff] }
 0x1ff   : > { %2546 = vmatpush1.msra.mxu1 %v4733_v7  ;;  %v2220_v30 = vadd.f32 %v6789_v29, %v2160_v8  ;;  %v2162_v11 = vadd.f32 %v6876_v32, %v6914_v57  ;;  %v2129_v54 = vpop.f32.mrf.mxu0  ;;  %v1817_v53 = vadd.f32 %v1766_v21, %v8379_v42  ;;  %v2267_v32 = vmax.f32 %v2219_v44, 0.0  ;;  %v4747_v8 = vld [vmem:[%s8177_s3 + $0x110] sm:$0xff] }
 0x200   : > { %2475 = vmatmul.mubr.f32.gmra.mxu1 %v7170_v52  ;;  %2547 = vmatprep.subr.mxu1 %v8353_v25  ;;  %v7206_v36 = vmax.f32 %v2265_v47, %v2289_v18  ;;  %v2290_v60 = vmax.f32 %v2242_v2, 0.0  ;;  %v2243_v27 = vadd.f32 %v6791_v34, %v2183_v15  ;;  %v2184_v56 = vadd.f32 %v2129_v54, %v1815_v38 }
 0x201   : > { %2548 = vmatpush1.msra.mxu1 %v4732_v59  ;;  %v2221_v57 = vadd.f32 %v6791_v34, %v2161_v9  ;;  %v2163_v31 = vadd.f32 %v6906_v51, %v6918_v62  ;;  %v2131_v22 = vpop.f32.mrf.mxu0  ;;  %v1818_v55 = vadd.f32 %v1768_v50, %v1449_v45  ;;  %v2268_v4 = vmax.f32 %v2220_v30, 0.0 }
 0x202   : > { %2549 = vmatprep.subr.mxu1 %v8353_v25  ;;  %v7217_v16 = vmax.f32 %v2266_v48, %v2290_v60  ;;  %v2291_v63 = vmax.f32 %v2243_v27, 0.0  ;;  %v2244_v38 = vadd.f32 %v6789_v29, %v2184_v56  ;;  %v2185_v23 = vadd.f32 %v2131_v22, %v1816_v58  ;;  %4727 = vmatprep.mubr.msk.f32.mxu1 %vm2338_vm2, %v7206_v36 }
 0x203   : > { %2550 = vmatpush1.msra.mxu1 %v4731_v28  ;;  %v2222_v51 = vadd.f32 %v6789_v29, %v2162_v11  ;;  %v2135_v62 = vpop.f32.mrf.mxu0  ;;  %v2269_v19 = vmax.f32 %v2221_v57, 0.0  ;;  %v2223_v20 = vadd.f32 %v6791_v34, %v2163_v31 }
 0x204   : > { %2480 = vmatmul.mubr.f32.gmra.mxu1 %v7191_v0  ;;  %2579 = vmatprep.subr.mxu1 %v8353_v25  ;;  %v2315_v10 = vmax.f32 %v2267_v32, %v2291_v63  ;;  %v2292_v7 = vmax.f32 %v2244_v38, 0.0  ;;  %v2245_v21 = vadd.f32 %v6791_v34, %v2185_v23  ;;  %v2186_v41 = vadd.f32 %v2135_v62, %v1817_v53 }
 0x205   : > { %2580 = vmatpush2.msra.mxu1 %v4748_v35  ;;  %v2137_v58 = vpop.f32.mrf.mxu0  ;;  %v2270_v59 = vmax.f32 %v2222_v51, 0.0  ;;  %v2271_v12 = vmax.f32 %v2223_v20, 0.0 }
 0x206   : > { %2581 = vmatprep.subr.mxu1 %v8353_v25  ;;  %v2316_v47 = vmax.f32 %v2268_v4, %v2292_v7  ;;  %v2293_v44 = vmax.f32 %v2245_v21, 0.0  ;;  %v2246_v9 = vadd.f32 %v6789_v29, %v2186_v41  ;;  %v2187_v26 = vadd.f32 %v2137_v58, %v1818_v55  ;;  %4728 = vmatprep.mubr.msk.f32.mxu1 %vm2338_vm2, %v2315_v10  ;;  %v7258_v29 = vld [vmem:[%s8178_s4 + $0x78] sm:$0xff]  ;;  %v7420_v58 = vld [vmem:[%s8178_s4 + $0x108] sm:$0xff] }
 0x207   : > { %2582 = vmatpush2.msra.mxu1 %v4747_v8  ;;  %5130 = vmatprep.subr.mxu0 %v7258_v29 }
 0x208   : > { %2485 = vmatmul.mubr.f32.gmra.mxu1 %v7217_v16  ;;  %v2317_v18 = vmax.f32 %v2269_v19, %v2293_v44  ;;  %v2294_v2 = vmax.f32 %v2246_v9, 0.0  ;;  %v2247_v15 = vadd.f32 %v6791_v34, %v2187_v26  ;;  %5131 = vmatpush3.msra.mxu0 %v7258_v29  ;;  %v7273_v34 = vld [vmem:[%s8178_s4 + $0x70] sm:$0xff]  ;;  %v7429_v9 = vld [vmem:[%s8178_s4 + $0x100] sm:$0xff] }
 0x209   : > { %5132 = vmatprep.subr.mxu0 %v7273_v34  ;;  %v7412_v19 = vld [vmem:[%s8178_s4 + $0x110] sm:$0xff] }
 0x20a   : > { %v2318_v37 = vmax.f32 %v2270_v59, %v2294_v2  ;;  %v2295_v45 = vmax.f32 %v2247_v15, 0.0  ;;  %4729 = vmatprep.mubr.msk.f32.mxu1 %vm2338_vm2, %v2317_v18  ;;  %5133 = vmatpush3.msra.mxu0 %v7273_v34  ;;  %v7438_v59 = vld [vmem:[%s8178_s4 + $0xf8] sm:$0xff]  ;;  %v7447_v15 = vld [vmem:[%s8178_s4 + $0xf0] sm:$0xff] }
 0x20c   : > { %2490 = vmatmul.mubr.f32.gmra.mxu1 %v2316_v47  ;;  %v2319_v48 = vmax.f32 %v2271_v12, %v2295_v45 }
 0x20e   : > { %4730 = vmatprep.mubr.msk.f32.mxu1 %vm2338_vm2, %v2319_v48 }
 0x210   : > { %2495 = vmatmul.mubr.f32.gmra.mxu1 %v2318_v37 }
 0x211   : > { %4749 = vmatprep.mubr.msk.f32.mxu1 %vm2338_vm2, %v6977_v5  ;;  %v7292_v5 = vld [vmem:[%s8178_s4 + $0x40] sm:$0xff] }
 0x212   : > { %5150 = vmatprep.subr.mxu1 %v7292_v5 }
 0x214   : > { %2584 = vmatmul.mubr.f32.vlgmr.msra.gmra.mxu1 %v6966_v13  ;;  %v7285_v13 = vld [vmem:[%s8178_s4 + $0x68] sm:$0xff] }
 0x215   : > { %4750 = vmatprep.mubr.msk.f32.mxu1 %vm2338_vm2, %v7006_v1  ;;  %5134 = vmatprep.subr.mxu0 %v7285_v13  ;;  %v7306_v1 = vld [vmem:[%s8178_s4 + $0x38] sm:$0xff] }
 0x216   : > { %5135 = vmatpush3.msra.mxu0 %v7285_v13  ;;  %5151 = vmatpush3.msra.mxu1 %v7292_v5 }
 0x217   : > { %5152 = vmatprep.subr.mxu1 %v7306_v1 }
 0x218   : > { %2589 = vmatmul.mubr.f32.gmra.mxu1 %v6991_v49  ;;  %v7299_v49 = vld [vmem:[%s8178_s4 + $0x60] sm:$0xff] }
 0x219   : > { %4751 = vmatprep.mubr.msk.f32.mxu1 %vm2338_vm2, %v7035_v61  ;;  %5136 = vmatprep.subr.mxu0 %v7299_v49  ;;  %v7320_v61 = vld [vmem:[%s8178_s4 + $0x28] sm:$0xff] }
 0x21a   : > { %5137 = vmatpush3.msra.mxu0 %v7299_v49  ;;  %5153 = vmatpush3.msra.mxu1 %v7306_v1 }
 0x21c   : > { %2594 = vmatmul.mubr.f32.gmra.mxu1 %v7023_v40  ;;  %v7313_v40 = vld [vmem:[%s8178_s4 + $0x30] sm:$0xff] }
 0x21d   : > { %4752 = vmatprep.mubr.msk.f32.mxu1 %vm2338_vm2, %v7067_v39  ;;  %5154 = vmatprep.subr.mxu1 %v7313_v40  ;;  %v7334_v39 = vld [vmem:[%s8178_s4 + $0x58] sm:$0xff] }
 0x21e   : > { %5155 = vmatpush3.msra.mxu1 %v7313_v40  ;;  %5138 = vmatprep.subr.mxu0 %v7334_v39 }
 0x21f   : > { %5156 = vmatprep.subr.mxu1 %v7320_v61  ;;  %5139 = vmatpush3.msra.mxu0 %v7334_v39 }
 0x220   : > { %2599 = vmatmul.mubr.f32.gmra.mxu1 %v7054_v43  ;;  %v7327_v43 = vld [vmem:[%s8178_s4 + $0x20] sm:$0xff] }
 0x221   : > { %4753 = vmatprep.mubr.msk.f32.mxu1 %vm2338_vm2, %v7098_v3  ;;  %5157 = vmatpush3.msra.mxu1 %v7320_v61  ;;  %v7348_v3 = vld [vmem:[%s8178_s4 + $0x10] sm:$0xff] }
 0x222   : > { %5158 = vmatprep.subr.mxu1 %v7327_v43 }
 0x223   : > { %5159 = vmatpush3.msra.mxu1 %v7327_v43 }
 0x224   : > { %2604 = vmatmul.mubr.f32.gmra.mxu1 %v7084_v6  ;;  %v7339_v6 = vld [vmem:[%s8178_s4 + $0x18] sm:$0xff] }
 0x225   : > { %4754 = vmatprep.mubr.msk.f32.mxu1 %vm2338_vm2, %v7127_v24  ;;  %5160 = vmatprep.subr.mxu1 %v7339_v6  ;;  %v7362_v24 = vld [vmem:[%s8178_s4] sm:$0xff] }
 0x226   : > { %5161 = vmatpush3.msra.mxu1 %v7339_v6 }
 0x227   : > { %5162 = vmatprep.subr.mxu1 %v7348_v3 }
 0x228   : > { %2609 = vmatmul.mubr.f32.gmra.mxu1 %v7115_v14  ;;  %v7355_v14 = vld [vmem:[%s8178_s4 + $0x8] sm:$0xff] }
 0x229   : > { %4755 = vmatprep.mubr.msk.f32.mxu1 %vm2338_vm2, %v7153_v46  ;;  %5163 = vmatpush3.msra.mxu1 %v7348_v3  ;;  %v7376_v46 = vld [vmem:[%s8178_s4 + $0x118] sm:$0xff] }
 0x22a   : > { %5164 = vmatprep.subr.mxu1 %v7355_v14 }
 0x22b   : > { %5165 = vmatpush3.msra.mxu1 %v7355_v14 }
 0x22c   : > { %2614 = vmatmul.mubr.f32.gmra.mxu1 %v7143_v33  ;;  %5166 = vmatprep.subr.mxu1 %v7362_v24  ;;  %v7369_v33 = vld [vmem:[%s8178_s4 + $0x50] sm:$0xff] }
 0x22d   : > { %4756 = vmatprep.mubr.msk.f32.mxu1 %vm2338_vm2, %v7181_v17  ;;  %5167 = vmatpush3.msra.mxu1 %v7362_v24  ;;  %v7389_v17 = vld [vmem:[%s8178_s4 + $0xd0] sm:$0xff] }
 0x22e   : > { %5140 = vmatprep.subr.mxu0 %v7369_v33  ;;  %5198 = vmatprep.subr.mxu1 %v7376_v46 }
 0x22f   : > { %5141 = vmatpush3.msra.mxu0 %v7369_v33 }
 0x230   : > { %2619 = vmatmul.mubr.f32.gmra.mxu1 %v7170_v52  ;;  %v7382_v52 = vld [vmem:[%s8178_s4 + $0x48] sm:$0xff] }
 0x231   : > { %4757 = vmatprep.mubr.msk.f32.mxu1 %vm2338_vm2, %v7206_v36  ;;  %5142 = vmatprep.subr.mxu0 %v7382_v52 }
 0x232   : > { %5143 = vmatpush3.msra.mxu0 %v7382_v52 }
 0x233   : > { %5174 = vmatprep.subr.mxu0 %v7389_v17 }
 0x234   : > { %2624 = vmatmul.mubr.f32.gmra.mxu1 %v7191_v0 }
 0x235   : > { %4758 = vmatprep.mubr.msk.f32.mxu1 %vm2338_vm2, %v2315_v10 }
 0x238   : > { %2629 = vmatmul.mubr.f32.gmra.mxu1 %v7217_v16 }
 0x239   : > { %4759 = vmatprep.mubr.msk.f32.mxu1 %vm2338_vm2, %v2317_v18 }
 0x23c   : > { %2634 = vmatmul.mubr.f32.gmra.mxu1 %v2316_v47 }
 0x23d   : > { %4760 = vmatprep.mubr.msk.f32.mxu1 %vm2338_vm2, %v2319_v48  ;;  %v7465_v48 = vld [vmem:[%s8178_s4 + $0xe0] sm:$0xff] }
 0x240   : > { %2639 = vmatmul.mubr.f32.gmra.mxu1 %v2318_v37  ;;  %v7458_v37 = vld [vmem:[%s8178_s4 + $0xe8] sm:$0xff] }
 0x2a3   : > { %v2441_v0 = vpop.f32.mrf.mxu1 }
 0x2a5   : > { %v2443_v30 = vpop.f32.mrf.mxu1 }
 0x2a6   : > { %v7474_v30 = vld [vmem:[%s8178_s4 + $0xd8] sm:$0xff] }
 0x2a8   : > { %v2446_v11 = vpop.f32.mrf.mxu1 }
 0x2aa   : > { %v2448_v54 = vpop.f32.mrf.mxu1 }
 0x2ac   : > { %v2451_v28 = vpop.f32.mrf.mxu1 }
 0x2ae   : > { %v2453_v50 = vpop.f32.mrf.mxu1 }
 0x2af   : > { %v5618_v50 = vld [vmem:[%s8178_s4 + $0x88] sm:$0xff] }
 0x2b0   : > { %v2456_v36 = vpop.f32.mrf.mxu1 }
 0x2b2   : > { %v2458_v60 = vpop.f32.mrf.mxu1 }
 0x2b4   : > { %v7392_v27 = vpop.f32.mrf.mxu1 }
 0x2b6   : > { %v2463_v56 = vpop.f32.mrf.mxu1 }
 0x2b8   : > { %v7394_v42 = vpop.f32.mrf.mxu1 }
 0x2ba   : > { %v2468_v53 = vpop.f32.mrf.mxu1 }
 0x2bc   : > { %v2471_v32 = vpop.f32.mrf.mxu1 }
 0x2be   : > { %v2473_v57 = vpop.f32.mrf.mxu1 }
 0x2bf   : > { %v7493_v57 = vld [vmem:[%s8178_s4 + $0xc8] sm:$0xff] }
 0x2c0   : > { %v7396_v31 = vpop.f32.mrf.mxu1 }
 0x2c2   : > { %v2478_v22 = vpop.f32.mrf.mxu1 }
 0x2c4   : > { %v7398_v35 = vpop.f32.mrf.mxu1 }
 0x2c6   : > { %v2483_v16 = vpop.f32.mrf.mxu1 }
 0x2c8   : > { %v7400_v63 = vpop.f32.mrf.mxu1 }
 0x2ca   : > { %v2488_v38 = vpop.f32.mrf.mxu1 }
 0x2cb   : > { %v7513_v38 = vld [vmem:[%s8178_s4 + $0xb8] sm:$0xff] }
 0x2cc   : > { %v7402_v23 = vpop.f32.mrf.mxu1 }
 0x2ce   : > { %v2493_v55 = vpop.f32.mrf.mxu1 }
 0x2cf   : > { %v7524_v55 = vld [vmem:[%s8178_s4 + $0xb0] sm:$0xff] }
 0x2d0   : > { %v7404_v4 = vpop.f32.mrf.mxu1 }
 0x2d2   : > { %v2498_v51 = vpop.f32.mrf.mxu1 }
 0x2d4   : > { %v2585_v62 = vpop.f32.mrf.mxu1 }
 0x2d5   : > { %v2644_v8 = vmax.f32 %v2441_v0, %v2585_v62  ;;  %v5619_v62 = vld [vmem:[%s8178_s4 + $0x80] sm:$0xff] }
 0x2d6   : > { %v2587_v10 = vpop.f32.mrf.mxu1 }
 0x2d7   : > { %5168 = vmatprep.mubr.msk.f32.mxu1 %vm2675_vm3, %v2644_v8  ;;  %v7538_v10 = vld [vmem:[%s8178_s4 + $0xa8] sm:$0xff] }
 0x2d8   : > { %v2590_v7 = vpop.f32.mrf.mxu1 }
 0x2d9   : > { %v7407_v21 = vmax.f32 %v2446_v11, %v2590_v7 }
 0x2da   : > { %v2592_v41 = vpop.f32.mrf.mxu1 }
 0x2db   : > { %5169 = vmatmul.mubr.msk.f32.vlgmr.msra.gmra.mxu1 %vm2675_vm3, %v7407_v21 }
 0x2dc   : > { %v2595_v20 = vpop.f32.mrf.mxu1  ;;  %5199 = vmatpush3.msra.mxu1 %v7376_v46 }
 0x2dd   : > { %v7422_v47 = vmax.f32 %v2451_v28, %v2595_v20  ;;  %5200 = vmatprep.subr.mxu1 %v7412_v19  ;;  %v7554_v20 = vld [vmem:[%s8178_s4 + $0xa0] sm:$0xff] }
 0x2de   : > { %v2597_v44 = vpop.f32.mrf.mxu1  ;;  %5201 = vmatpush3.msra.mxu1 %v7412_v19 }
 0x2df   : > { %5171 = vmatprep.mubr.msk.f32.mxu1 %vm2675_vm3, %v7422_v47  ;;  %5202 = vmatprep.subr.mxu1 %v7420_v58 }
 0x2e0   : > { %v2600_v26 = vpop.f32.mrf.mxu1  ;;  %5203 = vmatpush3.msra.mxu1 %v7420_v58 }
 0x2e1   : > { %v7440_v18 = vmax.f32 %v2456_v36, %v2600_v26  ;;  %5204 = vmatprep.subr.mxu1 %v7429_v9  ;;  %v7669_v26 = vld [vmem:[%s8178_s4 + $0x128] sm:$0xff] }
 0x2e2   : > { %v2602_v2 = vpop.f32.mrf.mxu1  ;;  %5205 = vmatpush3.msra.mxu1 %v7429_v9 }
 0x2e3   : > { %5172 = vmatmul.mubr.msk.f32.gmra.mxu1 %vm2675_vm3, %v7440_v18  ;;  %5206 = vmatprep.subr.mxu1 %v7438_v59  ;;  %v4804_v2 = vld [vmem:[%s8178_s4 + $0x120] sm:$0xff] }
 0x2e4   : > { %v7452_v12 = vpop.f32.mrf.mxu1  ;;  %5207 = vmatpush3.msra.mxu1 %v7438_v59 }
 0x2e5   : > { %5208 = vmatprep.subr.mxu1 %v7447_v15 }
 0x2e6   : > { %v2607_v45 = vpop.f32.mrf.mxu1  ;;  %5209 = vmatpush3.msra.mxu1 %v7447_v15 }
 0x2e7   : > { %5210 = vmatprep.subr.mxu1 %v7458_v37  ;;  %v4844_v45 = vld [vmem:[%s8180_s6 + $0xb0] sm:$0xff] }
 0x2e8   : > { %v7468_v0 = vpop.f32.mrf.mxu1  ;;  %5211 = vmatpush3.msra.mxu1 %v7458_v37 }
 0x2e9   : > { %5212 = vmatprep.subr.mxu1 %v7465_v48 }
 0x2ea   : > { %v2612_v11 = vpop.f32.mrf.mxu1  ;;  %5213 = vmatpush3.msra.mxu1 %v7465_v48 }
 0x2eb   : > { %5214 = vmatprep.subr.mxu1 %v7474_v30  ;;  %v4842_v11 = vld [vmem:[%s8180_s6 + $0xa0] sm:$0xff] }
 0x2ec   : > { %v2615_v54 = vpop.f32.mrf.mxu1  ;;  %5215 = vmatpush3.msra.mxu1 %v7474_v30 }
 0x2ed   : > { %v7480_v28 = vmax.f32 %v2471_v32, %v2615_v54  ;;  %5246 = vmatprep.subr.mxu1 %v5618_v50  ;;  %v3646_v54 = vld [vmem:[%s8180_s6 + $0x18] sm:$0xff] }
 0x2ee   : > { %v2617_v36 = vpop.f32.mrf.mxu1 }
 0x2ef   : > { %5144 = vmatprep.mubr.msk.f32.mxu0 %vm2675_vm3, %v7480_v28  ;;  %v4840_v36 = vld [vmem:[%s8180_s6 + $0x90] sm:$0xff] }
 0x2f0   : > { %v2620_v60 = vpop.f32.mrf.mxu1 }
 0x2f1   : > { %v7488_v56 = vmax.f32 %v7396_v31, %v2620_v60  ;;  %v7503_v31 = vld [vmem:[%s8178_s4 + $0xc0] sm:$0xff]  ;;  %v3644_v60 = vld [vmem:[%s8180_s6 + $0x8] sm:$0xff] }
 0x2f2   : > { %v2622_v53 = vpop.f32.mrf.mxu1 }
 0x2f3   : > { %5145 = vmatmul.mubr.msk.f32.vlgmr.msra.gmra.mxu0 %vm2675_vm3, %v7488_v56  ;;  %5216 = vmatprep.mubr.msk.f32.mxu1 %vm2675_vm3, %v7488_v56  ;;  %v3643_v53 = vld [vmem:[%s8180_s6] sm:$0xff] }
 0x2f4   : > { %5175 = vmatpush3.msra.mxu0 %v7389_v17  ;;  %v2625_v32 = vpop.f32.mrf.mxu1 }
 0x2f5   : > { %v7506_v22 = vmax.f32 %v7398_v35, %v2625_v32  ;;  %5176 = vmatprep.subr.mxu0 %v7493_v57 }
 0x2f6   : > { %5177 = vmatpush3.msra.mxu0 %v7493_v57  ;;  %v2627_v16 = vpop.f32.mrf.mxu1 }
 0x2f7   : > { %5178 = vmatprep.subr.mxu0 %v7503_v31  ;;  %5147 = vmatprep.mubr.msk.f32.mxu0 %vm2675_vm3, %v7506_v22 }
 0x2f8   : > { %5179 = vmatpush3.msra.mxu0 %v7503_v31  ;;  %5217 = vmatmul.mubr.msk.f32.vlgmr.msra.gmra.mxu1 %vm2675_vm3, %v7506_v22  ;;  %v2630_v35 = vpop.f32.mrf.mxu1 }
 0x2f9   : > { %5247 = vmatpush3.msra.mxu1 %v5618_v50  ;;  %v7527_v51 = vmax.f32 %v7400_v63, %v2630_v35  ;;  %5180 = vmatprep.subr.mxu0 %v7513_v38  ;;  %v3645_v50 = vld [vmem:[%s8180_s6 + $0x10] sm:$0xff] }
 0x2fa   : > { %5248 = vmatprep.subr.mxu1 %v5619_v62  ;;  %5181 = vmatpush3.msra.mxu0 %v7513_v38  ;;  %v2632_v8 = vpop.f32.mrf.mxu1 }
 0x2fb   : > { %5249 = vmatpush3.msra.mxu1 %v5619_v62  ;;  %5182 = vmatprep.subr.mxu0 %v7524_v55 }
 0x2fc   : > { %5250 = vmatprep.subr.mxu1 %v7258_v29  ;;  %5148 = vmatmul.mubr.msk.f32.gmra.mxu0 %vm2675_vm3, %v7527_v51  ;;  %v2635_v63 = vpop.f32.mrf.mxu1 }
 0x2fd   : > { %5183 = vmatpush3.msra.mxu0 %v7524_v55  ;;  %5219 = vmatprep.mubr.msk.f32.mxu1 %vm2675_vm3, %v7527_v51  ;;  %v7548_v7 = vmax.f32 %v7402_v23, %v2635_v63  ;;  %v7566_v23 = vld [vmem:[%s8178_s4 + $0x98] sm:$0xff] }
 0x2fe   : > { %5251 = vmatpush3.msra.mxu1 %v7258_v29  ;;  %5184 = vmatprep.subr.mxu0 %v7538_v10  ;;  %v2637_v41 = vpop.f32.mrf.mxu1 }
 0x2ff   : > { %5192 = vmatprep.mubr.msk.f32.mxu0 %vm2675_vm3, %v7407_v21  ;;  %5252 = vmatprep.subr.mxu1 %v7273_v34 }
 0x300   : > { %5185 = vmatpush3.msra.mxu0 %v7538_v10  ;;  %5253 = vmatpush3.msra.mxu1 %v7273_v34  ;;  %v7561_v29 = vpop.f32.mrf.mxu1  ;;  %v7578_v34 = vld [vmem:[%s8178_s4 + $0x90] sm:$0xff] }
 0x301   : > { %5186 = vmatprep.subr.mxu0 %v7554_v20  ;;  %5254 = vmatprep.subr.mxu1 %v7285_v13 }
 0x302   : > { %5187 = vmatpush3.msra.mxu0 %v7554_v20  ;;  %5220 = vmatmul.mubr.msk.f32.gmra.mxu1 %vm2675_vm3, %v7548_v7  ;;  %v2642_v44 = vpop.f32.mrf.mxu1 }
 0x303   : > { %5255 = vmatpush3.msra.mxu1 %v7285_v13  ;;  %5188 = vmatprep.subr.mxu0 %v7566_v23  ;;  %v7588_v13 = vld [vmem:[%s8178_s4 + $0x160] sm:$0xff] }
 0x304   : > { %5256 = vmatprep.subr.mxu1 %v7299_v49  ;;  %5264 = vmatprep.mubr.msk.f32.mxu1 %vm2675_vm3, %v7407_v21  ;;  %v7614_v21 = vmax.f32 %v7392_v27, %v7452_v12  ;;  %v4806_v27 = vld [vmem:[%s8178_s4 + $0x130] sm:$0xff]  ;;  %v7692_v12 = vmax.f32 %v7394_v42, %v7468_v0  ;;  %v4849_v42 = vld [vmem:[%s8180_s6 + $0xd8] sm:$0xff]  ;;  %v4843_v0 = vld [vmem:[%s8180_s6 + $0xa8] sm:$0xff] }
 0x305   : > { %5189 = vmatpush3.msra.mxu0 %v7566_v23  ;;  %5257 = vmatpush3.msra.mxu1 %v7299_v49  ;;  %v7600_v49 = vld [vmem:[%s8178_s4 + $0x158] sm:$0xff] }
 0x306   : > { %5190 = vmatprep.subr.mxu0 %v7578_v34  ;;  %5258 = vmatprep.subr.mxu1 %v7334_v39 }
 0x307   : > { %5191 = vmatpush3.msra.mxu0 %v7578_v34  ;;  %5259 = vmatpush3.msra.mxu1 %v7334_v39  ;;  %v7610_v39 = vld [vmem:[%s8178_s4 + $0x150] sm:$0xff] }
 0x308   : > { %5193 = vmatmul.mubr.msk.f32.vlgmr.msra.gmra.mxu0 %vm2675_vm3, %v7422_v47  ;;  %5222 = vmatprep.subr.mxu0 %v7588_v13 }
 0x309   : > { %5260 = vmatprep.subr.mxu1 %v7369_v33  ;;  %5195 = vmatprep.mubr.msk.f32.mxu0 %vm2675_vm3, %v7440_v18 }
 0x30a   : > { %5223 = vmatpush3.msra.mxu0 %v7588_v13  ;;  %5261 = vmatpush3.msra.mxu1 %v7369_v33  ;;  %v7629_v33 = vld [vmem:[%s8178_s4 + $0x148] sm:$0xff] }
 0x30b   : > { %5224 = vmatprep.subr.mxu0 %v7600_v49  ;;  %5262 = vmatprep.subr.mxu1 %v7382_v52 }
 0x30c   : > { %5225 = vmatpush3.msra.mxu0 %v7600_v49  ;;  %5263 = vmatpush3.msra.mxu1 %v7382_v52  ;;  %v7640_v52 = vld [vmem:[%s8178_s4 + $0x140] sm:$0xff] }
 0x30d   : > { %5196 = vmatmul.mubr.msk.f32.gmra.mxu0 %vm2675_vm3, %v7614_v21  ;;  %5226 = vmatprep.subr.mxu0 %v7610_v39 }
 0x30e   : > { %5265 = vmatmul.mubr.msk.f32.vlgmr.msra.gmra.mxu1 %vm2675_vm3, %v7422_v47  ;;  %5294 = vmatprep.subr.mxu1 %v7389_v17 }
 0x30f   : > { %5227 = vmatpush3.msra.mxu0 %v7610_v39  ;;  %5240 = vmatprep.mubr.msk.f32.mxu0 %vm2675_vm3, %v7422_v47 }
 0x310   : > { %5267 = vmatprep.mubr.msk.f32.mxu1 %vm2675_vm3, %v7440_v18  ;;  %5295 = vmatpush3.msra.mxu1 %v7389_v17  ;;  %v7652_v17 = vld [vmem:[%s8178_s4 + $0x138] sm:$0xff] }
 0x311   : > { %5228 = vmatprep.subr.mxu0 %v7629_v33  ;;  %5296 = vmatprep.subr.mxu1 %v7493_v57 }
 0x312   : > { %5229 = vmatpush3.msra.mxu0 %v7629_v33  ;;  %5297 = vmatpush3.msra.mxu1 %v7493_v57  ;;  %v4838_v57 = vld [vmem:[%s8180_s6 + $0x80] sm:$0xff] }
 0x313   : > { %5230 = vmatprep.subr.mxu0 %v7640_v52  ;;  %5268 = vmatmul.mubr.msk.f32.gmra.mxu1 %vm2675_vm3, %v7614_v21 }
 0x314   : > { %5298 = vmatprep.subr.mxu1 %v7503_v31  ;;  %5231 = vmatpush3.msra.mxu0 %v7640_v52 }
 0x315   : > { %5299 = vmatpush3.msra.mxu1 %v7503_v31  ;;  %5312 = vmatprep.mubr.msk.f32.mxu1 %vm2675_vm3, %v7488_v56 }
 0x316   : > { %5232 = vmatprep.subr.mxu0 %v7652_v17  ;;  %5300 = vmatprep.subr.mxu1 %v7513_v38 }
 0x317   : > { %5233 = vmatpush3.msra.mxu0 %v7652_v17  ;;  %5301 = vmatpush3.msra.mxu1 %v7513_v38 }
 0x318   : > { %5234 = vmatprep.subr.mxu0 %v4806_v27  ;;  %5302 = vmatprep.subr.mxu1 %v7524_v55 }
 0x319   : > { %5235 = vmatpush3.msra.mxu0 %v4806_v27  ;;  %5303 = vmatpush3.msra.mxu1 %v7524_v55 }
 0x31a   : > { %5236 = vmatprep.subr.mxu0 %v7669_v26  ;;  %5304 = vmatprep.subr.mxu1 %v7538_v10 }
 0x31b   : > { %5237 = vmatpush3.msra.mxu0 %v7669_v26  ;;  %5305 = vmatpush3.msra.mxu1 %v7538_v10 }
 0x31c   : > { %5238 = vmatprep.subr.mxu0 %v4804_v2  ;;  %5306 = vmatprep.subr.mxu1 %v7554_v20 }
 0x31d   : > { %5239 = vmatpush3.msra.mxu0 %v4804_v2  ;;  %5307 = vmatpush3.msra.mxu1 %v7554_v20 }
 0x31e   : > { %5241 = vmatmul.mubr.msk.f32.vlgmr.msra.gmra.mxu0 %vm2675_vm3, %v7440_v18  ;;  %5270 = vmatprep.subr.mxu0 %v7292_v5 }
 0x31f   : > { %5308 = vmatprep.subr.mxu1 %v7566_v23  ;;  %5243 = vmatprep.mubr.msk.f32.mxu0 %vm2675_vm3, %v7614_v21 }
 0x320   : > { %5271 = vmatpush3.msra.mxu0 %v7292_v5  ;;  %5309 = vmatpush3.msra.mxu1 %v7566_v23  ;;  %v2655_v5 = vmax.f32 %v7404_v4, %v7561_v29  ;;  %v3653_v4 = vld [vmem:[%s8180_s6 + $0x50] sm:$0xff] }
 0x321   : > { %5272 = vmatprep.subr.mxu0 %v7306_v1  ;;  %5310 = vmatprep.subr.mxu1 %v7578_v34 }
 0x322   : > { %5273 = vmatpush3.msra.mxu0 %v7306_v1  ;;  %5311 = vmatpush3.msra.mxu1 %v7578_v34  ;;  %v3658_v1 = vld [vmem:[%s8180_s6 + $0x78] sm:$0xff] }
 0x323   : > { %5244 = vmatmul.mubr.msk.f32.gmra.mxu0 %vm2675_vm3, %v7692_v12  ;;  %5274 = vmatprep.subr.mxu0 %v7313_v40 }
 0x324   : > { %5313 = vmatmul.mubr.msk.f32.vlgmr.msra.gmra.mxu1 %vm2675_vm3, %v7506_v22  ;;  %5342 = vmatprep.subr.mxu1 %v7588_v13 }
 0x325   : > { %5275 = vmatpush3.msra.mxu0 %v7313_v40  ;;  %5288 = vmatprep.mubr.msk.f32.mxu0 %vm2675_vm3, %v7480_v28  ;;  %v4853_v40 = vld [vmem:[%s8180_s6 + $0xf8] sm:$0xff] }
 0x326   : > { %5315 = vmatprep.mubr.msk.f32.mxu1 %vm2675_vm3, %v7527_v51  ;;  %5343 = vmatpush3.msra.mxu1 %v7588_v13  ;;  %v4841_v28 = vld [vmem:[%s8180_s6 + $0x98] sm:$0xff] }
 0x327   : > { %5276 = vmatprep.subr.mxu0 %v7320_v61  ;;  %5344 = vmatprep.subr.mxu1 %v7600_v49 }
 0x328   : > { %5277 = vmatpush3.msra.mxu0 %v7320_v61  ;;  %5345 = vmatpush3.msra.mxu1 %v7600_v49  ;;  %v3657_v61 = vld [vmem:[%s8180_s6 + $0x70] sm:$0xff] }
 0x329   : > { %5278 = vmatprep.subr.mxu0 %v7327_v43  ;;  %5316 = vmatmul.mubr.msk.f32.gmra.mxu1 %vm2675_vm3, %v7548_v7 }
 0x32a   : > { %5346 = vmatprep.subr.mxu1 %v7610_v39  ;;  %5279 = vmatpush3.msra.mxu0 %v7327_v43  ;;  %v4852_v43 = vld [vmem:[%s8180_s6 + $0xf0] sm:$0xff] }
 0x32b   : > { %5347 = vmatpush3.msra.mxu1 %v7610_v39  ;;  %5360 = vmatprep.mubr.msk.f32.mxu1 %vm2675_vm3, %v7506_v22 }
 0x32c   : > { %5280 = vmatprep.subr.mxu0 %v7339_v6  ;;  %5348 = vmatprep.subr.mxu1 %v7629_v33 }
 0x32d   : > { %5281 = vmatpush3.msra.mxu0 %v7339_v6  ;;  %5349 = vmatpush3.msra.mxu1 %v7629_v33  ;;  %v3656_v6 = vld [vmem:[%s8180_s6 + $0x68] sm:$0xff] }
 0x32e   : > { %5282 = vmatprep.subr.mxu0 %v7348_v3  ;;  %5350 = vmatprep.subr.mxu1 %v7640_v52 }
 0x32f   : > { %5283 = vmatpush3.msra.mxu0 %v7348_v3  ;;  %5351 = vmatpush3.msra.mxu1 %v7640_v52  ;;  %v4851_v3 = vld [vmem:[%s8180_s6 + $0xe8] sm:$0xff] }
 0x330   : > { %5284 = vmatprep.subr.mxu0 %v7355_v14  ;;  %5352 = vmatprep.subr.mxu1 %v7652_v17 }
 0x331   : > { %5285 = vmatpush3.msra.mxu0 %v7355_v14  ;;  %5353 = vmatpush3.msra.mxu1 %v7652_v17  ;;  %v3655_v14 = vld [vmem:[%s8180_s6 + $0x60] sm:$0xff] }
 0x332   : > { %5286 = vmatprep.subr.mxu0 %v7362_v24  ;;  %5354 = vmatprep.subr.mxu1 %v4806_v27 }
 0x333   : > { %5287 = vmatpush3.msra.mxu0 %v7362_v24  ;;  %5355 = vmatpush3.msra.mxu1 %v4806_v27  ;;  %v4850_v24 = vld [vmem:[%s8180_s6 + $0xe0] sm:$0xff] }
 0x334   : > { %5289 = vmatmul.mubr.msk.f32.vlgmr.msra.gmra.mxu0 %vm2675_vm3, %v7488_v56  ;;  %5318 = vmatprep.subr.mxu0 %v7376_v46  ;;  %v4839_v56 = vld [vmem:[%s8180_s6 + $0x88] sm:$0xff] }
 0x335   : > { %5356 = vmatprep.subr.mxu1 %v7669_v26  ;;  %5291 = vmatprep.mubr.msk.f32.mxu0 %vm2675_vm3, %v7506_v22 }
 0x336   : > { %5319 = vmatpush3.msra.mxu0 %v7376_v46  ;;  %5357 = vmatpush3.msra.mxu1 %v7669_v26  ;;  %v3654_v46 = vld [vmem:[%s8180_s6 + $0x58] sm:$0xff] }
 0x337   : > { %5320 = vmatprep.subr.mxu0 %v7412_v19  ;;  %5358 = vmatprep.subr.mxu1 %v4804_v2 }
 0x338   : > { %5321 = vmatpush3.msra.mxu0 %v7412_v19  ;;  %5359 = vmatpush3.msra.mxu1 %v4804_v2  ;;  %v4848_v19 = vld [vmem:[%s8180_s6 + $0xd0] sm:$0xff] }
 0x339   : > { %5292 = vmatmul.mubr.msk.f32.gmra.mxu0 %vm2675_vm3, %v7527_v51  ;;  %5322 = vmatprep.subr.mxu0 %v7420_v58 }
 0x33a   : > { %5361 = vmatmul.mubr.msk.f32.vlgmr.msra.gmra.mxu1 %vm2675_vm3, %v7527_v51  ;;  %5323 = vmatpush3.msra.mxu0 %v7420_v58  ;;  %v3652_v58 = vld [vmem:[%s8180_s6 + $0x48] sm:$0xff] }
 0x33b   : > { %5336 = vmatprep.mubr.msk.f32.mxu0 %vm2675_vm3, %v7422_v47  ;;  %5363 = vmatprep.mubr.msk.f32.mxu1 %vm2675_vm3, %v7548_v7  ;;  %v4847_v47 = vld [vmem:[%s8180_s6 + $0xc8] sm:$0xff] }
 0x33c   : > { %5324 = vmatprep.subr.mxu0 %v7429_v9  ;;  %5404 = vmatprep.subr.mxu1 %v4853_v40 }
 0x33d   : > { %5325 = vmatpush3.msra.mxu0 %v7429_v9  ;;  %5405 = vmatpush3.msra.mxu1 %v4853_v40  ;;  %v3651_v9 = vld [vmem:[%s8180_s6 + $0x40] sm:$0xff] }
 0x33e   : > { %5326 = vmatprep.subr.mxu0 %v7438_v59  ;;  %5364 = vmatmul.mubr.msk.f32.gmra.mxu1 %vm2675_vm3, %v2655_v5 }
 0x33f   : > { %5327 = vmatpush3.msra.mxu0 %v7438_v59  ;;  %5406 = vmatprep.subr.mxu1 %v4852_v43  ;;  %v4846_v59 = vld [vmem:[%s8180_s6 + $0xc0] sm:$0xff] }
 0x340   : > { %5328 = vmatprep.subr.mxu0 %v7447_v15  ;;  %5407 = vmatpush3.msra.mxu1 %v4852_v43 }
 0x341   : > { %5329 = vmatpush3.msra.mxu0 %v7447_v15  ;;  %5408 = vmatprep.subr.mxu1 %v4851_v3  ;;  %v4845_v15 = vld [vmem:[%s8180_s6 + $0xb8] sm:$0xff] }
 0x342   : > { %5330 = vmatprep.subr.mxu0 %v7458_v37  ;;  %5409 = vmatpush3.msra.mxu1 %v4851_v3 }
 0x343   : > { %5331 = vmatpush3.msra.mxu0 %v7458_v37  ;;  %5410 = vmatprep.subr.mxu1 %v4850_v24  ;;  %v3649_v37 = vld [vmem:[%s8180_s6 + $0x30] sm:$0xff] }
 0x344   : > { %5332 = vmatprep.subr.mxu0 %v7465_v48  ;;  %5411 = vmatpush3.msra.mxu1 %v4850_v24 }
 0x345   : > { %5333 = vmatpush3.msra.mxu0 %v7465_v48  ;;  %5412 = vmatprep.subr.mxu1 %v4849_v42  ;;  %v3648_v48 = vld [vmem:[%s8180_s6 + $0x28] sm:$0xff] }
 0x346   : > { %5334 = vmatprep.subr.mxu0 %v7474_v30  ;;  %5413 = vmatpush3.msra.mxu1 %v4849_v42 }
 0x347   : > { %5335 = vmatpush3.msra.mxu0 %v7474_v30  ;;  %5414 = vmatprep.subr.mxu1 %v4848_v19  ;;  %v3647_v30 = vld [vmem:[%s8180_s6 + $0x20] sm:$0xff] }
 0x348   : > { %5337 = vmatmul.mubr.msk.f32.vlgmr.msra.gmra.mxu0 %vm2675_vm3, %v7440_v18  ;;  %5366 = vmatprep.subr.mxu0 %v3658_v1  ;;  %v3650_v18 = vld [vmem:[%s8180_s6 + $0x38] sm:$0xff] }
 0x349   : > { %5339 = vmatprep.mubr.msk.f32.mxu0 %vm2675_vm3, %v7614_v21  ;;  %5367 = vmatpush3.msra.mxu0 %v3658_v1 }
 0x34a   : > { %5368 = vmatprep.subr.mxu0 %v3657_v61  ;;  %5415 = vmatpush3.msra.mxu1 %v4848_v19 }
 0x34b   : > { %5369 = vmatpush3.msra.mxu0 %v3657_v61  ;;  %5416 = vmatprep.subr.mxu1 %v4847_v47 }
 0x34c   : > { %5340 = vmatmul.mubr.msk.f32.gmra.mxu0 %vm2675_vm3, %v7692_v12  ;;  %5370 = vmatprep.subr.mxu0 %v3656_v6 }
 0x34d   : > { %5371 = vmatpush3.msra.mxu0 %v3656_v6  ;;  %5417 = vmatpush3.msra.mxu1 %v4847_v47 }
 0x34e   : > { %5372 = vmatprep.subr.mxu0 %v3655_v14  ;;  %5418 = vmatprep.subr.mxu1 %v4846_v59 }
 0x34f   : > { %5373 = vmatpush3.msra.mxu0 %v3655_v14  ;;  %5419 = vmatpush3.msra.mxu1 %v4846_v59 }
 0x350   : > { %5374 = vmatprep.subr.mxu0 %v3654_v46  ;;  %5420 = vmatprep.subr.mxu1 %v4845_v15 }
 0x351   : > { %5375 = vmatpush3.msra.mxu0 %v3654_v46  ;;  %5421 = vmatpush3.msra.mxu1 %v4845_v15 }
 0x352   : > { %5376 = vmatprep.subr.mxu0 %v3653_v4  ;;  %5422 = vmatprep.subr.mxu1 %v4844_v45 }
 0x353   : > { %5377 = vmatpush3.msra.mxu0 %v3653_v4  ;;  %5423 = vmatpush3.msra.mxu1 %v4844_v45 }
 0x354   : > { %5378 = vmatprep.subr.mxu0 %v3652_v58  ;;  %5424 = vmatprep.subr.mxu1 %v4843_v0 }
 0x355   : > { %5379 = vmatpush3.msra.mxu0 %v3652_v58  ;;  %5425 = vmatpush3.msra.mxu1 %v4843_v0 }
 0x356   : > { %5380 = vmatprep.subr.mxu0 %v3651_v9  ;;  %5426 = vmatprep.subr.mxu1 %v4842_v11 }
 0x357   : > { %5381 = vmatpush3.msra.mxu0 %v3651_v9  ;;  %5427 = vmatpush3.msra.mxu1 %v4842_v11 }
 0x358   : > { %5382 = vmatprep.subr.mxu0 %v3650_v18  ;;  %5428 = vmatprep.subr.mxu1 %v4841_v28 }
 0x359   : > { %5383 = vmatpush3.msra.mxu0 %v3650_v18  ;;  %5429 = vmatpush3.msra.mxu1 %v4841_v28  ;;  %v4817_v28 = vld [vmem:[%s8179_s5] ss:$0 sm:$0xff] }
 0x35a   : > { %5384 = vmatprep.subr.mxu0 %v3649_v37  ;;  %5430 = vmatprep.subr.mxu1 %v4840_v36 }
 0x35b   : > { %5385 = vmatpush3.msra.mxu0 %v3649_v37  ;;  %5431 = vmatpush3.msra.mxu1 %v4840_v36 }
 0x35c   : > { %5386 = vmatprep.subr.mxu0 %v3648_v48  ;;  %5432 = vmatprep.subr.mxu1 %v4839_v56 }
 0x35d   : > { %5387 = vmatpush3.msra.mxu0 %v3648_v48  ;;  %5433 = vmatpush3.msra.mxu1 %v4839_v56 }
 0x35e   : > { %5388 = vmatprep.subr.mxu0 %v3647_v30  ;;  %5434 = vmatprep.subr.mxu1 %v4838_v57 }
 0x35f   : > { %5389 = vmatpush3.msra.mxu0 %v3647_v30  ;;  %5435 = vmatpush3.msra.mxu1 %v4838_v57 }
 0x360   : > { %5390 = vmatprep.subr.mxu0 %v3646_v54  ;;  %5461 = vmatprep.subr.mxu1 %v8353_v25 }
 0x361   : > { %5391 = vmatpush3.msra.mxu0 %v3646_v54 }
 0x362   : > { %5392 = vmatprep.subr.mxu0 %v3645_v50 }
 0x363   : > { %5393 = vmatpush3.msra.mxu0 %v3645_v50 }
 0x364   : > { %5394 = vmatprep.subr.mxu0 %v3644_v60 }
 0x365   : > { %5395 = vmatpush3.msra.mxu0 %v3644_v60 }
 0x366   : > { %5396 = vmatprep.subr.mxu0 %v3643_v53 }
 0x367   : > { %5397 = vmatpush3.msra.mxu0 %v3643_v53 }
 0x368   : > { %5442 = vmatprep.subr.mxu0 %v8353_v25 }
 0x39b   : > { %v5170_v32 = vpop.f32.mrf.mxu1 }
 0x39d   : > { %v2851_v22 = vpop.f32.mrf.mxu1 }
 0x3a3   : > { %v5173_v16 = vpop.f32.mrf.mxu1 }
 0x3a5   : > { %v2861_v55 = vpop.f32.mrf.mxu1 }
 0x3b3   : > { %v5146_v31 = vpop.f32.mrf.mxu0 }
 0x3b4   : > { %v2857_v5 = vadd.f32 %v5170_v32, %v5146_v31 }
 0x3b5   : > { %v2754_v38 = vpop.f32.mrf.mxu0 }
 0x3b6   : > { %v2852_v12 = vadd.f32 %v2851_v22, %v2754_v38 }
 0x3b8   : > { %v5218_v51 = vpop.f32.mrf.mxu1 }
 0x3ba   : > { %v3051_v10 = vpop.f32.mrf.mxu1 }
 0x3bc   : > { %v5149_v35 = vpop.f32.mrf.mxu0 }
 0x3bd   : > { %v2867_v46 = vadd.f32 %v5173_v16, %v5149_v35 }
 0x3be   : > { %v2764_v62 = vpop.f32.mrf.mxu0 }
 0x3bf   : > { %v2862_v6 = vadd.f32 %v2861_v55, %v2764_v62 }
 0x3c2   : > { %v5221_v63 = vpop.f32.mrf.mxu1 }
 0x3c4   : > { %v3061_v41 = vpop.f32.mrf.mxu1 }
 0x3c8   : > { %v5194_v8 = vpop.f32.mrf.mxu0 }
 0x3c9   : > { %v2969_v3 = vadd.f32 %v5194_v8, %v2857_v5 }
 0x3ca   : > { %v2949_v7 = vpop.f32.mrf.mxu0 }
 0x3cb   : > { %v2968_v1 = vadd.f32 %v2949_v7, %v2852_v12  ;;  %v3071_v59 = vadd.f32 %v5218_v51, %v2969_v3  ;;  %v4858_v3 = vld [vmem:[%s8181_s7 + $0x60] sm:$0xff] }
 0x3cd   : > { %v5197_v20 = vpop.f32.mrf.mxu0  ;;  %v3070_v4 = vadd.f32 %v3051_v10, %v2968_v1 }
 0x3ce   : > { %v5266_v29 = vpop.f32.mrf.mxu1  ;;  %v2971_v9 = vadd.f32 %v5197_v20, %v2867_v46  ;;  %v3853_v46 = vld [vmem:[%s8181_s7 + $0x18] sm:$0xff] }
 0x3cf   : > { %v2959_v23 = vpop.f32.mrf.mxu0 }
 0x3d0   : > { %v3257_v44 = vpop.f32.mrf.mxu1  ;;  %v2970_v42 = vadd.f32 %v2959_v23, %v2862_v6  ;;  %v3073_v53 = vadd.f32 %v5221_v63, %v2971_v9  ;;  %v3855_v6 = vld [vmem:[%s8181_s7 + $0x28] sm:$0xff]  ;;  %v3850_v9 = vld [vmem:[%s8181_s7] sm:$0xff] }
 0x3d2   : > { %v3072_v11 = vadd.f32 %v3061_v41, %v2970_v42  ;;  %v4856_v42 = vld [vmem:[%s8181_s7 + $0x50] sm:$0xff] }
 0x3d3   : > { %v5269_v13 = vpop.f32.mrf.mxu1 }
 0x3d5   : > { %v3267_v39 = vpop.f32.mrf.mxu1 }
 0x3de   : > { %v5242_v34 = vpop.f32.mrf.mxu0 }
 0x3df   : > { %v3173_v30 = vadd.f32 %v5242_v34, %v3071_v59 }
 0x3e0   : > { %v3153_v49 = vpop.f32.mrf.mxu0 }
 0x3e1   : > { %v3172_v18 = vadd.f32 %v3153_v49, %v3070_v4  ;;  %v3184_v55 = vadd.f32 %v4817_v28, %v3173_v30  ;;  %v3852_v4 = vld [vmem:[%s8181_s7 + $0x10] sm:$0xff] }
 0x3e2   : > { %v4870_v30 = vld [vmem:[%s8181_s7 + $0xb0] sm:$0xff] }
 0x3e3   : > { %v5245_v21 = vpop.f32.mrf.mxu0  ;;  %v3183_v56 = vadd.f32 %v4817_v28, %v3172_v18 }
 0x3e4   : > { %v5314_v33 = vpop.f32.mrf.mxu1  ;;  %v3175_v51 = vadd.f32 %v5245_v21, %v3073_v53  ;;  %v4861_v21 = vld [vmem:[%s8181_s7 + $0x78] sm:$0xff] }
 0x3e5   : > { %v3163_v52 = vpop.f32.mrf.mxu0  ;;  %v3187_v41 = vmax.f32 %v3183_v56, 0.0  ;;  %v4877_v56 = vld [vmem:[%s8181_s7 + $0xe0] sm:$0xff] }
 0x3e6   : > { %v3427_v17 = vpop.f32.mrf.mxu1  ;;  %v3174_v57 = vadd.f32 %v3163_v52, %v3072_v11  ;;  %v3186_v49 = vadd.f32 %v4817_v28, %v3175_v51  ;;  %v4880_v11 = vld [vmem:[%s8181_s7 + $0xf8] sm:$0xff]  ;;  %v4874_v51 = vld [vmem:[%s8181_s7 + $0xc8] sm:$0xff] }
 0x3e8   : > { %v3185_v23 = vadd.f32 %v4817_v28, %v3174_v57  ;;  %v3190_v12 = vmax.f32 %v3186_v49, 0.0  ;;  %v4194_v49 = vld [vmem:[%s8183_s9 + $0x28] sm:$0xff] }
 0x3e9   : > { %v5317_v26 = vpop.f32.mrf.mxu1 }
 0x3eb   : > { %v3437_v40 = vpop.f32.mrf.mxu1 }
 0x3f4   : > { %v5290_v27 = vpop.f32.mrf.mxu0 }
 0x3f5   : > { %v3348_v43 = vadd.f32 %v5290_v27, %v5266_v29  ;;  %v3857_v27 = vld [vmem:[%s8181_s7 + $0x38] sm:$0xff] }
 0x3f6   : > { %v3342_v2 = vpop.f32.mrf.mxu0 }
 0x3f7   : > { %v3343_v24 = vadd.f32 %v3342_v2, %v3257_v44  ;;  %v3447_v47 = vadd.f32 %v5314_v33, %v3348_v43  ;;  %v4859_v43 = vld [vmem:[%s8181_s7 + $0x68] sm:$0xff] }
 0x3f9   : > { %v5293_v61 = vpop.f32.mrf.mxu0  ;;  %v3446_v0 = vadd.f32 %v3427_v17, %v3343_v24  ;;  %v4857_v24 = vld [vmem:[%s8181_s7 + $0x58] sm:$0xff] }
 0x3fa   : > { %v5362_v14 = vpop.f32.mrf.mxu1  ;;  %v3358_v58 = vadd.f32 %v5293_v61, %v5269_v13  ;;  %v3188_v13 = vmax.f32 %v3184_v55, 0.0  ;;  %v3856_v61 = vld [vmem:[%s8181_s7 + $0x30] sm:$0xff]  ;;  %v4864_v55 = vld [vmem:[%s8181_s7 + $0x80] sm:$0xff] }
 0x3fb   : > { %v3352_v19 = vpop.f32.mrf.mxu0 }
 0x3fc   : > { %v3608_v15 = vpop.f32.mrf.mxu1  ;;  %v3353_v45 = vadd.f32 %v3352_v19, %v3267_v39  ;;  %v3449_v60 = vadd.f32 %v5317_v26, %v3358_v58  ;;  %v3189_v26 = vmax.f32 %v3185_v23, 0.0  ;;  %v4855_v19 = vld [vmem:[%s8181_s7 + $0x48] sm:$0xff]  ;;  %v4854_v58 = vld [vmem:[%s8181_s7 + $0x40] sm:$0xff]  ;;  %v4199_v23 = vld [vmem:[%s8183_s9 + $0x50] sm:$0xff] }
 0x3fe   : > { %v5365_v32 = vpop.f32.mrf.mxu1  ;;  %v3448_v35 = vadd.f32 %v3437_v40, %v3353_v45  ;;  %v4860_v40 = vld [vmem:[%s8181_s7 + $0x70] sm:$0xff] }
 0x400   : > { %v3618_v20 = vpop.f32.mrf.mxu1 }
 0x408   : > { %v5338_v37 = vpop.f32.mrf.mxu0 }
 0x409   : > { %v3536_v48 = vadd.f32 %v5338_v37, %v3447_v47  ;;  %v3851_v47 = vld [vmem:[%s8181_s7 + $0x8] sm:$0xff]  ;;  %v4871_v37 = vld [vmem:[%s8181_s7 + $0xb8] sm:$0xff] }
 0x40a   : > { %v3516_v54 = vpop.f32.mrf.mxu0 }
 0x40b   : > { %v3628_v50 = vadd.f32 %v5362_v14, %v3536_v48  ;;  %v3535_v36 = vadd.f32 %v3516_v54, %v3446_v0  ;;  %v3854_v14 = vld [vmem:[%s8181_s7 + $0x20] sm:$0xff]  ;;  %v4869_v54 = vld [vmem:[%s8181_s7 + $0xa8] sm:$0xff] }
 0x40c   : > { %v5341_v31 = vpop.f32.mrf.mxu0 }
 0x40d   : > { %v3632_v22 = vadd.f32 %v4817_v28, %v3628_v50  ;;  %v3627_v16 = vadd.f32 %v3608_v15, %v3535_v36  ;;  %v3538_v38 = vadd.f32 %v5341_v31, %v3449_v60  ;;  %v4868_v50 = vld [vmem:[%s8181_s7 + $0xa0] sm:$0xff]  ;;  %v4878_v36 = vld [vmem:[%s8181_s7 + $0xe8] sm:$0xff]  ;;  %v4867_v60 = vld [vmem:[%s8181_s7 + $0x98] sm:$0xff] }
 0x40e   : > { %v3526_v62 = vpop.f32.mrf.mxu0  ;;  %v4876_v31 = vld [vmem:[%s8181_s7 + $0xd8] sm:$0xff] }
 0x40f   : > { %v3631_v8 = vadd.f32 %v4817_v28, %v3627_v16  ;;  %v3630_v10 = vadd.f32 %v5365_v32, %v3538_v38  ;;  %v3537_v7 = vadd.f32 %v3526_v62, %v3448_v35  ;;  %v3636_v29 = vmax.f32 %v3632_v22, 0.0  ;;  %v4866_v32 = vld [vmem:[%s8181_s7 + $0x90] sm:$0xff]  ;;  %v4865_v22 = vld [vmem:[%s8181_s7 + $0x88] sm:$0xff] }
 0x410   : > { %v4875_v16 = vld [vmem:[%s8181_s7 + $0xd0] sm:$0xff] }
 0x411   : > { %v3635_v44 = vmax.f32 %v3631_v8, 0.0  ;;  %v3634_v34 = vadd.f32 %v4817_v28, %v3630_v10  ;;  %v3629_v63 = vadd.f32 %v3618_v20, %v3537_v7  ;;  %v3640_v52 = vmax.f32 %v3188_v13, %v3636_v29  ;;  %v4873_v8 = vld [vmem:[%s8181_s7 + $0xc0] sm:$0xff]  ;;  %v4203_v7 = vld [vmem:[%s8183_s9 + $0x70] sm:$0xff]  ;;  %v4200_v29 = vld [vmem:[%s8183_s9 + $0x58] sm:$0xff] }
 0x412   : > { %v4201_v20 = vld [vmem:[%s8183_s9 + $0x60] sm:$0xff]  ;;  %v4195_v13 = vld [vmem:[%s8183_s9 + $0x30] sm:$0xff] }
 0x413   : > { %v3633_v39 = vadd.f32 %v4817_v28, %v3629_v63  ;;  %v3639_v33 = vmax.f32 %v3187_v41, %v3635_v44  ;;  %v3638_v17 = vmax.f32 %v3634_v34, 0.0  ;;  %v4879_v28 = vld [vmem:[%s8181_s7 + $0xf0] sm:$0xff]  ;;  %v4202_v41 = vld [vmem:[%s8183_s9 + $0x68] sm:$0xff]  ;;  %v4197_v34 = vld [vmem:[%s8183_s9 + $0x40] sm:$0xff] }
 0x414   : > { %v4198_v44 = vld [vmem:[%s8183_s9 + $0x48] sm:$0xff]  ;;  %v4196_v63 = vld [vmem:[%s8183_s9 + $0x38] sm:$0xff] }
 0x415   : > { %v3637_v2 = vmax.f32 %v3633_v39, 0.0  ;;  %5398 = vmatprep.mubr.f32.mxu0 %v3639_v33  ;;  %5436 = vmatprep.mubr.f32.mxu1 %v3639_v33  ;;  %v3642_v1 = vmax.f32 %v3190_v12, %v3638_v17  ;;  %v4193_v39 = vld [vmem:[%s8183_s9 + $0x20] sm:$0xff]  ;;  %v4192_v33 = vld [vmem:[%s8183_s9 + $0x18] sm:$0xff]  ;;  %v4190_v17 = vld [vmem:[%s8183_s9 + $0x8] sm:$0xff] }
 0x416   : > { %5399 = vmatmul.mubr.f32.vlgmr.msra.gmra.mxu0 %v3640_v52  ;;  %5437 = vmatmul.mubr.f32.vlgmr.msra.gmra.mxu1 %v3640_v52  ;;  %v4191_v52 = vld [vmem:[%s8183_s9 + $0x10] sm:$0xff]  ;;  %v4293_v12 = vld [vmem:[%s8185_s11 + $0x38] sm:$0xff] }
 0x417   : > { %v3641_v5 = vmax.f32 %v3189_v26, %v3637_v2  ;;  %5443 = vmatpush3.msra.mxu0 %v4861_v21  ;;  %5462 = vmatpush3.msra.mxu1 %v3857_v27  ;;  %v4189_v21 = vld [vmem:[%s8183_s9] sm:$0xff]  ;;  %v4296_v27 = vld [vmem:[%s8185_s11 + $0x50] sm:$0xf]  ;;  %v4295_v26 = vld [vmem:[%s8185_s11 + $0x48] sm:$0xff] }
 0x418   : > { %5444 = vmatprep.subr.mxu0 %v8353_v25  ;;  %5463 = vmatprep.subr.mxu1 %v8353_v25  ;;  %v4294_v2 = vld [vmem:[%s8185_s11 + $0x40] sm:$0xff] }
 0x419   : > { %5401 = vmatprep.mubr.f32.mxu0 %v3641_v5  ;;  %5439 = vmatprep.mubr.f32.mxu1 %v3641_v5  ;;  %v4292_v5 = vld [vmem:[%s8185_s11 + $0x30] sm:$0xff] }
 0x41a   : > { %5402 = vmatmul.mubr.f32.gmra.mxu0 %v3642_v1  ;;  %5440 = vmatmul.mubr.f32.gmra.mxu1 %v3642_v1  ;;  %v4291_v1 = vld [vmem:[%s8185_s11 + $0x28] sm:$0xff] }
 0x41b   : > { %5445 = vmatpush3.msra.mxu0 %v4860_v40  ;;  %5464 = vmatpush3.msra.mxu1 %v3856_v61  ;;  %v4290_v40 = vld [vmem:[%s8185_s11 + $0x20] sm:$0xff]  ;;  %v4289_v61 = vld [vmem:[%s8185_s11 + $0x18] sm:$0xff] }
 0x41c   : > { %5446 = vmatprep.subr.mxu0 %v8353_v25  ;;  %5465 = vmatprep.subr.mxu1 %v8353_v25 }
 0x41d   : > { %5447 = vmatpush3.msra.mxu0 %v4859_v43  ;;  %5466 = vmatpush3.msra.mxu1 %v3855_v6 }
 0x41e   : > { %5448 = vmatprep.subr.mxu0 %v8353_v25  ;;  %5467 = vmatprep.subr.mxu1 %v8353_v25 }
 0x41f   : > { %5449 = vmatpush3.msra.mxu0 %v4858_v3  ;;  %5468 = vmatpush3.msra.mxu1 %v3854_v14 }
 0x420   : > { %5450 = vmatprep.subr.mxu0 %v8353_v25  ;;  %5469 = vmatprep.subr.mxu1 %v8353_v25 }
 0x421   : > { %5451 = vmatpush3.msra.mxu0 %v4857_v24  ;;  %5470 = vmatpush3.msra.mxu1 %v3853_v46 }
 0x422   : > { %5452 = vmatprep.subr.mxu0 %v8353_v25  ;;  %5471 = vmatprep.subr.mxu1 %v8353_v25 }
 0x423   : > { %5453 = vmatpush3.msra.mxu0 %v4856_v42  ;;  %5472 = vmatpush3.msra.mxu1 %v3852_v4 }
 0x424   : > { %5454 = vmatprep.subr.mxu0 %v8353_v25  ;;  %5473 = vmatprep.subr.mxu1 %v8353_v25 }
 0x425   : > { %5455 = vmatpush3.msra.mxu0 %v4855_v19  ;;  %5474 = vmatpush3.msra.mxu1 %v3851_v47 }
 0x426   : > { %5456 = vmatprep.subr.mxu0 %v8353_v25  ;;  %5458 = vmatprep.mubr.msk.f32.mxu0 %vm5683_vm4, %v8353_v25 }
 0x427   : > { %5457 = vmatpush3.msra.mxu0 %v4854_v58  ;;  %5475 = vmatprep.subr.mxu1 %v8353_v25  ;;  %v4882_v58 = vld [vmem:[%s8182_s8] ss:$0 sm:$0xff] }
 0x428   : > { %5480 = vmatprep.subr.mxu0 %v8353_v25  ;;  %5476 = vmatpush3.msra.mxu1 %v3850_v9 }
 0x429   : > { %5477 = vmatprep.mubr.msk.f32.mxu1 %vm5683_vm4, %v8353_v25  ;;  %5499 = vmatprep.subr.mxu1 %v8353_v25 }
 0x4d6   : > { %v5400_v59 = vpop.f32.mrf.mxu0  ;;  %v5438_v18 = vpop.f32.mrf.mxu1 }
 0x4d7   : > { %v3847_v15 = vmax.f32 %v5400_v59, %v5438_v18 }
 0x4d8   : > { %v3725_v45 = vpop.f32.mrf.mxu0  ;;  %v3827_v48 = vpop.f32.mrf.mxu1 }
 0x4d9   : > { %v3846_v0 = vmax.f32 %v3725_v45, %v3827_v48  ;;  %5459 = vmatmul.mubr.msk.f32.vlgmr.msra.gmra.mxu0 %vm3867_vm5, %v3847_v15  ;;  %v4288_v15 = vld [vmem:[%s8185_s11 + $0x10] sm:$0xff]  ;;  %v4286_v45 = vld [vmem:[%s8185_s11] sm:$0xff] }
 0x4da   : > { %5481 = vmatpush3.msra.mxu0 %v4871_v37  ;;  %5496 = vmatprep.mubr.msk.f32.mxu0 %vm5683_vm4, %v8353_v25  ;;  %v5403_v53 = vpop.f32.mrf.mxu0  ;;  %v5441_v57 = vpop.f32.mrf.mxu1  ;;  %v4287_v37 = vld [vmem:[%s8185_s11 + $0x8] sm:$0xff]  ;;  %v4883_v48 = vld [vmem:[%s8184_s10] ss:$0 sm:$0xff] }
 0x4db   : > { %5482 = vmatprep.subr.mxu0 %v8353_v25  ;;  %5478 = vmatmul.mubr.msk.f32.vlgmr.msra.gmra.mxu1 %vm3867_vm5, %v3846_v0  ;;  %v3849_v10 = vmax.f32 %v5403_v53, %v5441_v57 }
 0x4dc   : > { %5483 = vmatpush3.msra.mxu0 %v4870_v30  ;;  %5500 = vmatpush3.msra.mxu1 %v4880_v11  ;;  %v3735_v38 = vpop.f32.mrf.mxu0  ;;  %v3837_v35 = vpop.f32.mrf.mxu1 }
 0x4dd   : > { %5484 = vmatprep.subr.mxu0 %v8353_v25  ;;  %5501 = vmatprep.subr.mxu1 %v8353_v25  ;;  %v3848_v62 = vmax.f32 %v3735_v38, %v3837_v35 }
 0x4de   : > { %5485 = vmatpush3.msra.mxu0 %v4869_v54  ;;  %5502 = vmatpush3.msra.mxu1 %v4879_v28 }
 0x4df   : > { %5486 = vmatprep.subr.mxu0 %v8353_v25  ;;  %5503 = vmatprep.subr.mxu1 %v8353_v25 }
 0x4e0   : > { %5487 = vmatpush3.msra.mxu0 %v4868_v50  ;;  %5504 = vmatpush3.msra.mxu1 %v4878_v36 }
 0x4e1   : > { %5488 = vmatprep.subr.mxu0 %v8353_v25  ;;  %5505 = vmatprep.subr.mxu1 %v8353_v25 }
 0x4e2   : > { %5489 = vmatpush3.msra.mxu0 %v4867_v60  ;;  %5506 = vmatpush3.msra.mxu1 %v4877_v56 }
 0x4e3   : > { %5490 = vmatprep.subr.mxu0 %v8353_v25  ;;  %5507 = vmatprep.subr.mxu1 %v8353_v25 }
 0x4e4   : > { %5491 = vmatpush3.msra.mxu0 %v4866_v32  ;;  %5508 = vmatpush3.msra.mxu1 %v4876_v31 }
 0x4e5   : > { %5492 = vmatprep.subr.mxu0 %v8353_v25  ;;  %5509 = vmatprep.subr.mxu1 %v8353_v25 }
 0x4e6   : > { %5493 = vmatpush3.msra.mxu0 %v4865_v22  ;;  %5510 = vmatpush3.msra.mxu1 %v4875_v16 }
 0x4e7   : > { %5494 = vmatprep.subr.mxu0 %v8353_v25  ;;  %5511 = vmatprep.subr.mxu1 %v8353_v25 }
 0x4e8   : > { %5495 = vmatpush3.msra.mxu0 %v4864_v55  ;;  %5512 = vmatpush3.msra.mxu1 %v4874_v51 }
 0x4e9   : > { %5497 = vmatmul.mubr.msk.f32.vlgmr.msra.gmra.mxu0 %vm3867_vm5, %v3848_v62  ;;  %5513 = vmatprep.subr.mxu1 %v8353_v25 }
 0x4ea   : > { %5514 = vmatpush3.msra.mxu1 %v4873_v8  ;;  %5515 = vmatprep.mubr.msk.f32.mxu1 %vm5683_vm4, %v8353_v25 }
 0x4eb   : > { %5516 = vmatmul.mubr.msk.f32.vlgmr.msra.gmra.mxu1 %vm3867_vm5, %v3849_v10  ;;  %5518 = vmatprep.subr.mxu0 %v8353_v25 }
 0x4ec   : > { %5519 = vmatpush3.msra.mxu0 %v4203_v7  ;;  %5548 = vmatprep.mubr.msk.f32.mxu0 %vm5683_vm4, %v8353_v25 }
 0x4ed   : > { %5520 = vmatprep.subr.mxu0 %v8353_v25  ;;  %5551 = vmatprep.subr.mxu1 %v8353_v25 }
 0x4ee   : > { %5521 = vmatpush3.msra.mxu0 %v4202_v41  ;;  %5573 = vmatprep.mubr.msk.f32.mxu1 %vm5683_vm4, %v8353_v25 }
 0x4ef   : > { %5522 = vmatprep.subr.mxu0 %v8353_v25  ;;  %5552 = vmatpush3.msk.msra.mxu1 %vm578_vm0, %v4296_v27 }
 0x4f0   : > { %5523 = vmatpush3.msra.mxu0 %v4201_v20  ;;  %5553 = vmatprep.subr.mxu1 %v8353_v25 }
 0x4f1   : > { %5524 = vmatprep.subr.mxu0 %v8353_v25  ;;  %5554 = vmatpush3.msra.mxu1 %v4295_v26 }
 0x4f2   : > { %5525 = vmatpush3.msra.mxu0 %v4200_v29  ;;  %5555 = vmatprep.subr.mxu1 %v8353_v25 }
 0x4f3   : > { %5526 = vmatprep.subr.mxu0 %v8353_v25  ;;  %5556 = vmatpush3.msra.mxu1 %v4294_v2 }
 0x4f4   : > { %5527 = vmatpush3.msra.mxu0 %v4199_v23  ;;  %5557 = vmatprep.subr.mxu1 %v8353_v25 }
 0x4f5   : > { %5528 = vmatprep.subr.mxu0 %v8353_v25  ;;  %5558 = vmatpush3.msra.mxu1 %v4293_v12 }
 0x4f6   : > { %5529 = vmatpush3.msra.mxu0 %v4198_v44  ;;  %5559 = vmatprep.subr.mxu1 %v8353_v25 }
 0x4f7   : > { %5530 = vmatprep.subr.mxu0 %v8353_v25  ;;  %5560 = vmatpush3.msra.mxu1 %v4292_v5 }
 0x4f8   : > { %5531 = vmatpush3.msra.mxu0 %v4197_v34  ;;  %5561 = vmatprep.subr.mxu1 %v8353_v25 }
 0x4f9   : > { %5532 = vmatprep.subr.mxu0 %v8353_v25  ;;  %5562 = vmatpush3.msra.mxu1 %v4291_v1 }
 0x4fa   : > { %5533 = vmatpush3.msra.mxu0 %v4196_v63  ;;  %5563 = vmatprep.subr.mxu1 %v8353_v25 }
 0x4fb   : > { %5534 = vmatprep.subr.mxu0 %v8353_v25  ;;  %5564 = vmatpush3.msra.mxu1 %v4290_v40 }
 0x4fc   : > { %5535 = vmatpush3.msra.mxu0 %v4195_v13  ;;  %5565 = vmatprep.subr.mxu1 %v8353_v25 }
 0x4fd   : > { %5536 = vmatprep.subr.mxu0 %v8353_v25  ;;  %5566 = vmatpush3.msra.mxu1 %v4289_v61 }
 0x4fe   : > { %5537 = vmatpush3.msra.mxu0 %v4194_v49  ;;  %5567 = vmatprep.subr.mxu1 %v8353_v25 }
 0x4ff   : > { %5538 = vmatprep.subr.mxu0 %v8353_v25  ;;  %5568 = vmatpush3.msra.mxu1 %v4288_v15 }
 0x500   : > { %5539 = vmatpush3.msra.mxu0 %v4193_v39  ;;  %5569 = vmatprep.subr.mxu1 %v8353_v25 }
 0x501   : > { %5540 = vmatprep.subr.mxu0 %v8353_v25  ;;  %5570 = vmatpush3.msra.mxu1 %v4287_v37 }
 0x502   : > { %5541 = vmatpush3.msra.mxu0 %v4192_v33  ;;  %5571 = vmatprep.subr.mxu1 %v8353_v25 }
 0x503   : > { %5542 = vmatprep.subr.mxu0 %v8353_v25  ;;  %5572 = vmatpush3.msra.mxu1 %v4286_v45 }
 0x504   : > { %5543 = vmatpush3.msra.mxu0 %v4191_v52 }
 0x505   : > { %5544 = vmatprep.subr.mxu0 %v8353_v25 }
 0x506   : > { %5545 = vmatpush3.msra.mxu0 %v4190_v17 }
 0x507   : > { %5546 = vmatprep.subr.mxu0 %v8353_v25  ;;  %v4885_v25 = vld [vmem:[%s8186_s12] ss:$0 sm:$0xff] }
 0x508   : > { %5547 = vmatpush3.msra.mxu0 %v4189_v21 }
 0x599   : > { %v3937_v43 = vpop.f32.mrf.mxu0 }
 0x59b   : > { %v5460_v6 = vpop.f32.mrf.mxu0  ;;  %v4010_v3 = vpop.f32.mrf.mxu1 }
 0x59c   : > { %v4011_v24 = vadd.f32 %v4010_v3, %v3937_v43 }
 0x59d   : > { %v5479_v14 = vpop.f32.mrf.mxu1 }
 0x5a9   : > { %v4092_v46 = vpop.f32.mrf.mxu0 }
 0x5aa   : > { %v4096_v42 = vadd.f32 %v4092_v46, %v4011_v24 }
 0x5ab   : > { %v5498_v4 = vpop.f32.mrf.mxu0  ;;  %v4175_v19 = vpop.f32.mrf.mxu1 }
 0x5ac   : > { %v4179_v47 = vadd.f32 %v4175_v19, %v4096_v42 }
 0x5ad   : > { %v5517_v9 = vpop.f32.mrf.mxu1 }
 0x5ae   : > { %v4187_v59 = vadd.f32 %v4882_v58, %v4179_v47 }
 0x5b0   : > { %v4188_v18 = vmax.f32 %v4187_v59, 0.0 }
 0x5b2   : > { %5549 = vmatmul.mubr.msk.f32.vlgmr.msra.gmra.mxu0 %vm4211_vm6, %v4188_v18 }
 0x672   : > { %v4281_v0 = vpop.f32.mrf.mxu0 }
 0x673   : > { %v4282_v30 = vadd.f32 %v4883_v48, %v4281_v0 }
 0x674   : > { %v5550_v11 = vpop.f32.mrf.mxu0 }
 0x675   : > { %v4285_v54 = vmax.f32 %v4282_v30, 0.0 }
 0x677   : > { %5574 = vmatmul.mubr.msk.f32.vlgmr.msra.gmra.mxu1 %vm4304_vm7, %v4285_v54 }
 0x737   : > { %v4377_v28 = vpop.f32.mrf.mxu1 }
 0x738   : > { %v4378_v50 = vadd.f32 %v4885_v25, %v4377_v28 }
 0x739   : > { %v5575_v36 = vpop.f32.mrf.mxu1 }
 0x73a   : > { %4381 = vst [vmem:[%s433_s21] sm:$0xff] %v4378_v50 }
 0x73b   : > { %5633 = shalt.err (!%p5630_p3)
}
 0x73c   : > { %s5634_s27 = scalar_lea.hbm %s8139_s30, 128  ;;  %s5638_s21 = scalar_lea.hbm %s8187_s13, 256 }
 0x73d   : > { %p5635_p4 = scmp.ne.s32.totalorder %s8139_s30, %s5634_s27  ;;  %p5639_p9 = scmp.lt.s32.totalorder %s8139_s30, %s8187_s13 }
 0x73e   : > { %p5640_p10 = scmp.lt.s32.totalorder %s5638_s21, %s5634_s27 }
 0x73f   : > { %p5636_p7 = pnand %p5635_p4, %p5793_p5 }
 0x740   : > { %p5641_p11 = por %p5640_p10, %p5639_p9 }
 0x741   : > { %p5637_p8 = pneg %p5636_p7 }
 0x743   : > { %p5642_p12 = pnand %p5641_p11, %p5637_p8 }
 0x745   : > { %5645 = shalt.err (!%p5642_p12)
}
 0x746   : > { %5577 = dma.vmem_to_hbm [thread:$0]  (%p5793_p5), %s4397_s22, 128, %s8139_s30, %s4383_s0  }
 0x747 PF: > { %p5583_p13 = scmp.ge.s32.totalorder %s5680_s28, 2  ;;  %s4408_s1 = sand.u32 1, %s5668_s25  }
 0x748   : > { %s4409_s17 = scalar_lea.sflag [#allocation3], %s4408_s1 }
 0x749   : > { %p5580_p0 = pnand %p5583_p13, %p5797_p6 }
 0x74b   : > { %p5581_p1 = pneg %p5580_p0 }
 0x74d   : > { %5663 = dma.done.wait (%p5581_p1), %s4409_s17, 128  }
 0x74e   : > { %5665 = vsyncadd (%p5581_p1), %s4409_s17, 4294967168  ;;  %s8380_s29 = sld [smem:[#allocation5_spill]]  ;;  %p23_p2 = scmp.ge.s32.totalorder %s5780_s14, 4  }
 0x74f   : > { %s8381_s27 = sld [smem:[#allocation6_spill]]  ;;  %s8382_s25 = smov %s5672_s26 }
 0x750   : > { %s8384_s28 = smov %s5780_s14  ;;  %25 = sbr.rel (!%p23_p2) target bundleno = 6 (0x6), region = 124 }
 0x754   : > { %s8383_s26 = smov %s8380_s29 }
 0x755   :  { %4414 = vsyncpa [#allocation3], 1 }
 0x756   :  { %4416 = vsyncpa [#allocation3 + $0x1], 1 }

</bundles_post_ra>
